<compile_context>
chip_gen: v6e
topology: v6e:2x2x1
jax: 0.10.0
libtpu: 0.0.40
codegen_flags: <defaults>
</compile_context>

<pallas_src>
import jax
import jax.numpy as jnp
from jax.experimental import pallas as pl
from jax.experimental.pallas import tpu as pltpu


# ---------------------------------------------------------------------------
# Fused whole-MLP kernel
# ---------------------------------------------------------------------------
def _make_fused_mlp_kernel(num_hidden):
    """Build a kernel for `num_hidden` hidden layers + 1 final linear layer.

    Kernel args (after the scalar-prefetch beta ref):
        x_ref                               : (bm, in_size) input tile
        wt_0, b_0, ..., wt_L, b_L           : (K_l, N_l) / (1, N_l), VMEM-resident
        pre_0, ..., pre_{H-1}, out          : output tiles
    """
    num_layers = num_hidden + 1

    def kernel(beta_ref, x_ref, *refs):
        w_refs = refs[0:2 * num_layers:2]      # transposed weights (K_l, N_l)
        b_refs = refs[1:2 * num_layers:2]      # biases (1, N_l)
        out_refs = refs[2 * num_layers:]
        pre_refs = out_refs[:num_hidden]
        final_ref = out_refs[num_hidden]

        beta = beta_ref[0]
        inv_1p1 = jnp.float32(1.0 / 1.1)

        h = x_ref[...]
        for l in range(num_hidden):
            pre = jnp.dot(h, w_refs[l][...],
                          preferred_element_type=jnp.float32) + b_refs[l][...]
            pre_refs[l][...] = pre.astype(pre_refs[l].dtype)
            # LipSwish(x) = x * sigmoid(beta*x) / 1.1.  exp goes to the EUP
            # slot; the exact divide keeps the 1e-4 accuracy budget (the
            # kernel is HBM/MXU-bound, so the VALU divide is free filler).
            sig = 1.0 / (1.0 + jnp.exp(-beta * pre))
            h = pre * sig * inv_1p1
        out = jnp.dot(h, w_refs[num_hidden][...],
                      preferred_element_type=jnp.float32) + b_refs[num_hidden][...]
        final_ref[...] = out.astype(final_ref.dtype)

    return kernel


# ---------------------------------------------------------------------------
# Wrappers
# ---------------------------------------------------------------------------
def _pick_bm(M, pref=256):
    """Largest power-of-two M tile <= pref that divides M and leaves >= 2
    grid blocks (both v7x TensorCores get work); falls back to full M."""
    t = pref
    while t >= 8:
        if M % t == 0 and M // t >= 2:
            return t
        t //= 2
    return M


def _spectral_scale_t(w, u0, coeff, n_power_iterations):
    """i-ResNet scaled spectral norm, returned TRANSPOSED: W_hat^T (K, N).

    Folding the transpose here lets it fuse with the elementwise division
    instead of materializing a separate HBM transpose copy in front of the
    pallas custom call.
    """
    u = u0
    v = None
    for _ in range(n_power_iterations):
        v = w.T @ u
        v = v / (jnp.linalg.norm(v) + 1e-12)
        u = w @ v
        u = u / (jnp.linalg.norm(u) + 1e-12)
    sigma = jnp.dot(u, w @ v)
    factor = jnp.maximum(jnp.float32(1.0), sigma / coeff)
    return (w / factor).T


def masked_specnorm_mlp_forward(x, weights, biases, u_vecs, beta, coeff,
                                n_power_iterations, block_m=256):
    """Matches MaskedSpecNormMLP.forward: returns (out, [pre-act hidden outs]).

    Note: MaskedLayer.forward in the reference never applies its mask, so the
    masks are intentionally unused here as well.
    """
    M, in_size = x.shape
    num_layers = len(weights)
    num_hidden = num_layers - 1

    beta_arr = jnp.asarray(beta, jnp.float32).reshape(1)
    wts = [_spectral_scale_t(w, u, coeff, n_power_iterations)
           for w, u in zip(weights, u_vecs)]                    # (K_l, N_l)
    b2s = [jnp.reshape(b, (1, -1)) for b in biases]             # (1, N_l)
    n_out = [w.shape[0] for w in weights]                       # N per layer

    bm = _pick_bm(M, block_m)
    grid = (M // bm,)

    # index maps get (grid_i, beta_ref) because of num_scalar_prefetch=1.
    in_specs = [pl.BlockSpec((bm, in_size), lambda i, *_: (i, 0))]
    operands = [x]
    for wt, b2 in zip(wts, b2s):
        # Full-array blocks with constant index maps: fetched once, stay
        # resident in VMEM across the whole M grid.
        in_specs.append(pl.BlockSpec(wt.shape, lambda i, *_: (0, 0)))
        in_specs.append(pl.BlockSpec(b2.shape, lambda i, *_: (0, 0)))
        operands.extend((wt, b2))

    out_shape = tuple(jax.ShapeDtypeStruct((M, n), x.dtype) for n in n_out)
    out_specs = tuple(pl.BlockSpec((bm, n), lambda i, *_: (i, 0))
                      for n in n_out)

    kernel = _make_fused_mlp_kernel(num_hidden)
    results = pl.pallas_call(
        kernel,
        out_shape=out_shape,
        grid_spec=pltpu.PrefetchScalarGridSpec(
            num_scalar_prefetch=1,
            grid=grid,
            in_specs=in_specs,
            out_specs=out_specs),
        compiler_params=pltpu.CompilerParams(
            dimension_semantics=("parallel",)),
    )(beta_arr, *operands)

    layer_output = list(results[:num_hidden])
    out = results[num_hidden]
    return out, layer_output


forward_jit = jax.jit(masked_specnorm_mlp_forward,
                      static_argnames=("n_power_iterations", "block_m"))


# ---------------------------------------------------------------------------
# Demo / correctness check
# ---------------------------------------------------------------------------
if __name__ == "__main__":
    key = jax.random.PRNGKey(0)

    in_size, hidden, out_size = 128, [256, 256], 128
    batch = 512
    coeff = 0.9
    n_power_iterations = 5
    beta = jnp.float32(1.0)   # LipSwish beta parameter (init 1.0)

    dims_in = [in_size] + hidden
    dims_out = hidden + [out_size]

    keys = jax.random.split(key, 2 * len(dims_in) + 2)
    weights, biases, u_vecs = [], [], []
    for m, (di, do) in enumerate(zip(dims_in, dims_out)):
        kw, kb = keys[2 * m], keys[2 * m + 1]
        bound = 1.0 / (di ** 0.5)     # nn.Linear default init range
        weights.append(jax.random.uniform(kw, (do, di), jnp.float32,
                                          -bound, bound))
        biases.append(jax.random.uniform(kb, (do,), jnp.float32,
                                         -bound, bound))
    ku, kx = keys[-2], keys[-1]
    for i, do in enumerate(dims_out):
        u = jax.random.normal(jax.random.fold_in(ku, i), (do,), jnp.float32)
        u_vecs.append(u / jnp.linalg.norm(u))

    x = jax.random.normal(kx, (batch, in_size), jnp.float32)

    out, layer_output = forward_jit(x, weights, biases, u_vecs, beta, coeff,
                                    n_power_iterations=n_power_iterations)
    out = jax.block_until_ready(out)
    layer_output = [jax.block_until_ready(t) for t in layer_output]

    # ----- plain-JAX reference -----
    w_hat_ts = [_spectral_scale_t(w, u, coeff, n_power_iterations)
                for w, u in zip(weights, u_vecs)]
    h = x
    ref_layer_out = []
    for l in range(len(w_hat_ts) - 1):
        pre = jnp.dot(h, w_hat_ts[l],
                      precision=jax.lax.Precision.HIGHEST) + biases[l]
        ref_layer_out.append(pre)
        h = pre * (1.0 / (1.0 + jnp.exp(-beta * pre))) / 1.1
    ref_out = jnp.dot(h, w_hat_ts[-1],
                      precision=jax.lax.Precision.HIGHEST) + biases[-1]

    assert out.shape == (batch, out_size) and out.dtype == x.dtype
    assert len(layer_output) == len(hidden)
    assert jnp.allclose(out, ref_out, atol=1e-4, rtol=1e-4), \
        float(jnp.max(jnp.abs(out - ref_out)))
    for got, want in zip(layer_output, ref_layer_out):
        assert got.shape == want.shape
        assert jnp.allclose(got, want, atol=1e-4, rtol=1e-4), \
            float(jnp.max(jnp.abs(got - want)))

    print("KERNEL_OK")
</pallas_src>

<mosaic_0001>
module attributes {stable_mosaic.version = 11 : i64} {
  func.func @kernel(%arg0: i32, %arg1: memref<1xf32, #tpu.memory_space<smem>>, %arg2: memref<256x128xf32, #tpu.memory_space<vmem>>, %arg3: memref<128x256xf32, #tpu.memory_space<vmem>>, %arg4: memref<1x256xf32, #tpu.memory_space<vmem>>, %arg5: memref<256x256xf32, #tpu.memory_space<vmem>>, %arg6: memref<1x256xf32, #tpu.memory_space<vmem>>, %arg7: memref<256x128xf32, #tpu.memory_space<vmem>>, %arg8: memref<1x128xf32, #tpu.memory_space<vmem>>, %arg9: memref<256x256xf32, #tpu.memory_space<vmem>>, %arg10: memref<256x256xf32, #tpu.memory_space<vmem>>, %arg11: memref<256x128xf32, #tpu.memory_space<vmem>>) attributes {dimension_semantics = [#tpu.dimension_semantics<parallel>], iteration_bounds = array<i64: 2>, scalar_prefetch = 1 : i64, scratch_operands = 0 : i64, tpu.core_type = #tpu.core_type<tc>, window_params = [{transform_indices = @transform_0, window_bounds = array<i64: 256, 128>}, {pipeline_mode = #tpu.pipeline_mode<synchronous>, transform_indices = @transform_1, window_bounds = array<i64: 128, 256>}, {pipeline_mode = #tpu.pipeline_mode<synchronous>, transform_indices = @transform_2, window_bounds = array<i64: 1, 256>}, {pipeline_mode = #tpu.pipeline_mode<synchronous>, transform_indices = @transform_3, window_bounds = array<i64: 256, 256>}, {pipeline_mode = #tpu.pipeline_mode<synchronous>, transform_indices = @transform_4, window_bounds = array<i64: 1, 256>}, {pipeline_mode = #tpu.pipeline_mode<synchronous>, transform_indices = @transform_5, window_bounds = array<i64: 256, 128>}, {pipeline_mode = #tpu.pipeline_mode<synchronous>, transform_indices = @transform_6, window_bounds = array<i64: 1, 128>}, {transform_indices = @transform_7, window_bounds = array<i64: 256, 256>}, {transform_indices = @transform_8, window_bounds = array<i64: 256, 256>}, {transform_indices = @transform_9, window_bounds = array<i64: 256, 128>}]} {
    %c0 = arith.constant 0 : index
    %0 = memref.load %arg1[%c0] : memref<1xf32, #tpu.memory_space<smem>>
    %c0_0 = arith.constant 0 : index
    %c0_1 = arith.constant 0 : index
    %1 = vector.load %arg2[%c0_0, %c0_1] : memref<256x128xf32, #tpu.memory_space<vmem>>, vector<256x128xf32>
    %c0_2 = arith.constant 0 : index
    %c0_3 = arith.constant 0 : index
    %2 = vector.load %arg3[%c0_2, %c0_3] : memref<128x256xf32, #tpu.memory_space<vmem>>, vector<128x256xf32>
    %cst = arith.constant dense<0.000000e+00> : vector<256x256xf32>
    %3 = tpu.matmul %1, %2, %cst {dimension_numbers = #tpu.dot_dimension_numbers<[1], [0], [0], [1], [0, 0, 1, 1], [], []>} : vector<256x128xf32>, vector<128x256xf32>, vector<256x256xf32> -> vector<256x256xf32>
    %c0_4 = arith.constant 0 : index
    %c0_5 = arith.constant 0 : index
    %4 = vector.load %arg4[%c0_4, %c0_5] : memref<1x256xf32, #tpu.memory_space<vmem>>, vector<1x256xf32>
    %5 = vector.broadcast %4 : vector<1x256xf32> to vector<256x256xf32>
    %6 = arith.addf %3, %5 : vector<256x256xf32>
    %c0_6 = arith.constant 0 : index
    %c0_7 = arith.constant 0 : index
    %7 = vector.load %arg9[%c0_6, %c0_7] : memref<256x256xf32, #tpu.memory_space<vmem>>, vector<256x256xf32>
    tpu.vector_store %arg9[%c0_6, %c0_7], %6 {strides = array<i32>} : memref<256x256xf32, #tpu.memory_space<vmem>>, vector<256x256xf32>,
    %cst_8 = arith.constant 0.000000e+00 : f32
    %8 = arith.subf %cst_8, %0 : f32
    %9 = vector.broadcast %8 : f32 to vector<256x256xf32>
    %10 = arith.mulf %9, %6 : vector<256x256xf32>
    %11 = math.exp %10 : vector<256x256xf32>
    %cst_9 = arith.constant 1.000000e+00 : f32
    %12 = vector.broadcast %cst_9 : f32 to vector<256x256xf32>
    %13 = arith.addf %12, %11 : vector<256x256xf32>
    %cst_10 = arith.constant 1.000000e+00 : f32
    %14 = vector.broadcast %cst_10 : f32 to vector<256x256xf32>
    %15 = arith.divf %14, %13 : vector<256x256xf32>
    %16 = arith.mulf %6, %15 : vector<256x256xf32>
    %cst_11 = arith.constant 0.909090936 : f32
    %17 = vector.broadcast %cst_11 : f32 to vector<256x256xf32>
    %18 = arith.mulf %16, %17 : vector<256x256xf32>
    %c0_12 = arith.constant 0 : index
    %c0_13 = arith.constant 0 : index
    %19 = vector.load %arg5[%c0_12, %c0_13] : memref<256x256xf32, #tpu.memory_space<vmem>>, vector<256x256xf32>
    %cst_14 = arith.constant dense<0.000000e+00> : vector<256x256xf32>
    %20 = tpu.matmul %18, %19, %cst_14 {dimension_numbers = #tpu.dot_dimension_numbers<[1], [0], [0], [1], [0, 0, 1, 1], [], []>} : vector<256x256xf32>, vector<256x256xf32>, vector<256x256xf32> -> vector<256x256xf32>
    %c0_15 = arith.constant 0 : index
    %c0_16 = arith.constant 0 : index
    %21 = vector.load %arg6[%c0_15, %c0_16] : memref<1x256xf32, #tpu.memory_space<vmem>>, vector<1x256xf32>
    %22 = vector.broadcast %21 : vector<1x256xf32> to vector<256x256xf32>
    %23 = arith.addf %20, %22 : vector<256x256xf32>
    %c0_17 = arith.constant 0 : index
    %c0_18 = arith.constant 0 : index
    %24 = vector.load %arg10[%c0_17, %c0_18] : memref<256x256xf32, #tpu.memory_space<vmem>>, vector<256x256xf32>
    tpu.vector_store %arg10[%c0_17, %c0_18], %23 {strides = array<i32>} : memref<256x256xf32, #tpu.memory_space<vmem>>, vector<256x256xf32>,
    %cst_19 = arith.constant 0.000000e+00 : f32
    %25 = arith.subf %cst_19, %0 : f32
    %26 = vector.broadcast %25 : f32 to vector<256x256xf32>
    %27 = arith.mulf %26, %23 : vector<256x256xf32>
    %28 = math.exp %27 : vector<256x256xf32>
    %cst_20 = arith.constant 1.000000e+00 : f32
    %29 = vector.broadcast %cst_20 : f32 to vector<256x256xf32>
    %30 = arith.addf %29, %28 : vector<256x256xf32>
    %cst_21 = arith.constant 1.000000e+00 : f32
    %31 = vector.broadcast %cst_21 : f32 to vector<256x256xf32>
    %32 = arith.divf %31, %30 : vector<256x256xf32>
    %33 = arith.mulf %23, %32 : vector<256x256xf32>
    %cst_22 = arith.constant 0.909090936 : f32
    %34 = vector.broadcast %cst_22 : f32 to vector<256x256xf32>
    %35 = arith.mulf %33, %34 : vector<256x256xf32>
    %c0_23 = arith.constant 0 : index
    %c0_24 = arith.constant 0 : index
    %36 = vector.load %arg7[%c0_23, %c0_24] : memref<256x128xf32, #tpu.memory_space<vmem>>, vector<256x128xf32>
    %cst_25 = arith.constant dense<0.000000e+00> : vector<256x128xf32>
    %37 = tpu.matmul %35, %36, %cst_25 {dimension_numbers = #tpu.dot_dimension_numbers<[1], [0], [0], [1], [0, 0, 1, 1], [], []>} : vector<256x256xf32>, vector<256x128xf32>, vector<256x128xf32> -> vector<256x128xf32>
    %c0_26 = arith.constant 0 : index
    %c0_27 = arith.constant 0 : index
    %38 = vector.load %arg8[%c0_26, %c0_27] : memref<1x128xf32, #tpu.memory_space<vmem>>, vector<1x128xf32>
    %39 = vector.broadcast %38 : vector<1x128xf32> to vector<256x128xf32>
    %40 = arith.addf %37, %39 : vector<256x128xf32>
    %c0_28 = arith.constant 0 : index
    %c0_29 = arith.constant 0 : index
    %41 = vector.load %arg11[%c0_28, %c0_29] : memref<256x128xf32, #tpu.memory_space<vmem>>, vector<256x128xf32>
    tpu.vector_store %arg11[%c0_28, %c0_29], %40 {strides = array<i32>} : memref<256x128xf32, #tpu.memory_space<vmem>>, vector<256x128xf32>,
    return
  }
  func.func @transform_0(%arg0: i32, %arg1: memref<1xf32, #tpu.memory_space<smem>>) -> (i32, i32) {
    %c0_i32 = arith.constant 0 : i32
    %c0_i32_0 = arith.constant 0 : i32
    return %arg0, %c0_i32 : i32, i32
  }
  func.func @transform_1(%arg0: i32, %arg1: memref<1xf32, #tpu.memory_space<smem>>) -> (i32, i32) {
    %c0_i32 = arith.constant 0 : i32
    %c0_i32_0 = arith.constant 0 : i32
    %c0_i32_1 = arith.constant 0 : i32
    return %c0_i32, %c0_i32_0 : i32, i32
  }
  func.func @transform_2(%arg0: i32, %arg1: memref<1xf32, #tpu.memory_space<smem>>) -> (i32, i32) {
    %c0_i32 = arith.constant 0 : i32
    %c0_i32_0 = arith.constant 0 : i32
    %c0_i32_1 = arith.constant 0 : i32
    return %c0_i32, %c0_i32_0 : i32, i32
  }
  func.func @transform_3(%arg0: i32, %arg1: memref<1xf32, #tpu.memory_space<smem>>) -> (i32, i32) {
    %c0_i32 = arith.constant 0 : i32
    %c0_i32_0 = arith.constant 0 : i32
    %c0_i32_1 = arith.constant 0 : i32
    return %c0_i32, %c0_i32_0 : i32, i32
  }
  func.func @transform_4(%arg0: i32, %arg1: memref<1xf32, #tpu.memory_space<smem>>) -> (i32, i32) {
    %c0_i32 = arith.constant 0 : i32
    %c0_i32_0 = arith.constant 0 : i32
    %c0_i32_1 = arith.constant 0 : i32
    return %c0_i32, %c0_i32_0 : i32, i32
  }
  func.func @transform_5(%arg0: i32, %arg1: memref<1xf32, #tpu.memory_space<smem>>) -> (i32, i32) {
    %c0_i32 = arith.constant 0 : i32
    %c0_i32_0 = arith.constant 0 : i32
    %c0_i32_1 = arith.constant 0 : i32
    return %c0_i32, %c0_i32_0 : i32, i32
  }
  func.func @transform_6(%arg0: i32, %arg1: memref<1xf32, #tpu.memory_space<smem>>) -> (i32, i32) {
    %c0_i32 = arith.constant 0 : i32
    %c0_i32_0 = arith.constant 0 : i32
    %c0_i32_1 = arith.constant 0 : i32
    return %c0_i32, %c0_i32_0 : i32, i32
  }
  func.func @transform_7(%arg0: i32, %arg1: memref<1xf32, #tpu.memory_space<smem>>) -> (i32, i32) {
    %c0_i32 = arith.constant 0 : i32
    %c0_i32_0 = arith.constant 0 : i32
    return %arg0, %c0_i32 : i32, i32
  }
  func.func @transform_8(%arg0: i32, %arg1: memref<1xf32, #tpu.memory_space<smem>>) -> (i32, i32) {
    %c0_i32 = arith.constant 0 : i32
    %c0_i32_0 = arith.constant 0 : i32
    return %arg0, %c0_i32 : i32, i32
  }
  func.func @transform_9(%arg0: i32, %arg1: memref<1xf32, #tpu.memory_space<smem>>) -> (i32, i32) {
    %c0_i32 = arith.constant 0 : i32
    %c0_i32_0 = arith.constant 0 : i32
    return %arg0, %c0_i32 : i32, i32
  }
}

</mosaic_0001>

<bundles_post_ra>
// kernel: masked_specnorm_mlp_forward.1
= control target key start
LH: loop header
LB: loop body
LE: loop exit
PB: predicated region body
PF: predicated region fallthrough
CT: control target
= control target key end

     0   :  { %s5327_s0 = inlined_call_operand.<no memory space> [shape: f32[1], index: 0, kind: input, shape index: {}]   ;;  %s5328_s1 = inlined_call_operand.vmem [shape: f32[512,128], index: 1, kind: input, shape index: {}]   ;;  %s5329_s2 = inlined_call_operand.vmem [shape: f32[128,256], index: 2, kind: input, shape index: {}]   ;;  %s5330_s3 = inlined_call_operand.vmem [shape: f32[1,256], index: 3, kind: input, shape index: {}]   ;;  %s5331_s4 = inlined_call_operand.vmem [shape: f32[256,256], index: 4, kind: input, shape index: {}]   ;;  %s5332_s5 = inlined_call_operand.vmem [shape: f32[1,256], index: 5, kind: input, shape index: {}]   ;;  %s5333_s6 = inlined_call_operand.vmem [shape: f32[256,128], index: 6, kind: input, shape index: {}]   ;;  %s5334_s7 = inlined_call_operand.vmem [shape: f32[1,128], index: 7, kind: input, shape index: {}]   ;;  %s5335_s8 = inlined_call_operand.hbm [shape: f32[512,256], index: 8, kind: output, shape index: {0}]   ;;  %s5336_s9 = inlined_call_operand.hbm [shape: f32[512,256], index: 9, kind: output, shape index: {1}]   ;;  %s5337_s10 = inlined_call_operand.hbm [shape: f32[512,128], index: 10, kind: output, shape index: {2}]  }
   0x1   :  { %5351 = sst [smem:[#allocation16_spill]] %s5328_s1 }
   0x2   :  { %5352 = sst [smem:[#allocation17_spill]] %s5329_s2 }
   0x3   :  { %5353 = sst [smem:[#allocation18_spill]] %s5330_s3 }
   0x4   :  { %5354 = sst [smem:[#allocation19_spill]] %s5331_s4 }
   0x5   :  { %16 = sst [smem:[#allocation3]] %s5327_s0 }
   0x6   :  { %17 = vsyncpa [#allocation5], 0 }
   0x7   :  { %19 = vsyncpa [#allocation5 + $0x1], 0 }
   0x8   :  { %20 = vsyncpa [#allocation7], 0 }
   0x9   :  { %22 = vsyncpa [#allocation7 + $0x1], 0  ;;  %s3478_s15 = smov 0   ;;  %s3480_s16 = smov 0  }
   0xa   :  { %s3482_s17 = smov 0   ;;  %s3484_s18 = smov 0  }
   0xb LB: > { %s3499_s0 = sadd.s32 4294967295, %s3410_s18   ;;  %s5350_s19 = sadd.s32 4294967294, %s3410_s18   ;;  %s3410_s18 = sphi %s3484_s18, %s5378_s18   ;;  %s3406_s17 = sphi %s3482_s17, %s5377_s17   ;;  %s3402_s16 = sphi %s3480_s16, %s5376_s16   ;;  %s3398_s15 = sphi %s3478_s15, %s5375_s15  }
   0xc   : > { %s3503_s20 = sadd.s32 1, %s3410_s18   ;;  %s187_s21 = sadd.s32 1, %s3406_s17 }
   0xd   : > { %s184_s22 = ssub.s32 %s3410_s18, %s3503_s20  ;;  %p197_p0 = scmp.ne.s32.totalorder %s3406_s17, %s3402_s16 }
   0xe   : > { %p185_p1 = scmp.eq.s32.totalorder %s184_s22, 0  ;;  %p198_p2 = scmp.eq.s32.totalorder %s3499_s0, 1 }
   0xf   : > { %p203_p3 = scmp.ne.s32.totalorder %s3402_s16, %s3398_s15  ;;  %p204_p4 = scmp.eq.s32.totalorder %s5350_s19, 1 }
  0x10   : > { %s3516_s23 = scalar_select %p185_p1, %s3406_s17, %s187_s21  }
  0x11   : > { %p3518_p5 = por %p198_p2, %p197_p0  ;;  %p3522_p6 = por %p204_p4, %p203_p3 }
  0x12   : > { %p2657_p7 = scmp.ge.s32.totalorder %s3410_s18, 1  ;;  %p301_p8 = scmp.lt.s32.totalorder %s3410_s18, 3 }
  0x14   : > { %p302_p9 = pnand %p2657_p7, %p301_p8 }
  0x16   : > { %305 = sbr.rel (%p302_p9) target bundleno = 908 (0x38c), region = 48 }
  0x1b   : > { %s5357_s2 = sld [smem:[#allocation17_spill]]  ;;  %v5340_v8 = vmov 0.0   ;;  %s2661_s22 = sshll.u32 %s3499_s0, 5 }
  0x1c   : > { %497 = vmatprep.mubr.f32.mxu0 %v5340_v8  ;;  %p348_p10 = scmp.lt.s32.totalorder %s2661_s22, 63  ;;  %s5358_s1 = sld [smem:[#allocation16_spill]]  ;;  %593 = vmatprep.mubr.f32.mxu1 %v5340_v8 }
  0x1d   : > { %s5359_s4 = sld [smem:[#allocation19_spill]]  ;;  %s3891_s12 = sand.u32 1, %s3402_s16  }
  0x1e   : > { %s5380_s22 = smov (!%p348_p10, %s2661_s22), 63  ;;  %s5361_s3 = sld [smem:[#allocation18_spill]] }
  0x1f   : > { %s2662_s28 = sshll.u32 %s5380_s22, 3  ;;  %s2658_s22 = sshll.u32 %s3891_s12, 9 }
  0x20   : > { %s3913_s27 = scalar_lea.vmem [#allocation4], %s2658_s22  ;;  %s4627_s11 = scalar_lea.vmem [#allocation6], %s2658_s22 }
  0x21   : > { %v420_v0 = vld [vmem:[%s5357_s2 + $0xf8] sm:$0xff]  ;;  %v419_v1 = vld [vmem:[%s5357_s2 + $0xf0] sm:$0xff]  ;;  %v418_v2 = vld [vmem:[%s5357_s2 + $0xe8] sm:$0xff]  ;;  %s2660_s22 = sshll.u32 %s3891_s12, 8  ;;  %s2478_s14 = sand.u32 1, %s3499_s0  }
  0x22   : > { %433 = vmatprep.subr.mxu0 %v420_v0  ;;  %v417_v3 = vld [vmem:[%s5357_s2 + $0xe0] sm:$0xff]  ;;  %2682 = vmatprep.subr.mxu1 %v420_v0  ;;  %v416_v4 = vld [vmem:[%s5357_s2 + $0xd8] sm:$0xff]  ;;  %v415_v5 = vld [vmem:[%s5357_s2 + $0xd0] sm:$0xff]  ;;  %s3623_s26 = scalar_lea.vmem %s5358_s1, %s2662_s28  ;;  %s356_s28 = sld [smem:[#allocation3]] }
  0x23   : > { %434 = vmatpush1.msra.mxu0 %v419_v1  ;;  %2698 = vmatpush1.msra.mxu1 %v419_v1  ;;  %v414_v6 = vld [vmem:[%s5357_s2 + $0xc8] sm:$0xff]  ;;  %v413_v7 = vld [vmem:[%s5357_s2 + $0xc0] sm:$0xff]  ;;  %v412_v9 = vld [vmem:[%s5357_s2 + $0xb8] sm:$0xff]  ;;  %s5145_s13 = scalar_lea.vmem [#allocation8], %s2660_s22  ;;  %s3413_s29 = smov [#allocation6]  }
  0x24   : > { %435 = vmatprep.subr.mxu0 %v418_v2  ;;  %2683 = vmatprep.subr.mxu1 %v418_v2  ;;  %v411_v10 = vld [vmem:[%s5357_s2 + $0xb0] sm:$0xff]  ;;  %v410_v11 = vld [vmem:[%s5357_s2 + $0xa8] sm:$0xff]  ;;  %v409_v12 = vld [vmem:[%s5357_s2 + $0xa0] sm:$0xff] }
  0x25   : > { %436 = vmatpush1.msra.mxu0 %v417_v3  ;;  %2699 = vmatpush1.msra.mxu1 %v417_v3  ;;  %v408_v13 = vld [vmem:[%s5357_s2 + $0x98] sm:$0xff]  ;;  %v407_v14 = vld [vmem:[%s5357_s2 + $0x90] sm:$0xff]  ;;  %v406_v15 = vld [vmem:[%s5357_s2 + $0x88] sm:$0xff] }
  0x26   : > { %437 = vmatprep.subr.mxu0 %v416_v4  ;;  %2684 = vmatprep.subr.mxu1 %v416_v4  ;;  %v405_v16 = vld [vmem:[%s5357_s2 + $0x80] sm:$0xff]  ;;  %v404_v17 = vld [vmem:[%s5357_s2 + $0x78] sm:$0xff]  ;;  %v403_v18 = vld [vmem:[%s5357_s2 + $0x70] sm:$0xff] }
  0x27   : > { %438 = vmatpush1.msra.mxu0 %v415_v5  ;;  %2700 = vmatpush1.msra.mxu1 %v415_v5  ;;  %v402_v19 = vld [vmem:[%s5357_s2 + $0x68] sm:$0xff]  ;;  %v401_v20 = vld [vmem:[%s5357_s2 + $0x60] sm:$0xff]  ;;  %v400_v21 = vld [vmem:[%s5357_s2 + $0x58] sm:$0xff] }
  0x28   : > { %439 = vmatprep.subr.mxu0 %v414_v6  ;;  %2685 = vmatprep.subr.mxu1 %v414_v6  ;;  %v399_v22 = vld [vmem:[%s5357_s2 + $0x50] sm:$0xff]  ;;  %v398_v23 = vld [vmem:[%s5357_s2 + $0x48] sm:$0xff]  ;;  %v397_v24 = vld [vmem:[%s5357_s2 + $0x40] sm:$0xff]  ;;  %s754_s21 = ssub.f32 0.0, %s356_s28 }
  0x29   : > { %440 = vmatpush1.msra.mxu0 %v413_v7  ;;  %2701 = vmatpush1.msra.mxu1 %v413_v7  ;;  %v396_v25 = vld [vmem:[%s5357_s2 + $0x38] sm:$0xff]  ;;  %v395_v26 = vld [vmem:[%s5357_s2 + $0x30] sm:$0xff]  ;;  %v394_v27 = vld [vmem:[%s5357_s2 + $0x28] sm:$0xff] }
  0x2a   : > { %441 = vmatprep.subr.mxu0 %v412_v9  ;;  %2686 = vmatprep.subr.mxu1 %v412_v9  ;;  %v393_v28 = vld [vmem:[%s5357_s2 + $0x20] sm:$0xff]  ;;  %v392_v29 = vld [vmem:[%s5357_s2 + $0x18] sm:$0xff]  ;;  %v391_v30 = vld [vmem:[%s5357_s2 + $0x10] sm:$0xff] }
  0x2b   : > { %442 = vmatpush1.msra.mxu0 %v411_v10  ;;  %2702 = vmatpush1.msra.mxu1 %v411_v10  ;;  %v390_v31 = vld [vmem:[%s5357_s2 + $0x8] sm:$0xff]  ;;  %v389_v32 = vld [vmem:[%s5357_s2] sm:$0xff]  ;;  %v1299_v35 = vld [vmem:[%s5359_s4 + $0xf8] sm:$0xff]  ;;  %s5173_s2 = scalar_lea.sflag [#allocation7], %s2478_s14 }
  0x2c   : > { %443 = vmatprep.subr.mxu0 %v410_v11  ;;  %2687 = vmatprep.subr.mxu1 %v410_v11  ;;  %v357_v33 = vld [vmem:[%s3623_s26] sm:$0xff]  ;;  %v1298_v36 = vld [vmem:[%s5359_s4 + $0xf0] sm:$0xff]  ;;  %v358_v37 = vld [vmem:[%s3623_s26 + $0x8] sm:$0xff] }
  0x2d   : > { %444 = vmatpush1.msra.mxu0 %v409_v12  ;;  %2703 = vmatpush1.msra.mxu1 %v409_v12  ;;  %v373_v34 = vld [vmem:[%s3623_s26 + $0x80] sm:$0xff]  ;;  %v1297_v38 = vld [vmem:[%s5359_s4 + $0xe8] sm:$0xff]  ;;  %v1295_v41 = vld [vmem:[%s5359_s4 + $0xd8] sm:$0xff] }
  0x2e   : > { %445 = vmatprep.subr.mxu0 %v408_v13  ;;  %2688 = vmatprep.subr.mxu1 %v408_v13  ;;  %v1296_v39 = vld [vmem:[%s5359_s4 + $0xe0] sm:$0xff]  ;;  %v374_v40 = vld [vmem:[%s3623_s26 + $0x88] sm:$0xff]  ;;  %v1294_v42 = vld [vmem:[%s5359_s4 + $0xd0] sm:$0xff] }
  0x2f   : > { %446 = vmatpush1.msra.mxu0 %v407_v14  ;;  %2704 = vmatpush1.msra.mxu1 %v407_v14  ;;  %v359_v43 = vld [vmem:[%s3623_s26 + $0x10] sm:$0xff]  ;;  %v1293_v44 = vld [vmem:[%s5359_s4 + $0xc8] sm:$0xff]  ;;  %v1292_v45 = vld [vmem:[%s5359_s4 + $0xc0] sm:$0xff] }
  0x30   : > { %447 = vmatprep.subr.mxu0 %v406_v15  ;;  %2689 = vmatprep.subr.mxu1 %v406_v15  ;;  %v375_v46 = vld [vmem:[%s3623_s26 + $0x90] sm:$0xff]  ;;  %v1291_v47 = vld [vmem:[%s5359_s4 + $0xb8] sm:$0xff]  ;;  %v1289_v50 = vld [vmem:[%s5359_s4 + $0xa8] sm:$0xff] }
  0x31   : > { %448 = vmatpush1.msra.mxu0 %v405_v16  ;;  %2705 = vmatpush1.msra.mxu1 %v405_v16  ;;  %v1290_v48 = vld [vmem:[%s5359_s4 + $0xb0] sm:$0xff]  ;;  %v360_v49 = vld [vmem:[%s3623_s26 + $0x18] sm:$0xff]  ;;  %v1288_v51 = vld [vmem:[%s5359_s4 + $0xa0] sm:$0xff] }
  0x32   : > { %449 = vmatprep.subr.mxu0 %v404_v17  ;;  %2690 = vmatprep.subr.mxu1 %v404_v17  ;;  %v376_v52 = vld [vmem:[%s3623_s26 + $0x98] sm:$0xff]  ;;  %v1286_v54 = vld [vmem:[%s5359_s4 + $0x90] sm:$0xff]  ;;  %v361_v55 = vld [vmem:[%s3623_s26 + $0x20] sm:$0xff] }
  0x33   : > { %450 = vmatpush1.msra.mxu0 %v403_v18  ;;  %2706 = vmatpush1.msra.mxu1 %v403_v18  ;;  %v1287_v53 = vld [vmem:[%s5359_s4 + $0x98] sm:$0xff]  ;;  %v1285_v56 = vld [vmem:[%s5359_s4 + $0x88] sm:$0xff]  ;;  %v1284_v57 = vld [vmem:[%s5359_s4 + $0x80] sm:$0xff] }
  0x34   : > { %451 = vmatprep.subr.mxu0 %v402_v19  ;;  %2691 = vmatprep.subr.mxu1 %v402_v19  ;;  %v377_v58 = vld [vmem:[%s3623_s26 + $0xa0] sm:$0xff]  ;;  %v1283_v59 = vld [vmem:[%s5359_s4 + $0x78] sm:$0xff]  ;;  %v1282_v60 = vld [vmem:[%s5359_s4 + $0x70] sm:$0xff] }
  0x35   : > { %452 = vmatpush1.msra.mxu0 %v401_v20  ;;  %2707 = vmatpush1.msra.mxu1 %v401_v20  ;;  %v362_v61 = vld [vmem:[%s3623_s26 + $0x28] sm:$0xff]  ;;  %v1280_v63 = vld [vmem:[%s5359_s4 + $0x60] sm:$0xff]  ;;  %v1279_v1 = vld [vmem:[%s5359_s4 + $0x58] sm:$0xff] }
  0x36   : > { %453 = vmatprep.subr.mxu0 %v400_v21  ;;  %2692 = vmatprep.subr.mxu1 %v400_v21  ;;  %v1281_v62 = vld [vmem:[%s5359_s4 + $0x68] sm:$0xff]  ;;  %v363_v2 = vld [vmem:[%s3623_s26 + $0x30] sm:$0xff]  ;;  %v364_v4 = vld [vmem:[%s3623_s26 + $0x38] sm:$0xff] }
  0x37   : > { %454 = vmatpush1.msra.mxu0 %v399_v22  ;;  %2708 = vmatpush1.msra.mxu1 %v399_v22  ;;  %v378_v0 = vld [vmem:[%s3623_s26 + $0xa8] sm:$0xff]  ;;  %v379_v3 = vld [vmem:[%s3623_s26 + $0xb0] sm:$0xff]  ;;  %v380_v5 = vld [vmem:[%s3623_s26 + $0xb8] sm:$0xff] }
  0x38   : > { %455 = vmatprep.subr.mxu0 %v398_v23  ;;  %2693 = vmatprep.subr.mxu1 %v398_v23  ;;  %v365_v6 = vld [vmem:[%s3623_s26 + $0x40] sm:$0xff]  ;;  %v366_v9 = vld [vmem:[%s3623_s26 + $0x48] sm:$0xff]  ;;  %v367_v11 = vld [vmem:[%s3623_s26 + $0x50] sm:$0xff] }
  0x39   : > { %456 = vmatpush1.msra.mxu0 %v397_v24  ;;  %2709 = vmatpush1.msra.mxu1 %v397_v24  ;;  %v381_v7 = vld [vmem:[%s3623_s26 + $0xc0] sm:$0xff]  ;;  %v382_v10 = vld [vmem:[%s3623_s26 + $0xc8] sm:$0xff]  ;;  %v383_v12 = vld [vmem:[%s3623_s26 + $0xd0] sm:$0xff] }
  0x3a   : > { %457 = vmatprep.subr.mxu0 %v396_v25  ;;  %2694 = vmatprep.subr.mxu1 %v396_v25  ;;  %v368_v13 = vld [vmem:[%s3623_s26 + $0x58] sm:$0xff]  ;;  %v369_v15 = vld [vmem:[%s3623_s26 + $0x60] sm:$0xff]  ;;  %v370_v17 = vld [vmem:[%s3623_s26 + $0x68] sm:$0xff] }
  0x3b   : > { %458 = vmatpush1.msra.mxu0 %v395_v26  ;;  %2710 = vmatpush1.msra.mxu1 %v395_v26  ;;  %v384_v14 = vld [vmem:[%s3623_s26 + $0xd8] sm:$0xff]  ;;  %v385_v16 = vld [vmem:[%s3623_s26 + $0xe0] sm:$0xff]  ;;  %v386_v18 = vld [vmem:[%s3623_s26 + $0xe8] sm:$0xff] }
  0x3c   : > { %459 = vmatprep.subr.mxu0 %v394_v27  ;;  %2695 = vmatprep.subr.mxu1 %v394_v27  ;;  %v371_v19 = vld [vmem:[%s3623_s26 + $0x70] sm:$0xff]  ;;  %v372_v21 = vld [vmem:[%s3623_s26 + $0x78] sm:$0xff]  ;;  %v1277_v24 = vld [vmem:[%s5359_s4 + $0x48] sm:$0xff] }
  0x3d   : > { %460 = vmatpush1.msra.mxu0 %v393_v28  ;;  %2711 = vmatpush1.msra.mxu1 %v393_v28  ;;  %v387_v20 = vld [vmem:[%s3623_s26 + $0xf0] sm:$0xff]  ;;  %v388_v22 = vld [vmem:[%s3623_s26 + $0xf8] sm:$0xff]  ;;  %v1276_v25 = vld [vmem:[%s5359_s4 + $0x40] sm:$0xff]  ;;  %s2515_s26 = sshll.u32 %s4627_s11, 4  ;;  %s5166_s26 = int_to_ptr.vmem [resolvable:$true] %s2515_s26 }
  0x3e   : > { %461 = vmatprep.subr.mxu0 %v392_v29  ;;  %2696 = vmatprep.subr.mxu1 %v392_v29  ;;  %v1278_v23 = vld [vmem:[%s5359_s4 + $0x50] sm:$0xff]  ;;  %v1275_v26 = vld [vmem:[%s5359_s4 + $0x38] sm:$0xff]  ;;  %v1273_v28 = vld [vmem:[%s5359_s4 + $0x28] sm:$0xff] }
  0x3f   : > { %462 = vmatpush1.msra.mxu0 %v391_v30  ;;  %2712 = vmatpush1.msra.mxu1 %v391_v30  ;;  %v1274_v27 = vld [vmem:[%s5359_s4 + $0x30] sm:$0xff]  ;;  %v1272_v29 = vld [vmem:[%s5359_s4 + $0x20] sm:$0xff]  ;;  %v1271_v30 = vld [vmem:[%s5359_s4 + $0x18] sm:$0xff] }
  0x40   : > { %463 = vmatprep.subr.mxu0 %v390_v31  ;;  %2697 = vmatprep.subr.mxu1 %v390_v31  ;;  %v1270_v31 = vld [vmem:[%s5359_s4 + $0x10] sm:$0xff] }
  0x41   : > { %464 = vmatpush1.msra.mxu0 %v389_v32  ;;  %2713 = vmatpush1.msra.mxu1 %v389_v32  ;;  %v1269_v32 = vld [vmem:[%s5359_s4 + $0x8] sm:$0xff] }
  0x42   : > { %498 = vmatmul.mubr.f32.vlgmr.msra.gmra.mxu0 %v357_v33  ;;  %594 = vmatmul.mubr.f32.vlgmr.msra.gmra.mxu1 %v373_v34  ;;  %v1268_v33 = vld [vmem:[%s5359_s4] sm:$0xff]  ;;  %v1331_v34 = vld [vmem:[%s5359_s4 + $0x1f8] sm:$0xff] }
  0x43   : > { %503 = vmatprep.mubr.f32.mxu0 %v5340_v8  ;;  %1344 = vmatprep.subr.mxu1 %v1299_v35  ;;  %v1330_v35 = vld [vmem:[%s5359_s4 + $0x1f0] sm:$0xff] }
  0x44   : > { %599 = vmatprep.mubr.f32.mxu1 %v5340_v8  ;;  %1345 = vmatpush1.msra.mxu1 %v1298_v36  ;;  %v1329_v36 = vld [vmem:[%s5359_s4 + $0x1e8] sm:$0xff] }
  0x45   : > { %1346 = vmatprep.subr.mxu1 %v1297_v38  ;;  %2216 = vmatprep.subr.mxu0 %v5340_v8  ;;  %v1327_v38 = vld [vmem:[%s5359_s4 + $0x1d8] sm:$0xff] }
  0x46   : > { %504 = vmatmul.mubr.f32.gmra.mxu0 %v358_v37  ;;  %1347 = vmatpush1.msra.mxu1 %v1296_v39  ;;  %v1328_v37 = vld [vmem:[%s5359_s4 + $0x1e0] sm:$0xff]  ;;  %v1326_v39 = vld [vmem:[%s5359_s4 + $0x1d0] sm:$0xff] }
  0x47   : > { %509 = vmatprep.mubr.f32.mxu0 %v5340_v8  ;;  %600 = vmatmul.mubr.f32.gmra.mxu1 %v374_v40  ;;  %v1325_v40 = vld [vmem:[%s5359_s4 + $0x1c8] sm:$0xff] }
  0x48   : > { %1348 = vmatprep.subr.mxu1 %v1295_v41  ;;  %605 = vmatprep.mubr.f32.mxu1 %v5340_v8  ;;  %v1324_v41 = vld [vmem:[%s5359_s4 + $0x1c0] sm:$0xff] }
  0x49   : > { %1349 = vmatpush1.msra.mxu1 %v1294_v42  ;;  %v1323_v42 = vld [vmem:[%s5359_s4 + $0x1b8] sm:$0xff] }
  0x4a   : > { %510 = vmatmul.mubr.f32.gmra.mxu0 %v359_v43  ;;  %1350 = vmatprep.subr.mxu1 %v1293_v44  ;;  %v1322_v43 = vld [vmem:[%s5359_s4 + $0x1b0] sm:$0xff]  ;;  %v1321_v44 = vld [vmem:[%s5359_s4 + $0x1a8] sm:$0xff] }
  0x4b   : > { %515 = vmatprep.mubr.f32.mxu0 %v5340_v8  ;;  %1351 = vmatpush1.msra.mxu1 %v1292_v45  ;;  %v1320_v45 = vld [vmem:[%s5359_s4 + $0x1a0] sm:$0xff] }
  0x4c   : > { %606 = vmatmul.mubr.f32.gmra.mxu1 %v375_v46  ;;  %1352 = vmatprep.subr.mxu1 %v1291_v47  ;;  %v1319_v46 = vld [vmem:[%s5359_s4 + $0x198] sm:$0xff]  ;;  %v1318_v47 = vld [vmem:[%s5359_s4 + $0x190] sm:$0xff] }
  0x4d   : > { %611 = vmatprep.mubr.f32.mxu1 %v5340_v8  ;;  %1353 = vmatpush1.msra.mxu1 %v1290_v48  ;;  %v1317_v48 = vld [vmem:[%s5359_s4 + $0x188] sm:$0xff] }
  0x4e   : > { %516 = vmatmul.mubr.f32.gmra.mxu0 %v360_v49  ;;  %1354 = vmatprep.subr.mxu1 %v1289_v50  ;;  %v1316_v49 = vld [vmem:[%s5359_s4 + $0x180] sm:$0xff]  ;;  %v1315_v50 = vld [vmem:[%s5359_s4 + $0x178] sm:$0xff] }
  0x4f   : > { %521 = vmatprep.mubr.f32.mxu0 %v5340_v8  ;;  %1355 = vmatpush1.msra.mxu1 %v1288_v51  ;;  %v1314_v51 = vld [vmem:[%s5359_s4 + $0x170] sm:$0xff] }
  0x50   : > { %612 = vmatmul.mubr.f32.gmra.mxu1 %v376_v52  ;;  %1356 = vmatprep.subr.mxu1 %v1287_v53  ;;  %v1313_v52 = vld [vmem:[%s5359_s4 + $0x168] sm:$0xff]  ;;  %v1312_v53 = vld [vmem:[%s5359_s4 + $0x160] sm:$0xff] }
  0x51   : > { %617 = vmatprep.mubr.f32.mxu1 %v5340_v8  ;;  %1357 = vmatpush1.msra.mxu1 %v1286_v54  ;;  %v1311_v54 = vld [vmem:[%s5359_s4 + $0x158] sm:$0xff] }
  0x52   : > { %522 = vmatmul.mubr.f32.gmra.mxu0 %v361_v55  ;;  %1358 = vmatprep.subr.mxu1 %v1285_v56  ;;  %v1310_v55 = vld [vmem:[%s5359_s4 + $0x150] sm:$0xff]  ;;  %v1309_v56 = vld [vmem:[%s5359_s4 + $0x148] sm:$0xff] }
  0x53   : > { %527 = vmatprep.mubr.f32.mxu0 %v5340_v8  ;;  %1359 = vmatpush1.msra.mxu1 %v1284_v57  ;;  %v1308_v57 = vld [vmem:[%s5359_s4 + $0x140] sm:$0xff] }
  0x54   : > { %618 = vmatmul.mubr.f32.gmra.mxu1 %v377_v58  ;;  %1360 = vmatprep.subr.mxu1 %v1283_v59  ;;  %v1307_v58 = vld [vmem:[%s5359_s4 + $0x138] sm:$0xff]  ;;  %v1306_v59 = vld [vmem:[%s5359_s4 + $0x130] sm:$0xff] }
  0x55   : > { %623 = vmatprep.mubr.f32.mxu1 %v5340_v8  ;;  %1361 = vmatpush1.msra.mxu1 %v1282_v60  ;;  %v1305_v60 = vld [vmem:[%s5359_s4 + $0x128] sm:$0xff] }
  0x56   : > { %528 = vmatmul.mubr.f32.gmra.mxu0 %v362_v61  ;;  %1362 = vmatprep.subr.mxu1 %v1281_v62  ;;  %v1304_v61 = vld [vmem:[%s5359_s4 + $0x120] sm:$0xff]  ;;  %v1303_v62 = vld [vmem:[%s5359_s4 + $0x118] sm:$0xff] }
  0x57   : > { %533 = vmatprep.mubr.f32.mxu0 %v5340_v8  ;;  %1363 = vmatpush1.msra.mxu1 %v1280_v63  ;;  %v1302_v63 = vld [vmem:[%s5359_s4 + $0x110] sm:$0xff] }
  0x58   : > { %624 = vmatmul.mubr.f32.gmra.mxu1 %v378_v0  ;;  %1364 = vmatprep.subr.mxu1 %v1279_v1  ;;  %v1301_v0 = vld [vmem:[%s5359_s4 + $0x108] sm:$0xff]  ;;  %v1300_v1 = vld [vmem:[%s5359_s4 + $0x100] sm:$0xff] }
  0x59   : > { %629 = vmatprep.mubr.f32.mxu1 %v5340_v8  ;;  %1365 = vmatpush1.msra.mxu1 %v1278_v23 }
  0x5a   : > { %534 = vmatmul.mubr.f32.gmra.mxu0 %v363_v2  ;;  %1366 = vmatprep.subr.mxu1 %v1277_v24  ;;  %v423_v2 = vlaneseq }
  0x5b   : > { %539 = vmatprep.mubr.f32.mxu0 %v5340_v8  ;;  %1367 = vmatpush1.msra.mxu1 %v1276_v25 }
  0x5c   : > { %630 = vmatmul.mubr.f32.gmra.mxu1 %v379_v3  ;;  %1368 = vmatprep.subr.mxu1 %v1275_v26  ;;  %v3887_v3 = vshrl.u32 %v423_v2, 7 }
  0x5d   : > { %635 = vmatprep.mubr.f32.mxu1 %v5340_v8  ;;  %1369 = vmatpush1.msra.mxu1 %v1274_v27 }
  0x5e   : > { %540 = vmatmul.mubr.f32.gmra.mxu0 %v364_v4  ;;  %1370 = vmatprep.subr.mxu1 %v1273_v28  ;;  %5360 = vst [vmem:[#allocation11_spill] sm:$0xff] %v3887_v3  ;;  %v5339_v4 = vsub.s32 0, %v3887_v3 }
  0x5f   : > { %545 = vmatprep.mubr.f32.mxu0 %v5340_v8  ;;  %1371 = vmatpush1.msra.mxu1 %v1272_v29 }
  0x60   : > { %636 = vmatmul.mubr.f32.gmra.mxu1 %v380_v5  ;;  %1372 = vmatprep.subr.mxu1 %v1271_v30  ;;  %v421_v5 = vld [vmem:[%s5361_s3] sm:$0x3]  ;;  %s3294_s3 = scalar_lea.vmem %s5166_s26, 8192 }
  0x61   : > { %641 = vmatprep.mubr.f32.mxu1 %v5340_v8  ;;  %1373 = vmatpush1.msra.mxu1 %v1270_v31  ;;  %p3295_p11 = scmp.ne.s32.totalorder %s5166_s26, %s3294_s3 }
  0x62   : > { %546 = vmatmul.mubr.f32.gmra.mxu0 %v365_v6  ;;  %1374 = vmatprep.subr.mxu1 %v1269_v32  ;;  %v5338_v6 = vsub.s32 1, %v3887_v3 }
  0x63   : > { %551 = vmatprep.mubr.f32.mxu0 %v5340_v8  ;;  %1375 = vmatpush1.msra.mxu1 %v1268_v33  ;;  %p3296_p12 = pnand %p3295_p11, %p3518_p5 }
  0x64   : > { %642 = vmatmul.mubr.f32.gmra.mxu1 %v381_v7  ;;  %1376 = vmatprep.subr.mxu1 %v1331_v34  ;;  %v3900_v7 = vrot.slane %v421_v5, %v5339_v4 }
  0x65   : > { %647 = vmatprep.mubr.f32.mxu1 %v5340_v8  ;;  %1377 = vmatpush2.msra.mxu1 %v1330_v35  ;;  %p3297_p13 = pneg %p3296_p12 }
  0x66   : > { %552 = vmatmul.mubr.f32.gmra.mxu0 %v366_v9  ;;  %1378 = vmatprep.subr.mxu1 %v1329_v36  ;;  %v3904_v9 = vrot.slane %v421_v5, %v5338_v6 }
  0x67   : > { %557 = vmatprep.mubr.f32.mxu0 %v5340_v8  ;;  %1379 = vmatpush2.msra.mxu1 %v1328_v37 }
  0x68   : > { %648 = vmatmul.mubr.f32.gmra.mxu1 %v382_v10  ;;  %1380 = vmatprep.subr.mxu1 %v1327_v38 }
  0x69   : > { %653 = vmatprep.mubr.f32.mxu1 %v5340_v8  ;;  %1381 = vmatpush2.msra.mxu1 %v1326_v39 }
  0x6a   : > { %558 = vmatmul.mubr.f32.gmra.mxu0 %v367_v11  ;;  %1382 = vmatprep.subr.mxu1 %v1325_v40  ;;  %v3906_v11 = vstv %s754_s21  ;;  %s2678_s21 = sshll.u32 %s3499_s0, 13 }
  0x6b   : > { %563 = vmatprep.mubr.f32.mxu0 %v5340_v8  ;;  %1383 = vmatpush2.msra.mxu1 %v1324_v41  ;;  %s5162_s22 = scalar_lea.hbm %s5336_s9, %s2678_s21  ;;  %s5171_s1 = scalar_lea.hbm %s5335_s8, %s2678_s21 }
  0x6c   : > { %654 = vmatmul.mubr.f32.gmra.mxu1 %v383_v12  ;;  %1384 = vmatprep.subr.mxu1 %v1323_v42 }
  0x6d   : > { %659 = vmatprep.mubr.f32.mxu1 %v5340_v8  ;;  %1385 = vmatpush2.msra.mxu1 %v1322_v43 }
  0x6e   : > { %564 = vmatmul.mubr.f32.gmra.mxu0 %v368_v13  ;;  %1386 = vmatprep.subr.mxu1 %v1321_v44 }
  0x6f   : > { %569 = vmatprep.mubr.f32.mxu0 %v5340_v8  ;;  %1387 = vmatpush2.msra.mxu1 %v1320_v45 }
  0x70   : > { %660 = vmatmul.mubr.f32.gmra.mxu1 %v384_v14  ;;  %1388 = vmatprep.subr.mxu1 %v1319_v46 }
  0x71   : > { %665 = vmatprep.mubr.f32.mxu1 %v5340_v8  ;;  %1389 = vmatpush2.msra.mxu1 %v1318_v47 }
  0x72   : > { %570 = vmatmul.mubr.f32.gmra.mxu0 %v369_v15  ;;  %1390 = vmatprep.subr.mxu1 %v1317_v48 }
  0x73   : > { %575 = vmatprep.mubr.f32.mxu0 %v5340_v8  ;;  %1391 = vmatpush2.msra.mxu1 %v1316_v49 }
  0x74   : > { %666 = vmatmul.mubr.f32.gmra.mxu1 %v385_v16  ;;  %1392 = vmatprep.subr.mxu1 %v1315_v50 }
  0x75   : > { %671 = vmatprep.mubr.f32.mxu1 %v5340_v8  ;;  %1393 = vmatpush2.msra.mxu1 %v1314_v51 }
  0x76   : > { %576 = vmatmul.mubr.f32.gmra.mxu0 %v370_v17  ;;  %1394 = vmatprep.subr.mxu1 %v1313_v52 }
  0x77   : > { %581 = vmatprep.mubr.f32.mxu0 %v5340_v8  ;;  %1395 = vmatpush2.msra.mxu1 %v1312_v53 }
  0x78   : > { %672 = vmatmul.mubr.f32.gmra.mxu1 %v386_v18  ;;  %1396 = vmatprep.subr.mxu1 %v1311_v54 }
  0x79   : > { %677 = vmatprep.mubr.f32.mxu1 %v5340_v8  ;;  %1397 = vmatpush2.msra.mxu1 %v1310_v55 }
  0x7a   : > { %582 = vmatmul.mubr.f32.gmra.mxu0 %v371_v19  ;;  %1398 = vmatprep.subr.mxu1 %v1309_v56 }
  0x7b   : > { %587 = vmatprep.mubr.f32.mxu0 %v5340_v8  ;;  %1399 = vmatpush2.msra.mxu1 %v1308_v57 }
  0x7c   : > { %678 = vmatmul.mubr.f32.gmra.mxu1 %v387_v20  ;;  %1400 = vmatprep.subr.mxu1 %v1307_v58 }
  0x7d   : > { %683 = vmatprep.mubr.f32.mxu1 %v5340_v8  ;;  %1401 = vmatpush2.msra.mxu1 %v1306_v59 }
  0x7e   : > { %588 = vmatmul.mubr.f32.gmra.mxu0 %v372_v21  ;;  %1402 = vmatprep.subr.mxu1 %v1305_v60 }
  0x7f   : > { %1403 = vmatpush2.msra.mxu1 %v1304_v61 }
  0x80   : > { %684 = vmatmul.mubr.f32.gmra.mxu1 %v388_v22  ;;  %1404 = vmatprep.subr.mxu1 %v1303_v62 }
  0x81   : > { %1405 = vmatpush2.msra.mxu1 %v1302_v63 }
  0x82   : > { %1406 = vmatprep.subr.mxu1 %v1301_v0 }
  0x83   : > { %1407 = vmatpush2.msra.mxu1 %v1300_v1 }
 0x102   : > { %v499_v10 = vpop.f32.mrf.mxu0  ;;  %v595_v14 = vpop.f32.mrf.mxu1 }
 0x103   : > { %v3909_v12 = vadd.f32 %v499_v10, %v3900_v7  ;;  %v3923_v17 = vadd.f32 %v595_v14, %v3900_v7 }
 0x104   : > { %v501_v13 = vpop.f32.mrf.mxu0  ;;  %v597_v19 = vpop.f32.mrf.mxu1 }
 0x105   : > { %690 = vst [vmem:[%s3913_s27] sm:$0xff] %v3909_v12  ;;  %v756_v15 = vmul.f32 %v3906_v11, %v3909_v12  ;;  %v3920_v16 = vadd.f32 %v501_v13, %v3904_v9  ;;  %722 = vst [vmem:[%s3913_s27 + $0x100] sm:$0xff] %v3923_v17  ;;  %v3935_v24 = vadd.f32 %v597_v19, %v3904_v9 }
 0x106   : > { %v505_v18 = vpop.f32.mrf.mxu0 }
 0x107   : > { %v820_v20 = vmul.f32 1.442695, %v756_v15  ;;  %691 = vst [vmem:[%s3913_s27 + $0x8] sm:$0xff] %v3920_v16  ;;  %v757_v21 = vmul.f32 %v3906_v11, %v3920_v16  ;;  %v3930_v22 = vadd.f32 %v505_v18, %v3900_v7  ;;  %v601_v25 = vpop.f32.mrf.mxu1  ;;  %723 = vst [vmem:[%s3913_s27 + $0x108] sm:$0xff] %v3935_v24 }
 0x108   : > { %v507_v23 = vpop.f32.mrf.mxu0  ;;  %v3947_v30 = vadd.f32 %v601_v25, %v3900_v7 }
 0x109   : > { %2768 = vpow2.f32 %v820_v20  ;;  %v822_v26 = vmul.f32 1.442695, %v757_v21  ;;  %692 = vst [vmem:[%s3913_s27 + $0x10] sm:$0xff] %v3930_v22  ;;  %v758_v27 = vmul.f32 %v3906_v11, %v3930_v22  ;;  %v3942_v28 = vadd.f32 %v507_v23, %v3904_v9  ;;  %v603_v31 = vpop.f32.mrf.mxu1 }
 0x10a   : > { %v511_v29 = vpop.f32.mrf.mxu0  ;;  %724 = vst [vmem:[%s3913_s27 + $0x110] sm:$0xff] %v3947_v30  ;;  %v3959_v36 = vadd.f32 %v603_v31, %v3904_v9 }
 0x10b   : > { %2770 = vpow2.f32 %v822_v26  ;;  %v824_v32 = vmul.f32 1.442695, %v758_v27  ;;  %693 = vst [vmem:[%s3913_s27 + $0x18] sm:$0xff] %v3942_v28  ;;  %v759_v33 = vmul.f32 %v3906_v11, %v3942_v28  ;;  %v3954_v34 = vadd.f32 %v511_v29, %v3900_v7 }
 0x10c   : > { %v513_v35 = vpop.f32.mrf.mxu0  ;;  %v607_v37 = vpop.f32.mrf.mxu1  ;;  %725 = vst [vmem:[%s3913_s27 + $0x118] sm:$0xff] %v3959_v36 }
 0x10d   : > { %2772 = vpow2.f32 %v824_v32  ;;  %v826_v38 = vmul.f32 1.442695, %v759_v33  ;;  %694 = vst [vmem:[%s3913_s27 + $0x20] sm:$0xff] %v3954_v34  ;;  %v760_v39 = vmul.f32 %v3906_v11, %v3954_v34  ;;  %v3966_v40 = vadd.f32 %v513_v35, %v3904_v9 }
 0x10e   : > { %v517_v41 = vpop.f32.mrf.mxu0  ;;  %v3971_v42 = vadd.f32 %v607_v37, %v3900_v7  ;;  %v609_v43 = vpop.f32.mrf.mxu1 }
 0x10f   : > { %2774 = vpow2.f32 %v826_v38  ;;  %v828_v44 = vmul.f32 1.442695, %v760_v39  ;;  %695 = vst [vmem:[%s3913_s27 + $0x28] sm:$0xff] %v3966_v40  ;;  %v761_v45 = vmul.f32 %v3906_v11, %v3966_v40  ;;  %v3978_v46 = vadd.f32 %v517_v41, %v3900_v7 }
 0x110   : > { %v519_v47 = vpop.f32.mrf.mxu0  ;;  %726 = vst [vmem:[%s3913_s27 + $0x120] sm:$0xff] %v3971_v42  ;;  %v3983_v48 = vadd.f32 %v609_v43, %v3904_v9  ;;  %v613_v49 = vpop.f32.mrf.mxu1 }
 0x111   : > { %2776 = vpow2.f32 %v828_v44  ;;  %v830_v50 = vmul.f32 1.442695, %v761_v45  ;;  %696 = vst [vmem:[%s3913_s27 + $0x30] sm:$0xff] %v3978_v46  ;;  %v762_v51 = vmul.f32 %v3906_v11, %v3978_v46  ;;  %v3990_v52 = vadd.f32 %v519_v47, %v3904_v9 }
 0x112   : > { %v523_v53 = vpop.f32.mrf.mxu0  ;;  %727 = vst [vmem:[%s3913_s27 + $0x128] sm:$0xff] %v3983_v48  ;;  %v3995_v54 = vadd.f32 %v613_v49, %v3900_v7  ;;  %v615_v55 = vpop.f32.mrf.mxu1 }
 0x113   : > { %2778 = vpow2.f32 %v830_v50  ;;  %697 = vst [vmem:[%s3913_s27 + $0x38] sm:$0xff] %v3990_v52  ;;  %v763_v56 = vmul.f32 %v3906_v11, %v3990_v52  ;;  %v4002_v57 = vadd.f32 %v523_v53, %v3900_v7  ;;  %v832_v58 = vmul.f32 1.442695, %v762_v51 }
 0x114   : > { %v525_v59 = vpop.f32.mrf.mxu0  ;;  %728 = vst [vmem:[%s3913_s27 + $0x130] sm:$0xff] %v3995_v54  ;;  %v4007_v60 = vadd.f32 %v615_v55, %v3904_v9  ;;  %v619_v61 = vpop.f32.mrf.mxu1 }
 0x115   : > { %v834_v62 = vmul.f32 1.442695, %v763_v56  ;;  %698 = vst [vmem:[%s3913_s27 + $0x40] sm:$0xff] %v4002_v57  ;;  %v4012_v63 = vadd.f32 %v525_v59, %v3904_v9  ;;  %v764_v1 = vmul.f32 %v3906_v11, %v4002_v57  ;;  %v4019_v5 = vadd.f32 %v619_v61, %v3900_v7 }
 0x116   : > { %v2769_v0 = vpop.eup %2768  ;;  %v529_v2 = vpop.f32.mrf.mxu0  ;;  %729 = vst [vmem:[%s3913_s27 + $0x138] sm:$0xff] %v4007_v60 }
 0x117   : > { %v621_v10 = vpop.f32.mrf.mxu1  ;;  %v948_v13 = vadd.f32 1.0, %v2769_v0  ;;  %2780 = vpow2.f32 %v834_v62  ;;  %699 = vst [vmem:[%s3913_s27 + $0x48] sm:$0xff] %v4012_v63  ;;  %v765_v14 = vmul.f32 %v3906_v11, %v4012_v63  ;;  %v4026_v18 = vadd.f32 %v529_v2, %v3900_v7  ;;  %730 = vst [vmem:[%s3913_s27 + $0x140] sm:$0xff] %v4019_v5 }
 0x118   : > { %v2771_v15 = vpop.eup %2770  ;;  %2782 = vpow2.f32 %v832_v58  ;;  %v531_v19 = vpop.f32.mrf.mxu0  ;;  %v836_v27 = vmul.f32 1.442695, %v764_v1  ;;  %v4047_v41 = vadd.f32 %v621_v10, %v3904_v9 }
 0x119   : > { %v625_v20 = vpop.f32.mrf.mxu1  ;;  %2784 = vrcp.f32 %v948_v13  ;;  %v949_v21 = vadd.f32 1.0, %v2771_v15  ;;  %v838_v23 = vmul.f32 1.442695, %v765_v14  ;;  %v4031_v25 = vadd.f32 %v531_v19, %v3904_v9  ;;  %700 = vst [vmem:[%s3913_s27 + $0x50] sm:$0xff] %v4026_v18 }
 0x11a   : > { %v2773_v26 = vpop.eup %2772  ;;  %v766_v29 = vmul.f32 %v3906_v11, %v4026_v18  ;;  %v535_v31 = vpop.f32.mrf.mxu0  ;;  %731 = vst [vmem:[%s3913_s27 + $0x148] sm:$0xff] %v4047_v41  ;;  %v4077_v15 = vadd.f32 %v625_v20, %v3900_v7 }
 0x11b   : > { %v4037_v32 = vpop.f32.mrf.mxu1  ;;  %2786 = vrcp.f32 %v949_v21  ;;  %v950_v33 = vadd.f32 1.0, %v2773_v26  ;;  %701 = vst [vmem:[%s3913_s27 + $0x58] sm:$0xff] %v4031_v25  ;;  %v767_v35 = vmul.f32 %v3906_v11, %v4031_v25  ;;  %v4044_v37 = vadd.f32 %v535_v31, %v3900_v7 }
 0x11c   : > { %v2775_v38 = vpop.eup %2774  ;;  %2788 = vpow2.f32 %v838_v23  ;;  %v537_v39 = vpop.f32.mrf.mxu0  ;;  %v840_v50 = vmul.f32 1.442695, %v766_v29  ;;  %732 = vst [vmem:[%s3913_s27 + $0x150] sm:$0xff] %v4077_v15 }
 0x11d   : > { %v4049_v43 = vpop.f32.mrf.mxu1  ;;  %2790 = vrcp.f32 %v950_v33  ;;  %v951_v44 = vadd.f32 1.0, %v2775_v38  ;;  %v842_v45 = vmul.f32 1.442695, %v767_v35  ;;  %702 = vst [vmem:[%s3913_s27 + $0x60] sm:$0xff] %v4044_v37  ;;  %v768_v47 = vmul.f32 %v3906_v11, %v4044_v37 }
 0x11e   : > { %v2777_v49 = vpop.eup %2776  ;;  %2792 = vpow2.f32 %v836_v27  ;;  %v4056_v51 = vadd.f32 %v537_v39, %v3904_v9  ;;  %v541_v53 = vpop.f32.mrf.mxu0 }
 0x11f   : > { %v4060_v55 = vpop.f32.mrf.mxu1  ;;  %2794 = vrcp.f32 %v951_v44  ;;  %v4063_v56 = vadd.f32 %v541_v53, %v3900_v7  ;;  %v952_v59 = vadd.f32 1.0, %v2777_v49  ;;  %v844_v2 = vmul.f32 1.442695, %v768_v47 }
 0x120   : > { %v2779_v58 = vpop.eup %2778  ;;  %2796 = vpow2.f32 %v842_v45  ;;  %703 = vst [vmem:[%s3913_s27 + $0x68] sm:$0xff] %v4056_v51  ;;  %v769_v61 = vmul.f32 %v3906_v11, %v4056_v51  ;;  %v543_v62 = vpop.f32.mrf.mxu0 }
 0x121   : > { %v4069_v0 = vpop.f32.mrf.mxu1  ;;  %v953_v1 = vadd.f32 1.0, %v2779_v58  ;;  %704 = vst [vmem:[%s3913_s27 + $0x70] sm:$0xff] %v4063_v56  ;;  %v4074_v10 = vadd.f32 %v543_v62, %v3904_v9  ;;  %2798 = vpow2.f32 %v840_v50  ;;  %v770_v21 = vmul.f32 %v3906_v11, %v4063_v56 }
 0x122   : > { %v846_v13 = vmul.f32 1.442695, %v769_v61  ;;  %v547_v14 = vpop.f32.mrf.mxu0 }
 0x123   : > { %v4079_v19 = vpop.f32.mrf.mxu1  ;;  %2800 = vrcp.f32 %v953_v1  ;;  %705 = vst [vmem:[%s3913_s27 + $0x78] sm:$0xff] %v4074_v10  ;;  %v771_v23 = vmul.f32 %v3906_v11, %v4074_v10  ;;  %v4088_v27 = vadd.f32 %v547_v14, %v3900_v7  ;;  %v848_v47 = vmul.f32 1.442695, %v770_v21 }
 0x124   : > { %v2781_v26 = vpop.eup %2780  ;;  %2802 = vrcp.f32 %v952_v59  ;;  %v549_v20 = vpop.f32.mrf.mxu0  ;;  %v4113_v1 = vadd.f32 %v4037_v32, %v3904_v9 }
 0x125   : > { %v4092_v29 = vpop.f32.mrf.mxu1  ;;  %v2783_v31 = vpop.eup %2782  ;;  %2804 = vpow2.f32 %v844_v2  ;;  %v850_v33 = vmul.f32 1.442695, %v771_v23  ;;  %v4095_v35 = vadd.f32 %v549_v20, %v3904_v9  ;;  %v955_v39 = vadd.f32 1.0, %v2781_v26  ;;  %706 = vst [vmem:[%s3913_s27 + $0x80] sm:$0xff] %v4088_v27 }
 0x126   : > { %v2785_v38 = vpop.eup %2784  ;;  %2806 = vpow2.f32 %v846_v13  ;;  %v553_v44 = vpop.f32.mrf.mxu0  ;;  %v772_v49 = vmul.f32 %v3906_v11, %v4088_v27  ;;  %v954_v59 = vadd.f32 1.0, %v2783_v31  ;;  %733 = vst [vmem:[%s3913_s27 + $0x158] sm:$0xff] %v4113_v1 }
 0x127   : > { %v4099_v45 = vpop.f32.mrf.mxu1  ;;  %707 = vst [vmem:[%s3913_s27 + $0x88] sm:$0xff] %v4095_v35  ;;  %v4106_v50 = vadd.f32 %v553_v44, %v3900_v7  ;;  %v1140_v58 = vmul.f32 %v2785_v38, %v3909_v12  ;;  %v773_v61 = vmul.f32 %v3906_v11, %v4095_v35  ;;  %2808 = vpow2.f32 %v850_v33 }
 0x128   : > { %v2787_v53 = vpop.eup %2786  ;;  %v555_v62 = vpop.f32.mrf.mxu0  ;;  %2810 = vrcp.f32 %v955_v39  ;;  %v852_v20 = vmul.f32 1.442695, %v772_v49 }
 0x129   : > { %v2789_v2 = vpop.eup %2788  ;;  %708 = vst [vmem:[%s3913_s27 + $0x90] sm:$0xff] %v4106_v50  ;;  %v4118_v14 = vadd.f32 %v555_v62, %v3904_v9  ;;  %v1141_v21 = vmul.f32 %v2787_v53, %v3920_v16  ;;  %v4123_v23 = vpop.f32.mrf.mxu1  ;;  %2812 = vpow2.f32 %v848_v47  ;;  %v1204_v38 = vmul.f32 0.90909094, %v1140_v58 }
 0x12a   : > { %v2791_v13 = vpop.eup %2790  ;;  %v559_v12 = vpop.f32.mrf.mxu0  ;;  %v957_v26 = vadd.f32 1.0, %v2789_v2  ;;  %2814 = vrcp.f32 %v954_v59  ;;  %v854_v39 = vmul.f32 1.442695, %v773_v61  ;;  %v774_v62 = vmul.f32 %v3906_v11, %v4106_v50 }
 0x12b   : > { %v2793_v32 = vpop.eup %2792  ;;  %v4126_v31 = vadd.f32 %v559_v12, %v3900_v7  ;;  %709 = vst [vmem:[%s3913_s27 + $0x98] sm:$0xff] %v4118_v14  ;;  %v1205_v44 = vmul.f32 0.90909094, %v1141_v21  ;;  %v1142_v58 = vmul.f32 %v2791_v13, %v3930_v22  ;;  %v4139_v2 = vpop.f32.mrf.mxu1  ;;  %v775_v22 = vmul.f32 %v3906_v11, %v4118_v14 }
 0x12c   : > { %v2795_v33 = vpop.eup %2794  ;;  %v561_v16 = vpop.f32.mrf.mxu0  ;;  %v956_v59 = vadd.f32 1.0, %v2793_v32  ;;  %2816 = vrcp.f32 %v957_v26 }
 0x12d   : > { %v2797_v53 = vpop.eup %2796  ;;  %710 = vst [vmem:[%s3913_s27 + $0xa0] sm:$0xff] %v4126_v31  ;;  %v4135_v47 = vadd.f32 %v561_v16, %v3904_v9  ;;  %v1143_v49 = vmul.f32 %v2795_v33, %v3942_v28  ;;  %1408 = vmatprep.mubr.f32.mxu1 %v1205_v44  ;;  %2818 = vpow2.f32 %v852_v20  ;;  %v856_v33 = vmul.f32 1.442695, %v774_v62 }
 0x12e   : > { %v565_v61 = vpop.f32.mrf.mxu0  ;;  %v2799_v12 = vpop.eup %2798  ;;  %1409 = vmatmul.mubr.f32.vlgmr.msra.gmra.mxu1 %v1204_v38  ;;  %v959_v6 = vadd.f32 1.0, %v2797_v53  ;;  %2820 = vpow2.f32 %v854_v39  ;;  %v1206_v44 = vmul.f32 0.90909094, %v1142_v58  ;;  %v776_v39 = vmul.f32 %v3906_v11, %v4126_v31 }
 0x12f   : > { %711 = vst [vmem:[%s3913_s27 + $0xa8] sm:$0xff] %v4135_v47  ;;  %v4144_v21 = vadd.f32 %v565_v61, %v3900_v7  ;;  %v1207_v13 = vmul.f32 0.90909094, %v1143_v49  ;;  %2822 = vrcp.f32 %v956_v59  ;;  %v4154_v53 = vpop.f32.mrf.mxu1  ;;  %v958_v4 = vadd.f32 1.0, %v2799_v12 }
 0x130   : > { %v2801_v16 = vpop.eup %2800  ;;  %v567_v28 = vpop.f32.mrf.mxu0  ;;  %2824 = vrcp.f32 %v959_v6  ;;  %v858_v58 = vmul.f32 1.442695, %v775_v22  ;;  %v777_v6 = vmul.f32 %v3906_v11, %v4135_v47 }
 0x131   : > { %v2803_v32 = vpop.eup %2802  ;;  %712 = vst [vmem:[%s3913_s27 + $0xb0] sm:$0xff] %v4144_v21  ;;  %v4151_v26 = vadd.f32 %v567_v28, %v3904_v9  ;;  %1414 = vmatprep.mubr.f32.mxu1 %v1207_v13  ;;  %v1145_v20 = vmul.f32 %v2801_v16, %v3966_v40  ;;  %v4165_v40 = vadd.f32 %v4049_v43, %v3900_v7  ;;  %2826 = vpow2.f32 %v856_v33 }
 0x132   : > { %v2805_v61 = vpop.eup %2804  ;;  %v571_v38 = vpop.f32.mrf.mxu0  ;;  %1415 = vmatmul.mubr.f32.gmra.mxu1 %v1206_v44  ;;  %v1144_v43 = vmul.f32 %v2803_v32, %v3954_v34  ;;  %v4179_v33 = vadd.f32 %v4060_v55, %v3904_v9  ;;  %2828 = vrcp.f32 %v958_v4 }
 0x133   : > { %v2807_v49 = vpop.eup %2806  ;;  %713 = vst [vmem:[%s3913_s27 + $0xb8] sm:$0xff] %v4151_v26  ;;  %v4161_v62 = vadd.f32 %v571_v38, %v3900_v7  ;;  %v1209_v28 = vmul.f32 0.90909094, %v1145_v20  ;;  %5362 = vst [vmem:[#allocation12_spill] sm:$0xff] %v4165_v40  ;;  %v960_v16 = vadd.f32 1.0, %v2805_v61  ;;  %v4181_v44 = vpop.f32.mrf.mxu1  ;;  %2830 = vpow2.f32 %v858_v58 }
 0x134   : > { %v573_v59 = vpop.f32.mrf.mxu0  ;;  %v2809_v13 = vpop.eup %2808  ;;  %v961_v38 = vadd.f32 1.0, %v2807_v49  ;;  %734 = vst [vmem:[%s3913_s27 + $0x160] sm:$0xff] %v4165_v40  ;;  %5363 = vst [vmem:[#allocation13_spill] sm:$0xff] %v4179_v33  ;;  %v860_v20 = vmul.f32 1.442695, %v776_v39 }
 0x135   : > { %714 = vst [vmem:[%s3913_s27 + $0xc0] sm:$0xff] %v4161_v62  ;;  %v4170_v12 = vadd.f32 %v573_v59, %v3904_v9  ;;  %1420 = vmatprep.mubr.f32.mxu1 %v1209_v28  ;;  %v2811_v61 = vpop.eup %2810  ;;  %v778_v59 = vmul.f32 %v3906_v11, %v4144_v21  ;;  %v1208_v34 = vmul.f32 0.90909094, %v1144_v43  ;;  %735 = vst [vmem:[%s3913_s27 + $0x168] sm:$0xff] %v4179_v33  ;;  %2832 = vrcp.f32 %v960_v16  ;;  %v4202_v3 = vpop.f32.mrf.mxu1 }
 0x136   : > { %v577_v22 = vpop.f32.mrf.mxu0  ;;  %v2813_v49 = vpop.eup %2812  ;;  %v963_v4 = vadd.f32 1.0, %v2809_v13  ;;  %2834 = vrcp.f32 %v961_v38  ;;  %v862_v58 = vmul.f32 1.442695, %v777_v6  ;;  %v4200_v43 = vadd.f32 %v4069_v0, %v3900_v7 }
 0x137   : > { %715 = vst [vmem:[%s3913_s27 + $0xc8] sm:$0xff] %v4170_v12  ;;  %v4188_v28 = vadd.f32 %v577_v22, %v3900_v7  ;;  %v2815_v55 = vpop.eup %2814  ;;  %1421 = vmatmul.mubr.f32.gmra.mxu1 %v1208_v34  ;;  %v1147_v22 = vmul.f32 %v2811_v61, %v3990_v52  ;;  %v962_v16 = vadd.f32 1.0, %v2813_v49  ;;  %2836 = vpow2.f32 %v860_v20 }
 0x138   : > { %v579_v32 = vpop.f32.mrf.mxu0  ;;  %5364 = vst [vmem:[#allocation14_spill] sm:$0xff] %v4200_v43  ;;  %v779_v13 = vmul.f32 %v3906_v11, %v4151_v26  ;;  %v864_v6 = vmul.f32 1.442695, %v778_v59  ;;  %736 = vst [vmem:[%s3913_s27 + $0x170] sm:$0xff] %v4200_v43  ;;  %2838 = vrcp.f32 %v963_v4  ;;  %v1146_v49 = vmul.f32 %v2815_v55, %v3978_v46 }
 0x139   : > { %v4193_v39 = vadd.f32 %v579_v32, %v3904_v9  ;;  %716 = vst [vmem:[%s3913_s27 + $0xd0] sm:$0xff] %v4188_v28  ;;  %v2817_v38 = vpop.eup %2816  ;;  %v1211_v34 = vmul.f32 0.90909094, %v1147_v22  ;;  %2840 = vpow2.f32 %v862_v58  ;;  %v780_v32 = vmul.f32 %v3906_v11, %v4161_v62  ;;  %v4225_v22 = vpop.f32.mrf.mxu1 }
 0x13a   : > { %v583_v8 = vpop.f32.mrf.mxu0  ;;  %v2819_v61 = vpop.eup %2818  ;;  %v4223_v59 = vadd.f32 %v4079_v19, %v3904_v9  ;;  %2842 = vrcp.f32 %v962_v16  ;;  %v866_v58 = vmul.f32 1.442695, %v779_v13  ;;  %v1210_v43 = vmul.f32 0.90909094, %v1146_v49 }
 0x13b   : > { %717 = vst [vmem:[%s3913_s27 + $0xd8] sm:$0xff] %v4193_v39  ;;  %v4209_v52 = vadd.f32 %v583_v8, %v3900_v7  ;;  %v2821_v20 = vpop.eup %2820  ;;  %1426 = vmatprep.mubr.f32.mxu1 %v1211_v34  ;;  %v964_v40 = vadd.f32 1.0, %v2819_v61  ;;  %2844 = vpow2.f32 %v864_v6  ;;  %v781_v19 = vmul.f32 %v3906_v11, %v4170_v12 }
 0x13c   : > { %v585_v0 = vpop.f32.mrf.mxu0  ;;  %5365 = vst [vmem:[#allocation15_spill] sm:$0xff] %v4223_v59  ;;  %v2823_v46 = vpop.eup %2822  ;;  %v965_v55 = vadd.f32 1.0, %v2821_v20  ;;  %737 = vst [vmem:[%s3913_s27 + $0x178] sm:$0xff] %v4223_v59  ;;  %1427 = vmatmul.mubr.f32.gmra.mxu1 %v1210_v43  ;;  %v4239_v13 = vadd.f32 %v4092_v29, %v3900_v7  ;;  %v868_v49 = vmul.f32 1.442695, %v780_v32  ;;  %v782_v29 = vmul.f32 %v3906_v11, %v4188_v28 }
 0x13d   : > { %718 = vst [vmem:[%s3913_s27 + $0xe0] sm:$0xff] %v4209_v52  ;;  %v4219_v8 = vadd.f32 %v585_v0, %v3904_v9  ;;  %v2825_v34 = vpop.eup %2824  ;;  %v1149_v0 = vmul.f32 %v2817_v38, %v4012_v63  ;;  %v1148_v20 = vmul.f32 %v2823_v46, %v4002_v57  ;;  %v4242_v59 = vpop.f32.mrf.mxu1  ;;  %v4255_v46 = vadd.f32 %v4099_v45, %v3904_v9 }
 0x13e   : > { %v589_v4 = vpop.f32.mrf.mxu0  ;;  %v2827_v61 = vpop.eup %2826  ;;  %2846 = vrcp.f32 %v965_v55  ;;  %738 = vst [vmem:[%s3913_s27 + $0x180] sm:$0xff] %v4239_v13  ;;  %v1151_v55 = vmul.f32 %v2825_v34, %v4031_v25  ;;  %v4272_v34 = vadd.f32 %v4123_v23, %v3900_v7  ;;  %v783_v23 = vmul.f32 %v3906_v11, %v4193_v39 }
 0x13f   : > { %719 = vst [vmem:[%s3913_s27 + $0xe8] sm:$0xff] %v4219_v8  ;;  %v4235_v16 = vadd.f32 %v589_v4, %v3900_v7  ;;  %v966_v33 = vadd.f32 1.0, %v2827_v61  ;;  %2848 = vpow2.f32 %v866_v58  ;;  %v1213_v43 = vmul.f32 0.90909094, %v1149_v0  ;;  %v2829_v63 = vpop.eup %2828  ;;  %739 = vst [vmem:[%s3913_s27 + $0x188] sm:$0xff] %v4255_v46 }
 0x140   : > { %v591_v6 = vpop.f32.mrf.mxu0  ;;  %2850 = vrcp.f32 %v964_v40  ;;  %v1212_v38 = vmul.f32 0.90909094, %v1148_v20  ;;  %v2831_v57 = vpop.eup %2830  ;;  %v870_v4 = vmul.f32 1.442695, %v781_v19  ;;  %v2191_v19 = vld [vmem:[%s5333_s6 + $0x70] sm:$0xff]  ;;  %v1150_v20 = vmul.f32 %v2829_v63, %v4026_v18  ;;  %740 = vst [vmem:[%s3913_s27 + $0x190] sm:$0xff] %v4272_v34 }
 0x141   : > { %720 = vst [vmem:[%s3913_s27 + $0xf0] sm:$0xff] %v4235_v16  ;;  %v4251_v32 = vadd.f32 %v591_v6, %v3904_v9  ;;  %1432 = vmatprep.mubr.f32.mxu1 %v1213_v43  ;;  %v967_v0 = vadd.f32 1.0, %v2831_v57  ;;  %2852 = vpow2.f32 %v868_v49  ;;  %v4260_v40 = vpop.f32.mrf.mxu1  ;;  %v2192_v6 = vld [vmem:[%s5333_s6 + $0x78] sm:$0xff]  ;;  %v1215_v25 = vmul.f32 0.90909094, %v1151_v55 }
 0x142   : > { %v2833_v58 = vpop.eup %2832  ;;  %1433 = vmatmul.mubr.f32.gmra.mxu1 %v1212_v38  ;;  %2854 = vrcp.f32 %v966_v33  ;;  %2217 = vmatpush1.msra.mxu0 %v2192_v6  ;;  %v872_v49 = vmul.f32 1.442695, %v782_v29  ;;  %v4277_v43 = vadd.f32 %v4139_v2, %v3904_v9  ;;  %v5366_v33 = vmov 0.0   ;;  %v2190_v38 = vld [vmem:[%s5333_s6 + $0x68] sm:$0xff] }
 0x143   : > { %721 = vst [vmem:[%s3913_s27 + $0xf8] sm:$0xff] %v4251_v32  ;;  %v2835_v45 = vpop.eup %2834  ;;  %2856 = vrcp.f32 %v967_v0  ;;  %2218 = vmatprep.subr.mxu0 %v5366_v33  ;;  %1438 = vmatprep.mubr.f32.mxu1 %v1215_v25  ;;  %v1214_v63 = vmul.f32 0.90909094, %v1150_v20  ;;  %v4290_v29 = vpop.f32.mrf.mxu1  ;;  %v788_v0 = vmul.f32 %v3906_v11, %v3923_v17  ;;  %v4300_v6 = vadd.f32 %v4154_v53, %v3900_v7  ;;  %v2188_v17 = vld [vmem:[%s5333_s6 + $0x58] sm:$0xff] }
 0x144   : > { %v2837_v61 = vpop.eup %2836  ;;  %2858 = vpow2.f32 %v870_v4  ;;  %2219 = vmatpush1.msra.mxu0 %v2191_v19  ;;  %741 = vst [vmem:[%s3913_s27 + $0x198] sm:$0xff] %v4277_v43  ;;  %v1153_v2 = vmul.f32 %v2835_v45, %v4056_v51  ;;  %v2189_v4 = vld [vmem:[%s5333_s6 + $0x60] sm:$0xff]  ;;  %v1152_v19 = vmul.f32 %v2833_v58, %v4044_v37  ;;  %v789_v45 = vmul.f32 %v3906_v11, %v3935_v24 }
 0x145   : > { %v968_v57 = vadd.f32 1.0, %v2837_v61  ;;  %v2839_v18 = vpop.eup %2838  ;;  %2220 = vmatprep.subr.mxu0 %v5366_v33  ;;  %2860 = vpow2.f32 %v872_v49  ;;  %v790_v53 = vmul.f32 %v3906_v11, %v3947_v30  ;;  %v874_v37 = vmul.f32 1.442695, %v783_v23  ;;  %742 = vst [vmem:[%s3913_s27 + $0x1a0] sm:$0xff] %v4300_v6  ;;  %v2187_v30 = vld [vmem:[%s5333_s6 + $0x50] sm:$0xff] }
 0x146   : > { %v2841_v55 = vpop.eup %2840  ;;  %2221 = vmatpush1.msra.mxu0 %v2190_v38  ;;  %1439 = vmatmul.mubr.f32.gmra.mxu1 %v1214_v63  ;;  %v1217_v61 = vmul.f32 0.90909094, %v1153_v2  ;;  %v1216_v58 = vmul.f32 0.90909094, %v1152_v19  ;;  %v4315_v49 = vadd.f32 %v4181_v44, %v3904_v9  ;;  %v1155_v38 = vmul.f32 %v2839_v18, %v4074_v10  ;;  %v4318_v63 = vpop.f32.mrf.mxu1 }
 0x147   : > { %v2843_v51 = vpop.eup %2842  ;;  %v969_v25 = vadd.f32 1.0, %v2841_v55  ;;  %2222 = vmatprep.subr.mxu0 %v5366_v33  ;;  %2862 = vrcp.f32 %v968_v57  ;;  %v4326_v23 = vadd.f32 %v4202_v3, %v3900_v7  ;;  %v784_v10 = vmul.f32 %v3906_v11, %v4209_v52  ;;  %v2186_v3 = vld [vmem:[%s5333_s6 + $0x48] sm:$0xff] }
 0x148   : > { %v2845_v20 = vpop.eup %2844  ;;  %2223 = vmatpush1.msra.mxu0 %v2189_v4  ;;  %1444 = vmatprep.mubr.f32.mxu1 %v1217_v61  ;;  %v1154_v2 = vmul.f32 %v2843_v51, %v4063_v56  ;;  %v884_v4 = vmul.f32 1.442695, %v788_v0  ;;  %743 = vst [vmem:[%s3913_s27 + $0x1a8] sm:$0xff] %v4315_v49  ;;  %v1219_v18 = vmul.f32 0.90909094, %v1155_v38  ;;  %v4343_v61 = vpop.f32.mrf.mxu1 }
 0x149   : > { %2864 = vrcp.f32 %v969_v25  ;;  %v970_v24 = vadd.f32 1.0, %v2845_v20  ;;  %2224 = vmatprep.subr.mxu0 %v5366_v33  ;;  %v886_v19 = vmul.f32 1.442695, %v789_v45  ;;  %744 = vst [vmem:[%s3913_s27 + $0x1b0] sm:$0xff] %v4326_v23  ;;  %v888_v0 = vmul.f32 1.442695, %v790_v53 }
 0x14a   : > { %2225 = vmatpush1.msra.mxu0 %v2188_v17  ;;  %1445 = vmatmul.mubr.f32.gmra.mxu1 %v1216_v58  ;;  %v1218_v51 = vmul.f32 0.90909094, %v1154_v2  ;;  %v4341_v25 = vadd.f32 %v4225_v22, %v3904_v9  ;;  %v2185_v45 = vld [vmem:[%s5333_s6 + $0x40] sm:$0xff]  ;;  %v791_v20 = vmul.f32 %v3906_v11, %v3959_v36  ;;  %v4354_v22 = vadd.f32 %v4242_v59, %v3900_v7  ;;  %v2184_v36 = vld [vmem:[%s5333_s6 + $0x38] sm:$0xff] }
 0x14b   : > { %v2847_v57 = vpop.eup %2846  ;;  %2866 = vrcp.f32 %v970_v24  ;;  %2226 = vmatprep.subr.mxu0 %v5366_v33  ;;  %1450 = vmatprep.mubr.f32.mxu1 %v1219_v18  ;;  %v876_v24 = vmul.f32 1.442695, %v784_v10 }
 0x14c   : > { %v2849_v44 = vpop.eup %2848  ;;  %2868 = vpow2.f32 %v874_v37  ;;  %2227 = vmatpush1.msra.mxu0 %v2187_v30  ;;  %v1157_v53 = vmul.f32 %v2847_v57, %v4095_v35  ;;  %745 = vst [vmem:[%s3913_s27 + $0x1b8] sm:$0xff] %v4341_v25  ;;  %746 = vst [vmem:[%s3913_s27 + $0x1c0] sm:$0xff] %v4354_v22  ;;  %v785_v57 = vmul.f32 %v3906_v11, %v4219_v8  ;;  %v890_v10 = vmul.f32 1.442695, %v791_v20 }
 0x14d   : > { %v2851_v55 = vpop.eup %2850  ;;  %v971_v56 = vadd.f32 1.0, %v2849_v44  ;;  %2228 = vmatprep.subr.mxu0 %v5366_v33  ;;  %v681_v44 = vpop.f32.mrf.mxu1 }
 0x14e   : > { %v2853_v17 = vpop.eup %2852  ;;  %2229 = vmatpush1.msra.mxu0 %v2186_v3  ;;  %1451 = vmatmul.mubr.f32.gmra.mxu1 %v1218_v51  ;;  %v1156_v38 = vmul.f32 %v2851_v55, %v4088_v27  ;;  %v1221_v59 = vmul.f32 0.90909094, %v1157_v53  ;;  %v4369_v27 = vadd.f32 %v4260_v40, %v3904_v9  ;;  %v786_v40 = vmul.f32 %v3906_v11, %v4235_v16 }
 0x14f   : > { %2870 = vrcp.f32 %v971_v56  ;;  %v2855_v37 = vpop.eup %2854  ;;  %v972_v58 = vadd.f32 1.0, %v2853_v17  ;;  %2230 = vmatprep.subr.mxu0 %v5366_v33  ;;  %v4382_v55 = vadd.f32 %v4290_v29, %v3900_v7  ;;  %v878_v29 = vmul.f32 1.442695, %v785_v57  ;;  %v685_v20 = vpop.f32.mrf.mxu1 }
 0x150   : > { %2872 = vpow2.f32 %v884_v4  ;;  %v2857_v35 = vpop.eup %2856  ;;  %2231 = vmatpush1.msra.mxu0 %v2185_v45  ;;  %v1220_v2 = vmul.f32 0.90909094, %v1156_v38  ;;  %v2183_v4 = vld [vmem:[%s5333_s6 + $0x30] sm:$0xff]  ;;  %1456 = vmatprep.mubr.f32.mxu1 %v1221_v59  ;;  %747 = vst [vmem:[%s3913_s27 + $0x1c8] sm:$0xff] %v4369_v27  ;;  %v792_v45 = vmul.f32 %v3906_v11, %v3971_v42  ;;  %v793_v42 = vmul.f32 %v3906_v11, %v3983_v48 }
 0x151   : > { %2874 = vpow2.f32 %v886_v19  ;;  %v2859_v30 = vpop.eup %2858  ;;  %2232 = vmatprep.subr.mxu0 %v5366_v33  ;;  %v1159_v3 = vmul.f32 %v2857_v35, %v4118_v14  ;;  %v1158_v14 = vmul.f32 %v2855_v37, %v4106_v50  ;;  %748 = vst [vmem:[%s3913_s27 + $0x1d0] sm:$0xff] %v4382_v55  ;;  %v787_v50 = vmul.f32 %v3906_v11, %v4251_v32 }
 0x152   : > { %2876 = vrcp.f32 %v972_v58  ;;  %v973_v18 = vadd.f32 1.0, %v2859_v30  ;;  %2233 = vmatpush1.msra.mxu0 %v2184_v36  ;;  %1457 = vmatmul.mubr.f32.gmra.mxu1 %v1220_v2  ;;  %v2861_v19 = vpop.eup %2860  ;;  %v880_v37 = vmul.f32 1.442695, %v786_v40  ;;  %v4408_v35 = vadd.f32 %v681_v44, %v3904_v9 }
 0x153   : > { %2878 = vpow2.f32 %v888_v0  ;;  %2234 = vmatprep.subr.mxu0 %v5366_v33  ;;  %v1223_v56 = vmul.f32 0.90909094, %v1159_v3  ;;  %v4388_v0 = vadd.f32 %v4318_v63, %v3904_v9  ;;  %v974_v17 = vadd.f32 1.0, %v2861_v19 }
 0x154   : > { %2880 = vpow2.f32 %v876_v24  ;;  %2235 = vmatpush1.msra.mxu0 %v2183_v4  ;;  %v2863_v51 = vpop.eup %2862  ;;  %v1222_v63 = vmul.f32 0.90909094, %v1158_v14  ;;  %v4404_v24 = vadd.f32 %v4343_v61, %v3900_v7  ;;  %v892_v30 = vmul.f32 1.442695, %v792_v45  ;;  %v687_v61 = vpop.f32.mrf.mxu1  ;;  %751 = vst [vmem:[%s3913_s27 + $0x1e8] sm:$0xff] %v4408_v35 }
 0x155   : > { %2882 = vrcp.f32 %v973_v18  ;;  %2236 = vmatprep.subr.mxu0 %v5366_v33  ;;  %1462 = vmatprep.mubr.f32.mxu1 %v1223_v56  ;;  %749 = vst [vmem:[%s3913_s27 + $0x1d8] sm:$0xff] %v4388_v0  ;;  %v1160_v36 = vmul.f32 %v2863_v51, %v4126_v31  ;;  %v794_v57 = vmul.f32 %v3906_v11, %v3995_v54  ;;  %v882_v4 = vmul.f32 1.442695, %v787_v50 }
 0x156   : > { %v2865_v53 = vpop.eup %2864  ;;  %2884 = vpow2.f32 %v890_v10  ;;  %1463 = vmatmul.mubr.f32.gmra.mxu1 %v1222_v63  ;;  %750 = vst [vmem:[%s3913_s27 + $0x1e0] sm:$0xff] %v4404_v24  ;;  %v894_v10 = vmul.f32 1.442695, %v793_v42  ;;  %v795_v3 = vmul.f32 %v3906_v11, %v4007_v60  ;;  %v4426_v40 = vadd.f32 %v687_v61, %v3904_v9 }
 0x157   : > { %v1161_v58 = vmul.f32 %v2865_v53, %v4135_v47  ;;  %2886 = vrcp.f32 %v974_v17  ;;  %v4413_v47 = vadd.f32 %v685_v20, %v3900_v7  ;;  %v1224_v31 = vmul.f32 0.90909094, %v1160_v36 }
 0x158   : > { %v2867_v38 = vpop.eup %2866  ;;  %2888 = vpow2.f32 %v878_v29  ;;  %v896_v14 = vmul.f32 1.442695, %v794_v57  ;;  %753 = vst [vmem:[%s3913_s27 + $0x1f8] sm:$0xff] %v4426_v40  ;;  %v797_v60 = vmul.f32 %v3906_v11, %v4047_v41  ;;  %v796_v50 = vmul.f32 %v3906_v11, %v4019_v5 }
 0x159   : > { %v2869_v59 = vpop.eup %2868  ;;  %v1225_v48 = vmul.f32 0.90909094, %v1161_v58  ;;  %2890 = vpow2.f32 %v880_v37  ;;  %752 = vst [vmem:[%s3913_s27 + $0x1f0] sm:$0xff] %v4413_v47  ;;  %v1162_v18 = vmul.f32 %v2867_v38, %v4144_v21  ;;  %v798_v38 = vmul.f32 %v3906_v11, %v4077_v15 }
 0x15a   : > { %v975_v2 = vadd.f32 1.0, %v2869_v59  ;;  %v902_v58 = vmul.f32 1.442695, %v797_v60  ;;  %v799_v36 = vmul.f32 %v3906_v11, %v4113_v1  ;;  %v900_v5 = vmul.f32 1.442695, %v796_v50  ;;  %v5368_v1 = vld [vmem:[#allocation12_spill] sm:$0xff] }
 0x15b   : > { %1468 = vmatprep.mubr.f32.mxu1 %v1225_v48  ;;  %v1226_v17 = vmul.f32 0.90909094, %v1162_v18  ;;  %v904_v15 = vmul.f32 1.442695, %v798_v38 }
 0x15c   : > { %v2871_v44 = vpop.eup %2870  ;;  %2892 = vrcp.f32 %v975_v2  ;;  %1469 = vmatmul.mubr.f32.gmra.mxu1 %v1224_v31 }
 0x15d   : > { %v2873_v7 = vpop.eup %2872  ;;  %v1163_v54 = vmul.f32 %v2871_v44, %v4151_v26  ;;  %2894 = vpow2.f32 %v892_v30  ;;  %v898_v26 = vmul.f32 1.442695, %v795_v3  ;;  %v800_v44 = vmul.f32 %v3906_v11, %v5368_v1 }
 0x15e   : > { %v2875_v19 = vpop.eup %2874  ;;  %2896 = vpow2.f32 %v882_v4  ;;  %v980_v45 = vadd.f32 1.0, %v2873_v7  ;;  %v906_v4 = vmul.f32 1.442695, %v799_v36  ;;  %v807_v36 = vmul.f32 %v3906_v11, %v4277_v43 }
 0x15f   : > { %v2877_v56 = vpop.eup %2876  ;;  %v1227_v51 = vmul.f32 0.90909094, %v1163_v54  ;;  %2898 = vpow2.f32 %v894_v10  ;;  %v981_v20 = vadd.f32 1.0, %v2875_v19 }
 0x160   : > { %v2879_v21 = vpop.eup %2878  ;;  %v1164_v53 = vmul.f32 %v2877_v56, %v4161_v62  ;;  %2900 = vpow2.f32 %v896_v14  ;;  %v5369_v56 = vld [vmem:[#allocation15_spill] sm:$0xff] }
 0x161   : > { %v2881_v29 = vpop.eup %2880  ;;  %1474 = vmatprep.mubr.f32.mxu1 %v1227_v51  ;;  %2902 = vrcp.f32 %v980_v45  ;;  %v982_v41 = vadd.f32 1.0, %v2879_v21  ;;  %v803_v14 = vmul.f32 %v3906_v11, %v5369_v56 }
 0x162   : > { %v2883_v9 = vpop.eup %2882  ;;  %1475 = vmatmul.mubr.f32.gmra.mxu1 %v1226_v17  ;;  %v976_v63 = vadd.f32 1.0, %v2881_v29  ;;  %2904 = vpow2.f32 %v898_v26  ;;  %v1228_v30 = vmul.f32 0.90909094, %v1164_v53  ;;  %v908_v17 = vmul.f32 1.442695, %v800_v44  ;;  %v5370_v29 = vld [vmem:[#allocation14_spill] sm:$0xff] }
 0x163   : > { %v1165_v42 = vmul.f32 %v2883_v9, %v4170_v12  ;;  %v2885_v37 = vpop.eup %2884  ;;  %2906 = vrcp.f32 %v981_v20  ;;  %v5367_v12 = vld [vmem:[#allocation13_spill] sm:$0xff]  ;;  %v914_v20 = vmul.f32 1.442695, %v803_v14  ;;  %v805_v53 = vmul.f32 %v3906_v11, %v4255_v46 }
 0x164   : > { %v2887_v62 = vpop.eup %2886  ;;  %2908 = vrcp.f32 %v976_v63  ;;  %v801_v61 = vmul.f32 %v3906_v11, %v5367_v12  ;;  %v983_v51 = vadd.f32 1.0, %v2885_v37 }
 0x165   : > { %v1229_v59 = vmul.f32 0.90909094, %v1165_v42  ;;  %v2889_v48 = vpop.eup %2888  ;;  %2910 = vpow2.f32 %v902_v58  ;;  %v1166_v18 = vmul.f32 %v2887_v62, %v4188_v28  ;;  %v802_v28 = vmul.f32 %v3906_v11, %v5370_v29 }
 0x166   : > { %v977_v57 = vadd.f32 1.0, %v2889_v48  ;;  %v2891_v2 = vpop.eup %2890  ;;  %2912 = vrcp.f32 %v982_v41  ;;  %v910_v19 = vmul.f32 1.442695, %v801_v61  ;;  %v804_v41 = vmul.f32 %v3906_v11, %v4239_v13 }
 0x167   : > { %1480 = vmatprep.mubr.f32.mxu1 %v1229_v59  ;;  %v978_v10 = vadd.f32 1.0, %v2891_v2  ;;  %v1230_v26 = vmul.f32 0.90909094, %v1166_v18  ;;  %v912_v37 = vmul.f32 1.442695, %v802_v28  ;;  %v811_v29 = vmul.f32 %v3906_v11, %v4341_v25 }
 0x168   : > { %1481 = vmatmul.mubr.f32.gmra.mxu1 %v1228_v30  ;;  %2914 = vrcp.f32 %v977_v57  ;;  %v918_v62 = vmul.f32 1.442695, %v805_v53  ;;  %v916_v61 = vmul.f32 1.442695, %v804_v41  ;;  %v806_v57 = vmul.f32 %v3906_v11, %v4272_v34 }
 0x169   : > { %v2893_v31 = vpop.eup %2892  ;;  %2916 = vpow2.f32 %v900_v5 }
 0x16a   : > { %v2895_v7 = vpop.eup %2894  ;;  %v1167_v3 = vmul.f32 %v2893_v31, %v4193_v39  ;;  %2918 = vrcp.f32 %v978_v10 }
 0x16b   : > { %v2897_v54 = vpop.eup %2896  ;;  %2920 = vpow2.f32 %v906_v4  ;;  %v984_v9 = vadd.f32 1.0, %v2895_v7  ;;  %v809_v4 = vmul.f32 %v3906_v11, %v4315_v49 }
 0x16c   : > { %v979_v21 = vadd.f32 1.0, %v2897_v54  ;;  %v1231_v45 = vmul.f32 0.90909094, %v1167_v3  ;;  %v2899_v60 = vpop.eup %2898  ;;  %2922 = vpow2.f32 %v904_v15  ;;  %v922_v15 = vmul.f32 1.442695, %v807_v36  ;;  %v3281_v36 = vld [vmem:[%s3913_s27 + $0x100] sm:$0xff] }
 0x16d   : > { %v2901_v39 = vpop.eup %2900  ;;  %v985_v63 = vadd.f32 1.0, %v2899_v60  ;;  %v920_v3 = vmul.f32 1.442695, %v806_v57  ;;  %v808_v54 = vmul.f32 %v3906_v11, %v4300_v6 }
 0x16e   : > { %2924 = vrcp.f32 %v979_v21  ;;  %1486 = vmatprep.mubr.f32.mxu1 %v1231_v45  ;;  %v4452_v50 = vpop.eup %2902  ;;  %v986_v38 = vadd.f32 1.0, %v2901_v39 }
 0x16f   : > { %2926 = vpow2.f32 %v910_v19  ;;  %1487 = vmatmul.mubr.f32.gmra.mxu1 %v1230_v26  ;;  %v2905_v42 = vpop.eup %2904  ;;  %v3280_v26 = vld [vmem:[%s3913_s27 + $0x108] sm:$0xff]  ;;  %v924_v53 = vmul.f32 1.442695, %v808_v54  ;;  %v815_v54 = vmul.f32 %v3906_v11, %v4388_v0 }
 0x170   : > { %2928 = vrcp.f32 %v983_v51  ;;  %v2907_v58 = vpop.eup %2906  ;;  %v987_v48 = vadd.f32 1.0, %v2905_v42  ;;  %v926_v51 = vmul.f32 1.442695, %v809_v4  ;;  %v813_v42 = vmul.f32 %v3906_v11, %v4369_v27 }
 0x171   : > { %2930 = vpow2.f32 %v908_v17  ;;  %v2909_v59 = vpop.eup %2908 }
 0x172   : > { %2932 = vrcp.f32 %v984_v9  ;;  %v2911_v30 = vpop.eup %2910  ;;  %v1168_v31 = vmul.f32 %v2909_v59, %v4209_v52  ;;  %v1173_v9 = vmul.f32 %v3280_v26, %v2907_v58  ;;  %v1172_v58 = vmul.f32 %v3281_v36, %v4452_v50  ;;  %v3285_v26 = vld [vmem:[%s3913_s27 + $0x120] sm:$0xff] }
 0x173   : > { %2934 = vpow2.f32 %v914_v20  ;;  %v4458_v5 = vpop.eup %2912  ;;  %v989_v44 = vadd.f32 1.0, %v2911_v30  ;;  %v934_v50 = vmul.f32 1.442695, %v813_v42 }
 0x174   : > { %2936 = vrcp.f32 %v985_v63  ;;  %v1232_v21 = vmul.f32 0.90909094, %v1168_v31  ;;  %v1237_v30 = vmul.f32 0.90909094, %v1173_v9  ;;  %v812_v31 = vmul.f32 %v3906_v11, %v4354_v22 }
 0x175   : > { %2938 = vpow2.f32 %v912_v37  ;;  %v2915_v2 = vpop.eup %2914 }
 0x176   : > { %2940 = vrcp.f32 %v986_v38  ;;  %v2917_v1 = vpop.eup %2916  ;;  %v1169_v10 = vmul.f32 %v2915_v2, %v4219_v8 }
 0x177   : > { %2942 = vpow2.f32 %v918_v62  ;;  %v2919_v18 = vpop.eup %2918  ;;  %v988_v45 = vadd.f32 1.0, %v2917_v1  ;;  %v930_v62 = vmul.f32 1.442695, %v811_v29 }
 0x178   : > { %2944 = vrcp.f32 %v987_v48  ;;  %v2921_v7 = vpop.eup %2920  ;;  %v1233_v19 = vmul.f32 0.90909094, %v1169_v10  ;;  %v1170_v8 = vmul.f32 %v2919_v18, %v4235_v16  ;;  %v810_v16 = vmul.f32 %v3906_v11, %v4326_v23  ;;  %v3282_v48 = vld [vmem:[%s3913_s27 + $0x118] sm:$0xff]  ;;  %v3283_v18 = vld [vmem:[%s3913_s27 + $0x110] sm:$0xff] }
 0x179   : > { %2946 = vpow2.f32 %v916_v61  ;;  %v2923_v14 = vpop.eup %2922  ;;  %v991_v17 = vadd.f32 1.0, %v2921_v7  ;;  %v1236_v10 = vmul.f32 0.90909094, %v1172_v58  ;;  %v1174_v7 = vmul.f32 %v3283_v18, %v4458_v5 }
 0x17a   : > { %2948 = vpow2.f32 %v922_v15  ;;  %1492 = vmatprep.mubr.f32.mxu1 %v1233_v19  ;;  %v990_v20 = vadd.f32 1.0, %v2923_v14  ;;  %v1234_v38 = vmul.f32 0.90909094, %v1170_v8  ;;  %v928_v4 = vmul.f32 1.442695, %v810_v16  ;;  %v3284_v14 = vld [vmem:[%s3913_s27 + $0x128] sm:$0xff] }
 0x17b   : > { %v2925_v52 = vpop.eup %2924  ;;  %2950 = vrcp.f32 %v989_v44  ;;  %1493 = vmatmul.mubr.f32.gmra.mxu1 %v1232_v21  ;;  %v932_v8 = vmul.f32 1.442695, %v812_v31  ;;  %v814_v5 = vmul.f32 %v3906_v11, %v4382_v55 }
 0x17c   : > { %v2927_v60 = vpop.eup %2926  ;;  %v1171_v28 = vmul.f32 %v2925_v52, %v4251_v32  ;;  %2952 = vpow2.f32 %v920_v3 }
 0x17d   : > { %v2929_v39 = vpop.eup %2928  ;;  %2954 = vpow2.f32 %v926_v51  ;;  %v993_v32 = vadd.f32 1.0, %v2927_v60  ;;  %v817_v60 = vmul.f32 %v3906_v11, %v4408_v35  ;;  %v936_v36 = vmul.f32 1.442695, %v814_v5  ;;  %v3290_v5 = vld [vmem:[%s3913_s27 + $0x158] sm:$0xff] }
 0x17e   : > { %v2931_v63 = vpop.eup %2930  ;;  %v1235_v37 = vmul.f32 0.90909094, %v1171_v28  ;;  %2956 = vrcp.f32 %v988_v45  ;;  %v1175_v61 = vmul.f32 %v3282_v48, %v2929_v39  ;;  %v1238_v28 = vmul.f32 0.90909094, %v1174_v7 }
 0x17f   : > { %v2933_v41 = vpop.eup %2932  ;;  %2958 = vrcp.f32 %v991_v17  ;;  %v992_v2 = vadd.f32 1.0, %v2931_v63  ;;  %v3286_v63 = vld [vmem:[%s3913_s27 + $0x138] sm:$0xff] }
 0x180   : > { %v2935_v59 = vpop.eup %2934  ;;  %1498 = vmatprep.mubr.f32.mxu1 %v1235_v37  ;;  %2960 = vrcp.f32 %v990_v20  ;;  %v1239_v19 = vmul.f32 0.90909094, %v1175_v61  ;;  %v1176_v9 = vmul.f32 %v3285_v26, %v2933_v41  ;;  %v938_v20 = vmul.f32 1.442695, %v815_v54  ;;  %v2182_v37 = vld [vmem:[%s5333_s6 + $0x28] sm:$0xff]  ;;  %v2181_v61 = vld [vmem:[%s5333_s6 + $0x20] sm:$0xff] }
 0x181   : > { %v2937_v57 = vpop.eup %2936  ;;  %1499 = vmatmul.mubr.f32.gmra.mxu1 %v1234_v38  ;;  %2962 = vpow2.f32 %v924_v53  ;;  %v995_v44 = vadd.f32 1.0, %v2935_v59  ;;  %v816_v41 = vmul.f32 %v3906_v11, %v4404_v24  ;;  %2237 = vmatpush1.msra.mxu0 %v2182_v37  ;;  %v942_v59 = vmul.f32 1.442695, %v817_v60 }
 0x182   : > { %v2939_v15 = vpop.eup %2938  ;;  %1504 = vmatprep.mubr.f32.mxu1 %v1237_v30  ;;  %2964 = vrcp.f32 %v993_v32  ;;  %v1177_v51 = vmul.f32 %v3284_v14, %v2937_v57  ;;  %v3287_v30 = vld [vmem:[%s3913_s27 + $0x130] sm:$0xff]  ;;  %2238 = vmatprep.subr.mxu0 %v5366_v33  ;;  %v818_v54 = vmul.f32 %v3906_v11, %v4413_v47  ;;  %v3289_v14 = vld [vmem:[%s3913_s27 + $0x140] sm:$0xff] }
 0x183   : > { %v2941_v1 = vpop.eup %2940  ;;  %2966 = vpow2.f32 %v930_v62  ;;  %v994_v52 = vadd.f32 1.0, %v2939_v15  ;;  %v1240_v62 = vmul.f32 0.90909094, %v1176_v9  ;;  %2239 = vmatpush1.msra.mxu0 %v2181_v61  ;;  %v940_v7 = vmul.f32 1.442695, %v816_v41 }
 0x184   : > { %v2943_v3 = vpop.eup %2942  ;;  %2968 = vrcp.f32 %v992_v2  ;;  %v1241_v53 = vmul.f32 0.90909094, %v1177_v51  ;;  %v1178_v48 = vmul.f32 %v3287_v30, %v2941_v1  ;;  %v819_v2 = vmul.f32 %v3906_v11, %v4426_v40  ;;  %2240 = vmatprep.subr.mxu0 %v5366_v33  ;;  %v2180_v1 = vld [vmem:[%s5333_s6 + $0x18] sm:$0xff] }
 0x185   : > { %v2945_v21 = vpop.eup %2944  ;;  %1505 = vmatmul.mubr.f32.gmra.mxu1 %v1236_v10  ;;  %2970 = vpow2.f32 %v928_v4  ;;  %v997_v29 = vadd.f32 1.0, %v2943_v3  ;;  %v3288_v4 = vld [vmem:[%s3913_s27 + $0x148] sm:$0xff]  ;;  %2241 = vmatpush1.msra.mxu0 %v2180_v1  ;;  %v2205_v1 = vld [vmem:[%s5333_s6 + $0xe0] sm:$0xff] }
 0x186   : > { %v2947_v45 = vpop.eup %2946  ;;  %1510 = vmatprep.mubr.f32.mxu1 %v1239_v19  ;;  %2972 = vrcp.f32 %v995_v44  ;;  %v1179_v16 = vmul.f32 %v3286_v63, %v2945_v21  ;;  %v1242_v19 = vmul.f32 0.90909094, %v1178_v48  ;;  %2242 = vmatprep.subr.mxu0 %v5366_v33  ;;  %v2179_v21 = vld [vmem:[%s5333_s6 + $0x10] sm:$0xff]  ;;  %v3292_v48 = vld [vmem:[%s3913_s27 + $0x160] sm:$0xff] }
 0x187   : > { %v2949_v17 = vpop.eup %2948  ;;  %2974 = vpow2.f32 %v934_v50  ;;  %v996_v42 = vadd.f32 1.0, %v2947_v45  ;;  %v946_v45 = vmul.f32 1.442695, %v819_v2  ;;  %2243 = vmatpush1.msra.mxu0 %v2179_v21  ;;  %v3291_v63 = vld [vmem:[%s3913_s27 + $0x150] sm:$0xff] }
 0x188   : > { %v2951_v39 = vpop.eup %2950  ;;  %2976 = vrcp.f32 %v994_v52  ;;  %v999_v38 = vadd.f32 1.0, %v2949_v17  ;;  %v1243_v15 = vmul.f32 0.90909094, %v1179_v16  ;;  %2244 = vmatprep.subr.mxu0 %v5366_v33 }
 0x189   : > { %1511 = vmatmul.mubr.f32.gmra.mxu1 %v1238_v28  ;;  %v2953_v32 = vpop.eup %2952  ;;  %2978 = vpow2.f32 %v932_v8  ;;  %v1181_v31 = vmul.f32 %v3288_v4, %v2951_v39  ;;  %v2177_v28 = vld [vmem:[%s5333_s6] sm:$0xff] }
 0x18a   : > { %1516 = vmatprep.mubr.f32.mxu1 %v1241_v53  ;;  %v2955_v58 = vpop.eup %2954  ;;  %2980 = vrcp.f32 %v997_v29  ;;  %v998_v44 = vadd.f32 1.0, %v2953_v32  ;;  %v2178_v29 = vld [vmem:[%s5333_s6 + $0x8] sm:$0xff] }
 0x18b   : > { %v2957_v57 = vpop.eup %2956  ;;  %2982 = vpow2.f32 %v938_v20  ;;  %v1001_v18 = vadd.f32 1.0, %v2955_v58  ;;  %v1245_v8 = vmul.f32 0.90909094, %v1181_v31  ;;  %2245 = vmatpush1.msra.mxu0 %v2178_v29  ;;  %v944_v20 = vmul.f32 1.442695, %v818_v54  ;;  %v2206_v31 = vld [vmem:[%s5333_s6 + $0xe8] sm:$0xff] }
 0x18c   : > { %v2959_v50 = vpop.eup %2958  ;;  %2984 = vrcp.f32 %v996_v42  ;;  %v1180_v51 = vmul.f32 %v3289_v14, %v2957_v57  ;;  %2246 = vmatprep.subr.mxu0 %v5366_v33 }
 0x18d   : > { %1517 = vmatmul.mubr.f32.gmra.mxu1 %v1240_v62  ;;  %v2961_v10 = vpop.eup %2960  ;;  %2986 = vrcp.f32 %v999_v38  ;;  %v1183_v60 = vmul.f32 %v3290_v5, %v2959_v50  ;;  %2247 = vmatpush1.msra.mxu0 %v2177_v28 }
 0x18e   : > { %1522 = vmatprep.mubr.f32.mxu1 %v1243_v15  ;;  %v2963_v3 = vpop.eup %2962  ;;  %2988 = vpow2.f32 %v936_v36  ;;  %v1244_v53 = vmul.f32 0.90909094, %v1180_v51  ;;  %v1182_v16 = vmul.f32 %v3291_v63, %v2961_v10  ;;  %v2208_v36 = vld [vmem:[%s5333_s6 + $0xf8] sm:$0xff]  ;;  %2248 = vmatprep.subr.mxu0 %v5366_v33 }
 0x18f   : > { %v2965_v52 = vpop.eup %2964  ;;  %2990 = vpow2.f32 %v942_v59  ;;  %v1000_v9 = vadd.f32 1.0, %v2963_v3  ;;  %v1247_v32 = vmul.f32 0.90909094, %v1183_v60  ;;  %2249 = vmatpush2.msra.mxu0 %v2208_v36  ;;  %v2207_v59 = vld [vmem:[%s5333_s6 + $0xf0] sm:$0xff] }
 0x190   : > { %v2967_v17 = vpop.eup %2966  ;;  %2992 = vrcp.f32 %v998_v44  ;;  %v1185_v38 = vmul.f32 %v2965_v52, %v5367_v12  ;;  %v1246_v12 = vmul.f32 0.90909094, %v1182_v16  ;;  %2250 = vmatprep.subr.mxu0 %v5366_v33  ;;  %v2204_v52 = vld [vmem:[%s5333_s6 + $0xd8] sm:$0xff] }
 0x191   : > { %1523 = vmatmul.mubr.f32.gmra.mxu1 %v1242_v19  ;;  %v2969_v26 = vpop.eup %2968  ;;  %2994 = vrcp.f32 %v1001_v18  ;;  %v1003_v37 = vadd.f32 1.0, %v2967_v17  ;;  %2251 = vmatpush2.msra.mxu0 %v2207_v59 }
 0x192   : > { %1528 = vmatprep.mubr.f32.mxu1 %v1245_v8  ;;  %v2971_v39 = vpop.eup %2970  ;;  %2996 = vpow2.f32 %v940_v7  ;;  %v1184_v61 = vmul.f32 %v3292_v48, %v2969_v26  ;;  %v1249_v15 = vmul.f32 0.90909094, %v1185_v38  ;;  %2252 = vmatprep.subr.mxu0 %v5366_v33  ;;  %v3293_v7 = vld [vmem:[%s3913_s27 + $0x170] sm:$0xff] }
 0x193   : > { %v2973_v42 = vpop.eup %2972  ;;  %2998 = vpow2.f32 %v946_v45  ;;  %v1002_v30 = vadd.f32 1.0, %v2971_v39  ;;  %2253 = vmatpush2.msra.mxu0 %v2206_v31 }
 0x194   : > { %v2975_v41 = vpop.eup %2974  ;;  %3000 = vrcp.f32 %v1000_v9  ;;  %v1187_v4 = vmul.f32 %v2973_v42, %v5369_v56  ;;  %v1248_v56 = vmul.f32 0.90909094, %v1184_v61  ;;  %2254 = vmatprep.subr.mxu0 %v5366_v33 }
 0x195   : > { %1529 = vmatmul.mubr.f32.gmra.mxu1 %v1244_v53  ;;  %v2977_v58 = vpop.eup %2976  ;;  %3002 = vpow2.f32 %v944_v20  ;;  %v1005_v2 = vadd.f32 1.0, %v2975_v41  ;;  %2255 = vmatpush2.msra.mxu0 %v2205_v1 }
 0x196   : > { %1534 = vmatprep.mubr.f32.mxu1 %v1247_v32  ;;  %v2979_v62 = vpop.eup %2978  ;;  %3004 = vrcp.f32 %v1003_v37  ;;  %v1186_v3 = vmul.f32 %v3293_v7, %v2977_v58  ;;  %v1251_v14 = vmul.f32 0.90909094, %v1187_v4  ;;  %2256 = vmatprep.subr.mxu0 %v5366_v33  ;;  %v2194_v7 = vld [vmem:[%s5333_s6 + $0x88] sm:$0xff] }
 0x197   : > { %v2981_v57 = vpop.eup %2980  ;;  %3006 = vrcp.f32 %v1002_v30  ;;  %v1004_v18 = vadd.f32 1.0, %v2979_v62  ;;  %2257 = vmatpush2.msra.mxu0 %v2204_v52 }
 0x198   : > { %v2983_v50 = vpop.eup %2982  ;;  %3008 = vrcp.f32 %v1005_v2  ;;  %v1189_v51 = vmul.f32 %v2981_v57, %v4255_v46  ;;  %v1250_v60 = vmul.f32 0.90909094, %v1186_v3  ;;  %2258 = vmatprep.subr.mxu0 %v5366_v33  ;;  %v2203_v46 = vld [vmem:[%s5333_s6 + $0xd0] sm:$0xff] }
 0x199   : > { %1535 = vmatmul.mubr.f32.gmra.mxu1 %v1246_v12  ;;  %v2985_v44 = vpop.eup %2984  ;;  %v1007_v19 = vadd.f32 1.0, %v2983_v50  ;;  %3010 = vrcp.f32 %v1004_v18  ;;  %2259 = vmatpush2.msra.mxu0 %v2203_v46  ;;  %v2196_v50 = vld [vmem:[%s5333_s6 + $0x98] sm:$0xff] }
 0x19a   : > { %1540 = vmatprep.mubr.f32.mxu1 %v1249_v15  ;;  %v2987_v10 = vpop.eup %2986  ;;  %v1188_v17 = vmul.f32 %v2985_v44, %v4239_v13  ;;  %v1253_v26 = vmul.f32 0.90909094, %v1189_v51  ;;  %2260 = vmatprep.subr.mxu0 %v5366_v33  ;;  %v2202_v13 = vld [vmem:[%s5333_s6 + $0xc8] sm:$0xff] }
 0x19b   : > { %v2989_v54 = vpop.eup %2988  ;;  %3012 = vrcp.f32 %v1007_v19  ;;  %v1191_v9 = vmul.f32 %v2987_v10, %v4277_v43  ;;  %2261 = vmatpush2.msra.mxu0 %v2202_v13  ;;  %v2201_v43 = vld [vmem:[%s5333_s6 + $0xc0] sm:$0xff] }
 0x19c   : > { %v2991_v21 = vpop.eup %2990  ;;  %v1006_v5 = vadd.f32 1.0, %v2989_v54  ;;  %v1252_v63 = vmul.f32 0.90909094, %v1188_v17  ;;  %2262 = vmatprep.subr.mxu0 %v5366_v33  ;;  %v1332_v17 = vld [vmem:[%s5332_s5] sm:$0x3] }
 0x19d   : > { %1541 = vmatmul.mubr.f32.gmra.mxu1 %v1248_v56  ;;  %v2993_v45 = vpop.eup %2992  ;;  %v1009_v28 = vadd.f32 1.0, %v2991_v21  ;;  %v1255_v32 = vmul.f32 0.90909094, %v1191_v9  ;;  %2263 = vmatpush2.msra.mxu0 %v2201_v43 }
 0x19e   : > { %1546 = vmatprep.mubr.f32.mxu1 %v1251_v14  ;;  %v2995_v8 = vpop.eup %2994  ;;  %3014 = vrcp.f32 %v1006_v5  ;;  %v1190_v16 = vmul.f32 %v2993_v45, %v4272_v34  ;;  %2264 = vmatprep.subr.mxu0 %v5366_v33  ;;  %v2200_v34 = vld [vmem:[%s5333_s6 + $0xb8] sm:$0xff] }
 0x19f   : > { %v2997_v29 = vpop.eup %2996  ;;  %3016 = vrcp.f32 %v1009_v28  ;;  %v1193_v38 = vmul.f32 %v2995_v8, %v4315_v49  ;;  %2265 = vmatpush2.msra.mxu0 %v2200_v34  ;;  %v2199_v49 = vld [vmem:[%s5333_s6 + $0xb0] sm:$0xff] }
 0x1a0   : > { %v2999_v39 = vpop.eup %2998  ;;  %v1008_v53 = vadd.f32 1.0, %v2997_v29  ;;  %v1254_v58 = vmul.f32 0.90909094, %v1190_v16  ;;  %2266 = vmatprep.subr.mxu0 %v5366_v33 }
 0x1a1   : > { %1547 = vmatmul.mubr.f32.gmra.mxu1 %v1250_v60  ;;  %v3001_v20 = vpop.eup %3000  ;;  %v1011_v37 = vadd.f32 1.0, %v2999_v39  ;;  %v1257_v30 = vmul.f32 0.90909094, %v1193_v38  ;;  %2267 = vmatpush2.msra.mxu0 %v2199_v49 }
 0x1a2   : > { %1552 = vmatprep.mubr.f32.mxu1 %v1253_v26  ;;  %v3003_v42 = vpop.eup %3002  ;;  %3018 = vrcp.f32 %v1008_v53  ;;  %v1192_v59 = vmul.f32 %v3001_v20, %v4300_v6  ;;  %2268 = vmatprep.subr.mxu0 %v5366_v33  ;;  %v2198_v6 = vld [vmem:[%s5333_s6 + $0xa8] sm:$0xff] }
 0x1a3   : > { %v3005_v36 = vpop.eup %3004  ;;  %v1010_v41 = vadd.f32 1.0, %v3003_v42  ;;  %3020 = vrcp.f32 %v1011_v37  ;;  %2269 = vmatpush2.msra.mxu0 %v2198_v6 }
 0x1a4   : > { %v3007_v62 = vpop.eup %3006  ;;  %v1195_v12 = vmul.f32 %v3005_v36, %v4341_v25  ;;  %v1256_v61 = vmul.f32 0.90909094, %v1192_v59  ;;  %2270 = vmatprep.subr.mxu0 %v5366_v33  ;;  %v2197_v25 = vld [vmem:[%s5333_s6 + $0xa0] sm:$0xff] }
 0x1a5   : > { %1553 = vmatmul.mubr.f32.gmra.mxu1 %v1252_v63  ;;  %v3009_v48 = vpop.eup %3008  ;;  %3022 = vrcp.f32 %v1010_v41  ;;  %v1194_v57 = vmul.f32 %v3007_v62, %v4326_v23  ;;  %2271 = vmatpush2.msra.mxu0 %v2197_v25 }
 0x1a6   : > { %1558 = vmatprep.mubr.f32.mxu1 %v1255_v32  ;;  %v3011_v2 = vpop.eup %3010  ;;  %v1259_v15 = vmul.f32 0.90909094, %v1195_v12  ;;  %v1197_v4 = vmul.f32 %v3009_v48, %v4369_v27  ;;  %2272 = vmatprep.subr.mxu0 %v5366_v33  ;;  %v2195_v27 = vld [vmem:[%s5333_s6 + $0x90] sm:$0xff] }
 0x1a7   : > { %2273 = vmatpush2.msra.mxu0 %v2196_v50  ;;  %v1258_v23 = vmul.f32 0.90909094, %v1194_v57  ;;  %v1196_v44 = vmul.f32 %v3011_v2, %v4354_v22 }
 0x1a8   : > { %v3013_v31 = vpop.eup %3012  ;;  %2274 = vmatprep.subr.mxu0 %v5366_v33  ;;  %v1261_v10 = vmul.f32 0.90909094, %v1197_v4 }
 0x1a9   : > { %1559 = vmatmul.mubr.f32.gmra.mxu1 %v1254_v58  ;;  %v1199_v18 = vmul.f32 %v3013_v31, %v4388_v0  ;;  %2275 = vmatpush2.msra.mxu0 %v2195_v27  ;;  %v1260_v22 = vmul.f32 0.90909094, %v1196_v44  ;;  %v2193_v0 = vld [vmem:[%s5333_s6 + $0x80] sm:$0xff] }
 0x1aa   : > { %1564 = vmatprep.mubr.f32.mxu1 %v1257_v30  ;;  %2276 = vmatprep.subr.mxu0 %v5366_v33 }
 0x1ab   : > { %v3015_v1 = vpop.eup %3014  ;;  %2277 = vmatpush2.msra.mxu0 %v2194_v7  ;;  %v1263_v19 = vmul.f32 0.90909094, %v1199_v18 }
 0x1ac   : > { %v3017_v56 = vpop.eup %3016  ;;  %v1198_v3 = vmul.f32 %v3015_v1, %v4382_v55  ;;  %2278 = vmatprep.subr.mxu0 %v5366_v33 }
 0x1ad   : > { %1565 = vmatmul.mubr.f32.gmra.mxu1 %v1256_v61  ;;  %v1201_v14 = vmul.f32 %v3017_v56, %v4408_v35  ;;  %2279 = vmatpush2.msra.mxu0 %v2193_v0 }
 0x1ae   : > { %1570 = vmatprep.mubr.f32.mxu1 %v1259_v15  ;;  %v1262_v21 = vmul.f32 0.90909094, %v1198_v3 }
 0x1af   : > { %v3019_v54 = vpop.eup %3018  ;;  %v1265_v8 = vmul.f32 0.90909094, %v1201_v14 }
 0x1b0   : > { %v3021_v51 = vpop.eup %3020  ;;  %v1200_v52 = vmul.f32 %v3019_v54, %v4404_v24  ;;  %v5371_v24 = vld [vmem:[#allocation11_spill] sm:$0xff] }
 0x1b1   : > { %1571 = vmatmul.mubr.f32.gmra.mxu1 %v1258_v23  ;;  %v1203_v55 = vmul.f32 %v3021_v51, %v4426_v40  ;;  %v5372_v46 = vsub.s32 0, %v5371_v24  ;;  %v5373_v40 = vsub.s32 1, %v5371_v24 }
 0x1b2   : > { %1576 = vmatprep.mubr.f32.mxu1 %v1261_v10  ;;  %v3023_v45 = vpop.eup %3022  ;;  %v1264_v33 = vmul.f32 0.90909094, %v1200_v52 }
 0x1b3   : > { %v1202_v5 = vmul.f32 %v3023_v45, %v4413_v47  ;;  %v1267_v60 = vmul.f32 0.90909094, %v1203_v55  ;;  %v4616_v29 = vrot.slane %v1332_v17, %v5372_v46  ;;  %v4620_v28 = vrot.slane %v1332_v17, %v5373_v40 }
 0x1b5   : > { %1577 = vmatmul.mubr.f32.gmra.mxu1 %v1260_v22  ;;  %v1266_v35 = vmul.f32 0.90909094, %v1202_v5 }
 0x1b6   : > { %1582 = vmatprep.mubr.f32.mxu1 %v1263_v19 }
 0x1b9   : > { %1583 = vmatmul.mubr.f32.gmra.mxu1 %v1262_v21 }
 0x1ba   : > { %1588 = vmatprep.mubr.f32.mxu1 %v1265_v8 }
 0x1bd   : > { %1589 = vmatmul.mubr.f32.gmra.mxu1 %v1264_v33 }
 0x1be   : > { %1594 = vmatprep.mubr.f32.mxu1 %v1267_v60 }
 0x1c1   : > { %1595 = vmatmul.mubr.f32.gmra.mxu1 %v1266_v35 }
 0x1ee   : > { %v1410_v26 = vpop.f32.mrf.mxu1 }
 0x1ef   : > { %v4623_v47 = vadd.f32 %v1410_v26, %v4616_v29 }
 0x1f0   : > { %v1412_v9 = vpop.f32.mrf.mxu1 }
 0x1f1   : > { %1601 = vst [vmem:[%s4627_s11] sm:$0xff] %v4623_v47  ;;  %v1665_v39 = vmul.f32 %v4623_v47, %v3906_v11  ;;  %v4634_v13 = vadd.f32 %v1412_v9, %v4620_v28 }
 0x1f2   : > { %v1416_v20 = vpop.f32.mrf.mxu1 }
 0x1f3   : > { %v1729_v53 = vmul.f32 1.442695, %v1665_v39  ;;  %1602 = vst [vmem:[%s4627_s11 + $0x8] sm:$0xff] %v4634_v13  ;;  %v1666_v63 = vmul.f32 %v4634_v13, %v3906_v11  ;;  %v4641_v16 = vadd.f32 %v1416_v20, %v4616_v29 }
 0x1f4   : > { %v1418_v43 = vpop.f32.mrf.mxu1 }
 0x1f5   : > { %3024 = vpow2.f32 %v1729_v53  ;;  %v1731_v42 = vmul.f32 1.442695, %v1666_v63  ;;  %1603 = vst [vmem:[%s4627_s11 + $0x10] sm:$0xff] %v4641_v16  ;;  %v1667_v37 = vmul.f32 %v4641_v16, %v3906_v11  ;;  %v4648_v32 = vadd.f32 %v1418_v43, %v4620_v28 }
 0x1f7   : > { %3026 = vpow2.f32 %v1731_v42  ;;  %v1733_v38 = vmul.f32 1.442695, %v1667_v37  ;;  %1604 = vst [vmem:[%s4627_s11 + $0x18] sm:$0xff] %v4648_v32  ;;  %v1668_v36 = vmul.f32 %v4648_v32, %v3906_v11  ;;  %v1422_v41 = vpop.f32.mrf.mxu1 }
 0x1f8   : > { %v4655_v58 = vadd.f32 %v1422_v41, %v4616_v29 }
 0x1f9   : > { %3028 = vpow2.f32 %v1733_v38  ;;  %v1735_v34 = vmul.f32 1.442695, %v1668_v36  ;;  %v1424_v59 = vpop.f32.mrf.mxu1 }
 0x1fa   : > { %1605 = vst [vmem:[%s4627_s11 + $0x20] sm:$0xff] %v4655_v58  ;;  %v1669_v49 = vmul.f32 %v4655_v58, %v3906_v11  ;;  %v4662_v62 = vadd.f32 %v1424_v59, %v4620_v28 }
 0x1fb   : > { %3030 = vpow2.f32 %v1735_v34 }
 0x1fc   : > { %v1737_v30 = vmul.f32 1.442695, %v1669_v49  ;;  %1606 = vst [vmem:[%s4627_s11 + $0x28] sm:$0xff] %v4662_v62  ;;  %v1670_v12 = vmul.f32 %v4662_v62, %v3906_v11  ;;  %v1428_v6 = vpop.f32.mrf.mxu1 }
 0x1fd   : > { %v4669_v61 = vadd.f32 %v1428_v6, %v4616_v29 }
 0x1fe   : > { %3032 = vpow2.f32 %v1737_v30  ;;  %v1739_v48 = vmul.f32 1.442695, %v1670_v12  ;;  %v1430_v25 = vpop.f32.mrf.mxu1 }
 0x1ff   : > { %1607 = vst [vmem:[%s4627_s11 + $0x30] sm:$0xff] %v4669_v61  ;;  %v1671_v15 = vmul.f32 %v4669_v61, %v3906_v11  ;;  %v4676_v4 = vadd.f32 %v1430_v25, %v4620_v28 }
 0x200   : > { %3034 = vpow2.f32 %v1739_v48 }
 0x201   : > { %v1741_v23 = vmul.f32 1.442695, %v1671_v15  ;;  %1608 = vst [vmem:[%s4627_s11 + $0x38] sm:$0xff] %v4676_v4  ;;  %v1672_v44 = vmul.f32 %v4676_v4, %v3906_v11 }
 0x202   : > { %v3025_v57 = vpop.eup %3024  ;;  %v1434_v27 = vpop.f32.mrf.mxu1 }
 0x203   : > { %v1857_v2 = vadd.f32 1.0, %v3025_v57  ;;  %v4683_v10 = vadd.f32 %v1434_v27, %v4616_v29  ;;  %v1743_v56 = vmul.f32 1.442695, %v1672_v44 }
 0x204   : > { %v3027_v31 = vpop.eup %3026  ;;  %v1436_v7 = vpop.f32.mrf.mxu1 }
 0x205   : > { %3036 = vrcp.f32 %v1857_v2  ;;  %v1858_v50 = vadd.f32 1.0, %v3027_v31  ;;  %1609 = vst [vmem:[%s4627_s11 + $0x40] sm:$0xff] %v4683_v10  ;;  %v1673_v3 = vmul.f32 %v4683_v10, %v3906_v11  ;;  %v4690_v0 = vadd.f32 %v1436_v7, %v4620_v28 }
 0x206   : > { %v3029_v1 = vpop.eup %3028  ;;  %v1440_v51 = vpop.f32.mrf.mxu1 }
 0x207   : > { %3038 = vrcp.f32 %v1858_v50  ;;  %v1859_v18 = vadd.f32 1.0, %v3029_v1  ;;  %v1745_v19 = vmul.f32 1.442695, %v1673_v3  ;;  %1610 = vst [vmem:[%s4627_s11 + $0x48] sm:$0xff] %v4690_v0  ;;  %v1674_v14 = vmul.f32 %v4690_v0, %v3906_v11 }
 0x208   : > { %v3031_v22 = vpop.eup %3030  ;;  %3040 = vpow2.f32 %v1741_v23  ;;  %v4697_v52 = vadd.f32 %v1440_v51, %v4616_v29  ;;  %v1442_v8 = vpop.f32.mrf.mxu1 }
 0x209   : > { %3042 = vrcp.f32 %v1859_v18  ;;  %v1860_v54 = vadd.f32 1.0, %v3031_v22  ;;  %v1747_v21 = vmul.f32 1.442695, %v1674_v14  ;;  %v4704_v5 = vadd.f32 %v1442_v8, %v4620_v28 }
 0x20a   : > { %3044 = vpow2.f32 %v1743_v56  ;;  %1611 = vst [vmem:[%s4627_s11 + $0x50] sm:$0xff] %v4697_v52  ;;  %v1675_v33 = vmul.f32 %v4697_v52, %v3906_v11  ;;  %v1446_v35 = vpop.f32.mrf.mxu1 }
 0x20b   : > { %3046 = vrcp.f32 %v1860_v54  ;;  %v3033_v45 = vpop.eup %3032  ;;  %1612 = vst [vmem:[%s4627_s11 + $0x58] sm:$0xff] %v4704_v5  ;;  %v1676_v46 = vmul.f32 %v4704_v5, %v3906_v11  ;;  %v4711_v40 = vadd.f32 %v1446_v35, %v4616_v29 }
 0x20c   : > { %3048 = vpow2.f32 %v1745_v19  ;;  %v1861_v55 = vadd.f32 1.0, %v3033_v45  ;;  %v1749_v24 = vmul.f32 1.442695, %v1675_v33  ;;  %v1448_v26 = vpop.f32.mrf.mxu1 }
 0x20d   : > { %3050 = vpow2.f32 %v1747_v21  ;;  %v3035_v60 = vpop.eup %3034  ;;  %v1751_v39 = vmul.f32 1.442695, %v1676_v46  ;;  %v4714_v20 = vadd.f32 %v1448_v26, %v4620_v28  ;;  %1613 = vst [vmem:[%s4627_s11 + $0x60] sm:$0xff] %v4711_v40  ;;  %v1677_v63 = vmul.f32 %v4711_v40, %v3906_v11 }
 0x20e   : > { %3052 = vrcp.f32 %v1861_v55  ;;  %v1862_v17 = vadd.f32 1.0, %v3035_v60  ;;  %v1452_v43 = vpop.f32.mrf.mxu1 }
 0x20f   : > { %1614 = vst [vmem:[%s4627_s11 + $0x68] sm:$0xff] %v4714_v20  ;;  %v1678_v37 = vmul.f32 %v4714_v20, %v3906_v11  ;;  %v4726_v38 = vadd.f32 %v1452_v43, %v4616_v29 }
 0x210   : > { %3054 = vrcp.f32 %v1862_v17  ;;  %v1454_v34 = vpop.f32.mrf.mxu1 }
 0x211   : > { %3056 = vpow2.f32 %v1749_v24  ;;  %v1755_v30 = vmul.f32 1.442695, %v1678_v37  ;;  %1615 = vst [vmem:[%s4627_s11 + $0x70] sm:$0xff] %v4726_v38  ;;  %v1679_v12 = vmul.f32 %v4726_v38, %v3906_v11  ;;  %v4734_v48 = vadd.f32 %v1454_v34, %v4620_v28 }
 0x212   : > { %v3037_v9 = vpop.eup %3036  ;;  %3058 = vpow2.f32 %v1751_v39  ;;  %v1458_v25 = vpop.f32.mrf.mxu1 }
 0x213   : > { %v2049_v53 = vmul.f32 %v3037_v9, %v4623_v47  ;;  %v1753_v47 = vmul.f32 1.442695, %v1677_v63  ;;  %v1757_v50 = vmul.f32 1.442695, %v1679_v12  ;;  %1616 = vst [vmem:[%s4627_s11 + $0x78] sm:$0xff] %v4734_v48  ;;  %v1680_v23 = vmul.f32 %v4734_v48, %v3906_v11 }
 0x214   : > { %v3039_v42 = vpop.eup %3038  ;;  %v4742_v27 = vadd.f32 %v1458_v25, %v4616_v29  ;;  %v1460_v1 = vpop.f32.mrf.mxu1 }
 0x215   : > { %v3041_v36 = vpop.eup %3040  ;;  %v2050_v41 = vmul.f32 %v3039_v42, %v4634_v13  ;;  %v2113_v57 = vmul.f32 0.90909094, %v2049_v53  ;;  %3060 = vpow2.f32 %v1753_v47  ;;  %v1759_v56 = vmul.f32 1.442695, %v1680_v23 }
 0x216   : > { %v3043_v59 = vpop.eup %3042  ;;  %v1863_v49 = vadd.f32 1.0, %v3041_v36  ;;  %v4746_v7 = vadd.f32 %v1460_v1, %v4620_v28  ;;  %1617 = vst [vmem:[%s4627_s11 + $0x80] sm:$0xff] %v4742_v27  ;;  %v1681_v3 = vmul.f32 %v4742_v27, %v3906_v11  ;;  %v1464_v14 = vpop.f32.mrf.mxu1 }
 0x217   : > { %v3045_v6 = vpop.eup %3044  ;;  %v2114_v2 = vmul.f32 0.90909094, %v2050_v41  ;;  %v2051_v15 = vmul.f32 %v3043_v59, %v4641_v16  ;;  %v4757_v8 = vadd.f32 %v1464_v14, %v4616_v29 }
 0x218   : > { %v3047_v13 = vpop.eup %3046  ;;  %3062 = vrcp.f32 %v1863_v49  ;;  %v1864_v31 = vadd.f32 1.0, %v3045_v6  ;;  %1618 = vst [vmem:[%s4627_s11 + $0x88] sm:$0xff] %v4746_v7  ;;  %v1761_v45 = vmul.f32 1.442695, %v1681_v3  ;;  %v1466_v33 = vpop.f32.mrf.mxu1 }
 0x219   : > { %v3049_v44 = vpop.eup %3048  ;;  %3064 = vpow2.f32 %v1755_v30  ;;  %2280 = vmatprep.mubr.f32.mxu0 %v2114_v2  ;;  %v2052_v16 = vmul.f32 %v3047_v13, %v4648_v32  ;;  %v1682_v32 = vmul.f32 %v4746_v7, %v3906_v11  ;;  %v2115_v51 = vmul.f32 0.90909094, %v2051_v15  ;;  %1619 = vst [vmem:[%s4627_s11 + $0x90] sm:$0xff] %v4757_v8 }
 0x21a   : > { %3066 = vrcp.f32 %v1864_v31  ;;  %v1865_v18 = vadd.f32 1.0, %v3049_v44  ;;  %2281 = vmatmul.mubr.f32.vlgmr.msra.gmra.mxu0 %v2113_v57  ;;  %v3051_v22 = vpop.eup %3050  ;;  %v1683_v17 = vmul.f32 %v4757_v8, %v3906_v11  ;;  %v4765_v24 = vadd.f32 %v1466_v33, %v4620_v28 }
 0x21b   : > { %3068 = vpow2.f32 %v1757_v50  ;;  %v2116_v54 = vmul.f32 0.90909094, %v2052_v16  ;;  %v1866_v19 = vadd.f32 1.0, %v3051_v22  ;;  %v3053_v21 = vpop.eup %3052  ;;  %v1763_v55 = vmul.f32 1.442695, %v1682_v32 }
 0x21c   : > { %3070 = vrcp.f32 %v1865_v18  ;;  %v2053_v60 = vmul.f32 %v3053_v21, %v4655_v58  ;;  %v1470_v26 = vpop.f32.mrf.mxu1  ;;  %v1765_v63 = vmul.f32 1.442695, %v1683_v17  ;;  %1620 = vst [vmem:[%s4627_s11 + $0x98] sm:$0xff] %v4765_v24  ;;  %v1684_v58 = vmul.f32 %v4765_v24, %v3906_v11 }
 0x21d   : > { %3072 = vpow2.f32 %v1759_v56  ;;  %2285 = vmatprep.mubr.f32.mxu0 %v2116_v54  ;;  %v3055_v35 = vpop.eup %3054  ;;  %v4773_v43 = vadd.f32 %v1470_v26, %v4616_v29 }
 0x21e   : > { %3074 = vrcp.f32 %v1866_v19  ;;  %2286 = vmatmul.mubr.f32.gmra.mxu0 %v2115_v51  ;;  %v3057_v46 = vpop.eup %3056  ;;  %v2054_v9 = vmul.f32 %v3055_v35, %v4662_v62  ;;  %v1472_v37 = vpop.f32.mrf.mxu1  ;;  %v2117_v47 = vmul.f32 0.90909094, %v2053_v60  ;;  %v1767_v34 = vmul.f32 1.442695, %v1684_v58 }
 0x21f   : > { %3076 = vpow2.f32 %v1761_v45  ;;  %v3059_v39 = vpop.eup %3058  ;;  %v1867_v53 = vadd.f32 1.0, %v3057_v46  ;;  %1621 = vst [vmem:[%s4627_s11 + $0xa0] sm:$0xff] %v4773_v43  ;;  %v1685_v62 = vmul.f32 %v4773_v43, %v3906_v11  ;;  %v4780_v41 = vadd.f32 %v1472_v37, %v4620_v28 }
 0x220   : > { %3078 = vpow2.f32 %v1763_v55  ;;  %v1868_v42 = vadd.f32 1.0, %v3059_v39  ;;  %v2118_v36 = vmul.f32 0.90909094, %v2054_v9 }
 0x221   : > { %3080 = vrcp.f32 %v1867_v53  ;;  %v1769_v12 = vmul.f32 1.442695, %v1685_v62  ;;  %1622 = vst [vmem:[%s4627_s11 + $0xa8] sm:$0xff] %v4780_v41  ;;  %v1686_v6 = vmul.f32 %v4780_v41, %v3906_v11 }
 0x222   : > { %v3061_v59 = vpop.eup %3060  ;;  %3082 = vrcp.f32 %v1868_v42  ;;  %2290 = vmatprep.mubr.f32.mxu0 %v2118_v36  ;;  %v1476_v57 = vpop.f32.mrf.mxu1 }
 0x223   : > { %v1869_v30 = vadd.f32 1.0, %v3061_v59  ;;  %3084 = vpow2.f32 %v1765_v63  ;;  %2291 = vmatmul.mubr.f32.gmra.mxu0 %v2117_v47  ;;  %v4787_v2 = vadd.f32 %v1476_v57, %v4616_v29  ;;  %v1771_v31 = vmul.f32 1.442695, %v1686_v6 }
 0x224   : > { %3086 = vpow2.f32 %v1767_v34  ;;  %v1478_v50 = vpop.f32.mrf.mxu1 }
 0x225   : > { %v3063_v49 = vpop.eup %3062  ;;  %3088 = vrcp.f32 %v1869_v30  ;;  %1623 = vst [vmem:[%s4627_s11 + $0xb0] sm:$0xff] %v4787_v2  ;;  %v1687_v1 = vmul.f32 %v4787_v2, %v3906_v11  ;;  %v4795_v16 = vadd.f32 %v1478_v50, %v4620_v28 }
 0x226   : > { %v3065_v25 = vpop.eup %3064  ;;  %v2055_v23 = vmul.f32 %v3063_v49, %v4669_v61  ;;  %3090 = vpow2.f32 %v1769_v12 }
 0x227   : > { %v3067_v15 = vpop.eup %3066  ;;  %v1870_v13 = vadd.f32 1.0, %v3065_v25  ;;  %v1773_v54 = vmul.f32 1.442695, %v1687_v1  ;;  %1624 = vst [vmem:[%s4627_s11 + $0xb8] sm:$0xff] %v4795_v16  ;;  %v1688_v61 = vmul.f32 %v4795_v16, %v3906_v11 }
 0x228   : > { %v3069_v44 = vpop.eup %3068  ;;  %v2056_v18 = vmul.f32 %v3067_v15, %v4676_v4  ;;  %v1482_v51 = vpop.f32.mrf.mxu1  ;;  %v2119_v21 = vmul.f32 0.90909094, %v2055_v23 }
 0x229   : > { %v3071_v56 = vpop.eup %3070  ;;  %3092 = vrcp.f32 %v1870_v13  ;;  %v1871_v22 = vadd.f32 1.0, %v3069_v44  ;;  %v1775_v55 = vmul.f32 1.442695, %v1688_v61  ;;  %v4804_v33 = vadd.f32 %v1482_v51, %v4616_v29 }
 0x22a   : > { %v3073_v3 = vpop.eup %3072  ;;  %3094 = vpow2.f32 %v1771_v31  ;;  %v2120_v19 = vmul.f32 0.90909094, %v2056_v18  ;;  %v2057_v4 = vmul.f32 %v3071_v56, %v4683_v10  ;;  %v1484_v46 = vpop.f32.mrf.mxu1 }
 0x22b   : > { %v3075_v32 = vpop.eup %3074  ;;  %3096 = vrcp.f32 %v1871_v22  ;;  %v1872_v14 = vadd.f32 1.0, %v3073_v3  ;;  %1625 = vst [vmem:[%s4627_s11 + $0xc0] sm:$0xff] %v4804_v33  ;;  %v1689_v10 = vmul.f32 %v4804_v33, %v3906_v11  ;;  %v4812_v9 = vadd.f32 %v1484_v46, %v4620_v28 }
 0x22c   : > { %v3077_v45 = vpop.eup %3076  ;;  %3098 = vpow2.f32 %v1773_v54  ;;  %2295 = vmatprep.mubr.f32.mxu0 %v2120_v19  ;;  %v2058_v60 = vmul.f32 %v3075_v32, %v4690_v0  ;;  %v2121_v58 = vmul.f32 0.90909094, %v2057_v4 }
 0x22d   : > { %v3079_v35 = vpop.eup %3078  ;;  %3100 = vrcp.f32 %v1872_v14  ;;  %v1873_v17 = vadd.f32 1.0, %v3077_v45  ;;  %2296 = vmatmul.mubr.f32.gmra.mxu0 %v2119_v21  ;;  %v1777_v0 = vmul.f32 1.442695, %v1689_v10  ;;  %1626 = vst [vmem:[%s4627_s11 + $0xc8] sm:$0xff] %v4812_v9  ;;  %v1690_v63 = vmul.f32 %v4812_v9, %v3906_v11 }
 0x22e   : > { %v1874_v26 = vadd.f32 1.0, %v3079_v35  ;;  %3102 = vpow2.f32 %v1775_v55  ;;  %v2122_v39 = vmul.f32 0.90909094, %v2058_v60  ;;  %v3081_v53 = vpop.eup %3080 }
 0x22f   : > { %3104 = vrcp.f32 %v1873_v17  ;;  %v3083_v42 = vpop.eup %3082  ;;  %v2059_v37 = vmul.f32 %v3081_v53, %v4697_v52  ;;  %v1779_v47 = vmul.f32 1.442695, %v1690_v63  ;;  %v1488_v49 = vpop.f32.mrf.mxu1 }
 0x230   : > { %3106 = vrcp.f32 %v1874_v26  ;;  %2300 = vmatprep.mubr.f32.mxu0 %v2122_v39  ;;  %v3085_v36 = vpop.eup %3084  ;;  %v2060_v34 = vmul.f32 %v3083_v42, %v4704_v5  ;;  %v4821_v6 = vadd.f32 %v1488_v49, %v4616_v29 }
 0x231   : > { %3108 = vpow2.f32 %v1777_v0  ;;  %2301 = vmatmul.mubr.f32.gmra.mxu0 %v2121_v58  ;;  %v3087_v62 = vpop.eup %3086  ;;  %v1875_v59 = vadd.f32 1.0, %v3085_v36  ;;  %v1490_v52 = vpop.f32.mrf.mxu1  ;;  %v2123_v15 = vmul.f32 0.90909094, %v2059_v37 }
 0x232   : > { %v3089_v30 = vpop.eup %3088  ;;  %v1876_v12 = vadd.f32 1.0, %v3087_v62  ;;  %3110 = vpow2.f32 %v1779_v47  ;;  %v2124_v57 = vmul.f32 0.90909094, %v2060_v34  ;;  %1627 = vst [vmem:[%s4627_s11 + $0xd0] sm:$0xff] %v4821_v6  ;;  %v1691_v50 = vmul.f32 %v4821_v6, %v3906_v11 }
 0x233   : > { %v3091_v25 = vpop.eup %3090  ;;  %3112 = vrcp.f32 %v1875_v59  ;;  %v2061_v13 = vmul.f32 %v3089_v30, %v4711_v40  ;;  %v4829_v23 = vadd.f32 %v1490_v52, %v4620_v28 }
 0x234   : > { %3114 = vrcp.f32 %v1876_v12  ;;  %v1877_v5 = vadd.f32 1.0, %v3091_v25  ;;  %2305 = vmatprep.mubr.f32.mxu0 %v2124_v57  ;;  %v1781_v40 = vmul.f32 1.442695, %v1691_v50 }
 0x235   : > { %2306 = vmatmul.mubr.f32.gmra.mxu0 %v2123_v15  ;;  %1628 = vst [vmem:[%s4627_s11 + $0xd8] sm:$0xff] %v4829_v23  ;;  %v1692_v22 = vmul.f32 %v4829_v23, %v3906_v11  ;;  %v2125_v61 = vmul.f32 0.90909094, %v2061_v13 }
 0x236   : > { %v3093_v31 = vpop.eup %3092  ;;  %3116 = vrcp.f32 %v1877_v5 }
 0x237   : > { %v3095_v44 = vpop.eup %3094  ;;  %v2062_v1 = vmul.f32 %v3093_v31, %v4714_v20  ;;  %v1783_v14 = vmul.f32 1.442695, %v1692_v22 }
 0x238   : > { %v3097_v18 = vpop.eup %3096  ;;  %v1878_v56 = vadd.f32 1.0, %v3095_v44 }
 0x239   : > { %v3099_v3 = vpop.eup %3098  ;;  %v2126_v54 = vmul.f32 0.90909094, %v2062_v1  ;;  %v2063_v51 = vmul.f32 %v3097_v18, %v4726_v38 }
 0x23a   : > { %v3101_v19 = vpop.eup %3100  ;;  %3118 = vrcp.f32 %v1878_v56  ;;  %v1879_v32 = vadd.f32 1.0, %v3099_v3 }
 0x23b   : > { %v3103_v21 = vpop.eup %3102  ;;  %3120 = vpow2.f32 %v1781_v40  ;;  %2310 = vmatprep.mubr.f32.mxu0 %v2126_v54  ;;  %v2064_v20 = vmul.f32 %v3101_v19, %v4734_v48  ;;  %v2127_v35 = vmul.f32 0.90909094, %v2063_v51  ;;  %v1494_v10 = vpop.f32.mrf.mxu1 }
 0x23c   : > { %v3105_v4 = vpop.eup %3104  ;;  %3122 = vrcp.f32 %v1879_v32  ;;  %v1880_v45 = vadd.f32 1.0, %v3103_v21  ;;  %2311 = vmatmul.mubr.f32.gmra.mxu0 %v2125_v61  ;;  %v4841_v53 = vadd.f32 %v1494_v10, %v4616_v29 }
 0x23d   : > { %v3107_v55 = vpop.eup %3106  ;;  %3124 = vpow2.f32 %v1783_v14  ;;  %v2128_v60 = vmul.f32 0.90909094, %v2064_v20  ;;  %v2065_v46 = vmul.f32 %v3105_v4, %v4742_v27  ;;  %v1496_v58 = vpop.f32.mrf.mxu1 }
 0x23e   : > { %3126 = vrcp.f32 %v1880_v45  ;;  %v2066_v17 = vmul.f32 %v3107_v55, %v4746_v7  ;;  %v3109_v38 = vpop.eup %3108  ;;  %1629 = vst [vmem:[%s4627_s11 + $0xe0] sm:$0xff] %v4841_v53  ;;  %v1693_v27 = vmul.f32 %v4841_v53, %v3906_v11  ;;  %v4848_v37 = vadd.f32 %v1496_v58, %v4620_v28 }
 0x23f   : > { %2315 = vmatprep.mubr.f32.mxu0 %v2128_v60  ;;  %v1881_v26 = vadd.f32 1.0, %v3109_v38  ;;  %v3111_v39 = vpop.eup %3110  ;;  %v2129_v7 = vmul.f32 0.90909094, %v2065_v46 }
 0x240   : > { %2316 = vmatmul.mubr.f32.gmra.mxu0 %v2127_v35  ;;  %v2130_v48 = vmul.f32 0.90909094, %v2066_v17  ;;  %v3113_v0 = vpop.eup %3112  ;;  %v1882_v63 = vadd.f32 1.0, %v3111_v39  ;;  %v1785_v62 = vmul.f32 1.442695, %v1693_v27  ;;  %1630 = vst [vmem:[%s4627_s11 + $0xe8] sm:$0xff] %v4848_v37  ;;  %v1694_v59 = vmul.f32 %v4848_v37, %v3906_v11 }
 0x241   : > { %3128 = vrcp.f32 %v1881_v26  ;;  %v3115_v42 = vpop.eup %3114  ;;  %v2067_v36 = vmul.f32 %v3113_v0, %v4757_v8  ;;  %v1500_v49 = vpop.f32.mrf.mxu1 }
 0x242   : > { %2320 = vmatprep.mubr.f32.mxu0 %v2130_v48  ;;  %3130 = vrcp.f32 %v1882_v63  ;;  %v2068_v47 = vmul.f32 %v3115_v42, %v4765_v24  ;;  %v4857_v30 = vadd.f32 %v1500_v49, %v4616_v29  ;;  %v1787_v8 = vmul.f32 1.442695, %v1694_v59 }
 0x243   : > { %v3117_v34 = vpop.eup %3116  ;;  %3132 = vpow2.f32 %v1785_v62  ;;  %v1502_v25 = vpop.f32.mrf.mxu1  ;;  %v2131_v52 = vmul.f32 0.90909094, %v2067_v36 }
 0x244   : > { %2321 = vmatmul.mubr.f32.gmra.mxu0 %v2129_v7  ;;  %v2132_v12 = vmul.f32 0.90909094, %v2068_v47  ;;  %v2069_v24 = vmul.f32 %v3117_v34, %v4773_v43  ;;  %1631 = vst [vmem:[%s4627_s11 + $0xf0] sm:$0xff] %v4857_v30  ;;  %v1695_v13 = vmul.f32 %v4857_v30, %v3906_v11  ;;  %v4865_v31 = vadd.f32 %v1502_v25, %v4620_v28 }
 0x245   : > { %3134 = vpow2.f32 %v1787_v8  ;;  %v1506_v1 = vpop.f32.mrf.mxu1 }
 0x246   : > { %2325 = vmatprep.mubr.f32.mxu0 %v2132_v12  ;;  %v1789_v43 = vmul.f32 1.442695, %v1695_v13  ;;  %1632 = vst [vmem:[%s4627_s11 + $0xf8] sm:$0xff] %v4865_v31  ;;  %v1696_v56 = vmul.f32 %v4865_v31, %v3906_v11  ;;  %v4873_v40 = vadd.f32 %v1506_v1, %v4616_v29  ;;  %v2133_v61 = vmul.f32 0.90909094, %v2069_v24 }
 0x247   : > { %v3119_v57 = vpop.eup %3118  ;;  %v1508_v54 = vpop.f32.mrf.mxu1 }
 0x248   : > { %v3121_v15 = vpop.eup %3120  ;;  %v2070_v5 = vmul.f32 %v3119_v57, %v4780_v41  ;;  %2326 = vmatmul.mubr.f32.gmra.mxu0 %v2131_v52  ;;  %v1791_v32 = vmul.f32 1.442695, %v1696_v56  ;;  %1633 = vst [vmem:[%s4627_s11 + $0x100] sm:$0xff] %v4873_v40  ;;  %v1697_v14 = vmul.f32 %v4873_v40, %v3906_v11  ;;  %v4881_v51 = vadd.f32 %v1508_v54, %v4620_v28 }
 0x249   : > { %v3123_v50 = vpop.eup %3122  ;;  %v1883_v44 = vadd.f32 1.0, %v3121_v15  ;;  %v1512_v21 = vpop.f32.mrf.mxu1 }
 0x24a   : > { %v3125_v18 = vpop.eup %3124  ;;  %v2134_v22 = vmul.f32 0.90909094, %v2070_v5  ;;  %v2071_v19 = vmul.f32 %v3123_v50, %v4787_v2  ;;  %v1793_v4 = vmul.f32 1.442695, %v1697_v14  ;;  %1634 = vst [vmem:[%s4627_s11 + $0x108] sm:$0xff] %v4881_v51  ;;  %v1698_v2 = vmul.f32 %v4881_v51, %v3906_v11 }
 0x24b   : > { %v3127_v3 = vpop.eup %3126  ;;  %3136 = vrcp.f32 %v1883_v44  ;;  %v1884_v41 = vadd.f32 1.0, %v3125_v18  ;;  %v4889_v45 = vadd.f32 %v1512_v21, %v4616_v29  ;;  %v1514_v60 = vpop.f32.mrf.mxu1 }
 0x24c   : > { %3138 = vpow2.f32 %v1789_v43  ;;  %2330 = vmatprep.mubr.f32.mxu0 %v2134_v22  ;;  %v2072_v20 = vmul.f32 %v3127_v3, %v4795_v16  ;;  %v2135_v17 = vmul.f32 0.90909094, %v2071_v19  ;;  %v1795_v46 = vmul.f32 1.442695, %v1698_v2 }
 0x24d   : > { %3140 = vrcp.f32 %v1884_v41  ;;  %2331 = vmatmul.mubr.f32.gmra.mxu0 %v2133_v61  ;;  %1635 = vst [vmem:[%s4627_s11 + $0x110] sm:$0xff] %v4889_v45  ;;  %v1699_v16 = vmul.f32 %v4889_v45, %v3906_v11  ;;  %v4896_v38 = vadd.f32 %v1514_v60, %v4620_v28  ;;  %v1518_v10 = vpop.f32.mrf.mxu1 }
 0x24e   : > { %3142 = vpow2.f32 %v1791_v32  ;;  %v3129_v55 = vpop.eup %3128  ;;  %v2136_v35 = vmul.f32 0.90909094, %v2072_v20  ;;  %v4904_v63 = vadd.f32 %v1518_v10, %v4616_v29 }
 0x24f   : > { %3144 = vpow2.f32 %v1793_v4  ;;  %v3131_v26 = vpop.eup %3130  ;;  %v2073_v48 = vmul.f32 %v3129_v55, %v4804_v33  ;;  %v1797_v39 = vmul.f32 1.442695, %v1699_v16  ;;  %1636 = vst [vmem:[%s4627_s11 + $0x118] sm:$0xff] %v4896_v38  ;;  %v1700_v0 = vmul.f32 %v4896_v38, %v3906_v11  ;;  %v1520_v58 = vpop.f32.mrf.mxu1 }
 0x250   : > { %2335 = vmatprep.mubr.f32.mxu0 %v2136_v35  ;;  %3146 = vpow2.f32 %v1795_v46  ;;  %v2074_v7 = vmul.f32 %v3131_v26, %v4812_v9  ;;  %v3133_v42 = vpop.eup %3132  ;;  %1637 = vst [vmem:[%s4627_s11 + $0x120] sm:$0xff] %v4904_v63  ;;  %v1701_v33 = vmul.f32 %v4904_v63, %v3906_v11  ;;  %v4912_v36 = vadd.f32 %v1520_v58, %v4620_v28 }
 0x251   : > { %2336 = vmatmul.mubr.f32.gmra.mxu0 %v2135_v17  ;;  %3148 = vpow2.f32 %v1797_v39  ;;  %v1799_v27 = vmul.f32 1.442695, %v1700_v0  ;;  %v1885_v47 = vadd.f32 1.0, %v3133_v42  ;;  %v1524_v34 = vpop.f32.mrf.mxu1  ;;  %v2137_v59 = vmul.f32 0.90909094, %v2073_v48 }
 0x252   : > { %v2138_v62 = vmul.f32 0.90909094, %v2074_v7  ;;  %v3135_v49 = vpop.eup %3134  ;;  %v1801_v12 = vmul.f32 1.442695, %v1701_v33  ;;  %1638 = vst [vmem:[%s4627_s11 + $0x128] sm:$0xff] %v4912_v36  ;;  %v1702_v9 = vmul.f32 %v4912_v36, %v3906_v11  ;;  %v4919_v57 = vadd.f32 %v1524_v34, %v4616_v29 }
 0x253   : > { %3150 = vpow2.f32 %v1799_v27  ;;  %v1886_v8 = vadd.f32 1.0, %v3135_v49  ;;  %v1526_v25 = vpop.f32.mrf.mxu1 }
 0x254   : > { %3152 = vrcp.f32 %v1885_v47  ;;  %2340 = vmatprep.mubr.f32.mxu0 %v2138_v62  ;;  %v1803_v24 = vmul.f32 1.442695, %v1702_v9  ;;  %1639 = vst [vmem:[%s4627_s11 + $0x130] sm:$0xff] %v4919_v57  ;;  %v1703_v15 = vmul.f32 %v4919_v57, %v3906_v11  ;;  %v4926_v13 = vadd.f32 %v1526_v25, %v4620_v28 }
 0x255   : > { %3154 = vpow2.f32 %v1801_v12  ;;  %2341 = vmatmul.mubr.f32.gmra.mxu0 %v2137_v59  ;;  %v1530_v50 = vpop.f32.mrf.mxu1 }
 0x256   : > { %3156 = vrcp.f32 %v1886_v8  ;;  %v1805_v43 = vmul.f32 1.442695, %v1703_v15  ;;  %1640 = vst [vmem:[%s4627_s11 + $0x138] sm:$0xff] %v4926_v13  ;;  %v1704_v56 = vmul.f32 %v4926_v13, %v3906_v11  ;;  %v4934_v3 = vadd.f32 %v1530_v50, %v4616_v29 }
 0x257   : > { %3158 = vpow2.f32 %v1803_v24  ;;  %v1532_v41 = vpop.f32.mrf.mxu1 }
 0x258   : > { %v3137_v52 = vpop.eup %3136  ;;  %v1807_v61 = vmul.f32 1.442695, %v1704_v56  ;;  %v4938_v19 = vadd.f32 %v1532_v41, %v4620_v28  ;;  %1641 = vst [vmem:[%s4627_s11 + $0x140] sm:$0xff] %v4934_v3  ;;  %v1705_v14 = vmul.f32 %v4934_v3, %v3906_v11 }
 0x259   : > { %v3139_v5 = vpop.eup %3138  ;;  %v2075_v44 = vmul.f32 %v3137_v52, %v4821_v6  ;;  %v1536_v21 = vpop.f32.mrf.mxu1 }
 0x25a   : > { %v3141_v1 = vpop.eup %3140  ;;  %v1887_v18 = vadd.f32 1.0, %v3139_v5  ;;  %1642 = vst [vmem:[%s4627_s11 + $0x148] sm:$0xff] %v4938_v19  ;;  %v4949_v55 = vadd.f32 %v1536_v21, %v4616_v29  ;;  %v1809_v35 = vmul.f32 1.442695, %v1705_v14 }
 0x25b   : > { %v3143_v22 = vpop.eup %3142  ;;  %v2076_v54 = vmul.f32 %v3141_v1, %v4829_v23  ;;  %v2139_v4 = vmul.f32 0.90909094, %v2075_v44  ;;  %v1706_v23 = vmul.f32 %v4938_v19, %v3906_v11  ;;  %v1538_v17 = vpop.f32.mrf.mxu1 }
 0x25c   : > { %3160 = vrcp.f32 %v1887_v18  ;;  %v1888_v6 = vadd.f32 1.0, %v3143_v22  ;;  %v3145_v32 = vpop.eup %3144  ;;  %1643 = vst [vmem:[%s4627_s11 + $0x150] sm:$0xff] %v4949_v55  ;;  %v1707_v26 = vmul.f32 %v4949_v55, %v3906_v11  ;;  %v4956_v48 = vadd.f32 %v1538_v17, %v4620_v28 }
 0x25d   : > { %3162 = vpow2.f32 %v1805_v43  ;;  %v2140_v20 = vmul.f32 0.90909094, %v2076_v54  ;;  %v1889_v2 = vadd.f32 1.0, %v3145_v32  ;;  %v3147_v60 = vpop.eup %3146  ;;  %v1811_v16 = vmul.f32 1.442695, %v1706_v23  ;;  %v1542_v39 = vpop.f32.mrf.mxu1 }
 0x25e   : > { %3164 = vrcp.f32 %v1888_v6  ;;  %v1890_v46 = vadd.f32 1.0, %v3147_v60  ;;  %v3149_v10 = vpop.eup %3148  ;;  %v1813_v58 = vmul.f32 1.442695, %v1707_v26  ;;  %v4959_v7 = vadd.f32 %v1542_v39, %v4616_v29  ;;  %1644 = vst [vmem:[%s4627_s11 + $0x158] sm:$0xff] %v4956_v48 }
 0x25f   : > { %3166 = vpow2.f32 %v1807_v61  ;;  %2345 = vmatprep.mubr.f32.mxu0 %v2140_v20  ;;  %v1891_v0 = vadd.f32 1.0, %v3149_v10  ;;  %v1708_v27 = vmul.f32 %v4956_v48, %v3906_v11  ;;  %v1544_v33 = vpop.f32.mrf.mxu1 }
 0x260   : > { %3168 = vrcp.f32 %v1889_v2  ;;  %2346 = vmatmul.mubr.f32.gmra.mxu0 %v2139_v4  ;;  %v3151_v42 = vpop.eup %3150  ;;  %1645 = vst [vmem:[%s4627_s11 + $0x160] sm:$0xff] %v4959_v7  ;;  %v1709_v62 = vmul.f32 %v4959_v7, %v3906_v11  ;;  %v4970_v59 = vadd.f32 %v1544_v33, %v4620_v28 }
 0x261   : > { %3170 = vpow2.f32 %v1809_v35  ;;  %v3153_v47 = vpop.eup %3152  ;;  %v1892_v34 = vadd.f32 1.0, %v3151_v42  ;;  %v1815_v12 = vmul.f32 1.442695, %v1708_v27  ;;  %v1548_v9 = vpop.f32.mrf.mxu1 }
 0x262   : > { %3172 = vrcp.f32 %v1890_v46  ;;  %v3155_v49 = vpop.eup %3154  ;;  %v2077_v8 = vmul.f32 %v3153_v47, %v4841_v53  ;;  %v1817_v24 = vmul.f32 1.442695, %v1709_v62  ;;  %1646 = vst [vmem:[%s4627_s11 + $0x168] sm:$0xff] %v4970_v59  ;;  %v1710_v15 = vmul.f32 %v4970_v59, %v3906_v11 }
 0x263   : > { %3174 = vpow2.f32 %v1811_v16  ;;  %v3157_v25 = vpop.eup %3156  ;;  %v1893_v52 = vadd.f32 1.0, %v3155_v49  ;;  %v4978_v50 = vadd.f32 %v1548_v9, %v4616_v29  ;;  %v1550_v44 = vpop.f32.mrf.mxu1 }
 0x264   : > { %3176 = vrcp.f32 %v1891_v0  ;;  %v3159_v5 = vpop.eup %3158  ;;  %v2078_v1 = vmul.f32 %v3157_v25, %v4848_v37  ;;  %v1819_v18 = vmul.f32 1.442695, %v1710_v15  ;;  %v4982_v43 = vadd.f32 %v1550_v44, %v4620_v28 }
 0x265   : > { %3178 = vpow2.f32 %v1813_v58  ;;  %v1894_v53 = vadd.f32 1.0, %v3159_v5  ;;  %1647 = vst [vmem:[%s4627_s11 + $0x170] sm:$0xff] %v4978_v50  ;;  %v1711_v22 = vmul.f32 %v4978_v50, %v3906_v11  ;;  %v1554_v41 = vpop.f32.mrf.mxu1  ;;  %v2141_v6 = vmul.f32 0.90909094, %v2077_v8 }
 0x266   : > { %3180 = vrcp.f32 %v1892_v34  ;;  %v2142_v54 = vmul.f32 0.90909094, %v2078_v1  ;;  %1648 = vst [vmem:[%s4627_s11 + $0x178] sm:$0xff] %v4982_v43  ;;  %v1712_v37 = vmul.f32 %v4982_v43, %v3906_v11  ;;  %v4993_v32 = vadd.f32 %v1554_v41, %v4616_v29 }
 0x267   : > { %3182 = vpow2.f32 %v1815_v12  ;;  %v1821_v4 = vmul.f32 1.442695, %v1711_v22  ;;  %v1556_v2 = vpop.f32.mrf.mxu1 }
 0x268   : > { %3184 = vrcp.f32 %v1893_v52  ;;  %2350 = vmatprep.mubr.f32.mxu0 %v2142_v54  ;;  %v1823_v60 = vmul.f32 1.442695, %v1712_v37  ;;  %1649 = vst [vmem:[%s4627_s11 + $0x180] sm:$0xff] %v4993_v32  ;;  %v1713_v35 = vmul.f32 %v4993_v32, %v3906_v11  ;;  %v5001_v17 = vadd.f32 %v1556_v2, %v4620_v28 }
 0x269   : > { %v3161_v56 = vpop.eup %3160  ;;  %3186 = vpow2.f32 %v1817_v24  ;;  %2351 = vmatmul.mubr.f32.gmra.mxu0 %v2141_v6  ;;  %v1560_v26 = vpop.f32.mrf.mxu1 }
 0x26a   : > { %v3163_v61 = vpop.eup %3162  ;;  %3188 = vrcp.f32 %v1894_v53  ;;  %v2079_v14 = vmul.f32 %v3161_v56, %v4857_v30  ;;  %v1825_v0 = vmul.f32 1.442695, %v1713_v35  ;;  %1650 = vst [vmem:[%s4627_s11 + $0x188] sm:$0xff] %v5001_v17  ;;  %v1714_v58 = vmul.f32 %v5001_v17, %v3906_v11 }
 0x26b   : > { %v3165_v21 = vpop.eup %3164  ;;  %v1895_v20 = vadd.f32 1.0, %v3163_v61  ;;  %3190 = vpow2.f32 %v1819_v18  ;;  %v5009_v42 = vadd.f32 %v1560_v26, %v4616_v29  ;;  %v1562_v33 = vpop.f32.mrf.mxu1 }
 0x26c   : > { %v3167_v23 = vpop.eup %3166  ;;  %v2080_v30 = vmul.f32 %v3165_v21, %v4865_v31  ;;  %v2143_v10 = vmul.f32 0.90909094, %v2079_v14  ;;  %v1827_v49 = vmul.f32 1.442695, %v1714_v58  ;;  %v5017_v9 = vadd.f32 %v1562_v33, %v4620_v28 }
 0x26d   : > { %v3169_v46 = vpop.eup %3168  ;;  %3192 = vrcp.f32 %v1895_v20  ;;  %v1896_v16 = vadd.f32 1.0, %v3167_v23  ;;  %1651 = vst [vmem:[%s4627_s11 + $0x190] sm:$0xff] %v5009_v42  ;;  %v1715_v12 = vmul.f32 %v5009_v42, %v3906_v11  ;;  %v1566_v52 = vpop.f32.mrf.mxu1 }
 0x26e   : > { %v3171_v39 = vpop.eup %3170  ;;  %3194 = vpow2.f32 %v1821_v4  ;;  %v2144_v47 = vmul.f32 0.90909094, %v2080_v30  ;;  %v2081_v34 = vmul.f32 %v3169_v46, %v4873_v40  ;;  %1652 = vst [vmem:[%s4627_s11 + $0x198] sm:$0xff] %v5017_v9  ;;  %v1716_v44 = vmul.f32 %v5017_v9, %v3906_v11 }
 0x26f   : > { %v3173_v27 = vpop.eup %3172  ;;  %3196 = vrcp.f32 %v1896_v16  ;;  %v1897_v31 = vadd.f32 1.0, %v3171_v39  ;;  %v1829_v5 = vmul.f32 1.442695, %v1715_v12  ;;  %v5025_v1 = vadd.f32 %v1566_v52, %v4616_v29  ;;  %v1568_v56 = vpop.f32.mrf.mxu1 }
 0x270   : > { %v3175_v62 = vpop.eup %3174  ;;  %3198 = vpow2.f32 %v1823_v60  ;;  %2355 = vmatprep.mubr.f32.mxu0 %v2144_v47  ;;  %v2082_v24 = vmul.f32 %v3173_v27, %v4881_v51  ;;  %v2145_v40 = vmul.f32 0.90909094, %v2081_v34  ;;  %v1831_v54 = vmul.f32 1.442695, %v1716_v44 }
 0x271   : > { %v3177_v8 = vpop.eup %3176  ;;  %3200 = vrcp.f32 %v1897_v31  ;;  %v1898_v25 = vadd.f32 1.0, %v3175_v62  ;;  %2356 = vmatmul.mubr.f32.gmra.mxu0 %v2143_v10  ;;  %1653 = vst [vmem:[%s4627_s11 + $0x1a0] sm:$0xff] %v5025_v1  ;;  %v1717_v6 = vmul.f32 %v5025_v1, %v3906_v11  ;;  %v5033_v61 = vadd.f32 %v1568_v56, %v4620_v28  ;;  %v1572_v21 = vpop.f32.mrf.mxu1 }
 0x272   : > { %v3179_v15 = vpop.eup %3178  ;;  %3202 = vpow2.f32 %v1825_v0  ;;  %v2146_v22 = vmul.f32 0.90909094, %v2082_v24  ;;  %v2083_v51 = vmul.f32 %v3177_v8, %v4889_v45  ;;  %v5041_v60 = vadd.f32 %v1572_v21, %v4616_v29 }
 0x273   : > { %v3181_v53 = vpop.eup %3180  ;;  %3204 = vrcp.f32 %v1898_v25  ;;  %v1899_v18 = vadd.f32 1.0, %v3179_v15  ;;  %v1833_v2 = vmul.f32 1.442695, %v1717_v6  ;;  %1654 = vst [vmem:[%s4627_s11 + $0x1a8] sm:$0xff] %v5033_v61  ;;  %v1718_v23 = vmul.f32 %v5033_v61, %v3906_v11  ;;  %v1574_v46 = vpop.f32.mrf.mxu1 }
 0x274   : > { %v3183_v41 = vpop.eup %3182  ;;  %3206 = vpow2.f32 %v1827_v49  ;;  %2360 = vmatprep.mubr.f32.mxu0 %v2146_v22  ;;  %v2084_v20 = vmul.f32 %v3181_v53, %v4896_v38  ;;  %v2147_v45 = vmul.f32 0.90909094, %v2083_v51  ;;  %1655 = vst [vmem:[%s4627_s11 + $0x1b0] sm:$0xff] %v5041_v60  ;;  %v1719_v39 = vmul.f32 %v5041_v60, %v3906_v11 }
 0x275   : > { %v3185_v37 = vpop.eup %3184  ;;  %3208 = vrcp.f32 %v1899_v18  ;;  %v1900_v14 = vadd.f32 1.0, %v3183_v41  ;;  %2361 = vmatmul.mubr.f32.gmra.mxu0 %v2145_v40  ;;  %v1835_v10 = vmul.f32 1.442695, %v1718_v23  ;;  %v5049_v0 = vadd.f32 %v1574_v46, %v4620_v28  ;;  %v1578_v27 = vpop.f32.mrf.mxu1 }
 0x276   : > { %v3187_v4 = vpop.eup %3186  ;;  %3210 = vpow2.f32 %v1829_v5  ;;  %v2148_v16 = vmul.f32 0.90909094, %v2084_v20  ;;  %v2085_v38 = vmul.f32 %v3185_v37, %v4904_v63  ;;  %v1837_v63 = vmul.f32 1.442695, %v1719_v39 }
 0x277   : > { %v3189_v35 = vpop.eup %3188  ;;  %3212 = vrcp.f32 %v1900_v14  ;;  %v1901_v30 = vadd.f32 1.0, %v3187_v4  ;;  %1656 = vst [vmem:[%s4627_s11 + $0x1b8] sm:$0xff] %v5049_v0  ;;  %v1720_v47 = vmul.f32 %v5049_v0, %v3906_v11  ;;  %v5057_v34 = vadd.f32 %v1578_v27, %v4616_v29  ;;  %v1580_v49 = vpop.f32.mrf.mxu1 }
 0x278   : > { %v3191_v26 = vpop.eup %3190  ;;  %3214 = vpow2.f32 %v1831_v54  ;;  %2365 = vmatprep.mubr.f32.mxu0 %v2148_v16  ;;  %v2086_v31 = vmul.f32 %v3189_v35, %v4912_v36  ;;  %v2149_v8 = vmul.f32 0.90909094, %v2085_v38  ;;  %v5065_v5 = vadd.f32 %v1580_v49, %v4620_v28 }
 0x279   : > { %3216 = vrcp.f32 %v1901_v30  ;;  %v1902_v58 = vadd.f32 1.0, %v3191_v26  ;;  %2366 = vmatmul.mubr.f32.gmra.mxu0 %v2147_v45  ;;  %v1839_v24 = vmul.f32 1.442695, %v1720_v47  ;;  %1657 = vst [vmem:[%s4627_s11 + $0x1c0] sm:$0xff] %v5057_v34  ;;  %v1721_v40 = vmul.f32 %v5057_v34, %v3906_v11  ;;  %v1584_v44 = vpop.f32.mrf.mxu1 }
 0x27a   : > { %v3193_v33 = vpop.eup %3192  ;;  %3218 = vpow2.f32 %v1833_v2  ;;  %v2150_v12 = vmul.f32 0.90909094, %v2086_v31  ;;  %v5069_v51 = vadd.f32 %v1584_v44, %v4616_v29  ;;  %1658 = vst [vmem:[%s4627_s11 + $0x1c8] sm:$0xff] %v5065_v5  ;;  %v1722_v54 = vmul.f32 %v5065_v5, %v3906_v11 }
 0x27b   : > { %v3195_v62 = vpop.eup %3194  ;;  %3220 = vrcp.f32 %v1902_v58  ;;  %v2087_v36 = vmul.f32 %v3193_v33, %v4919_v57  ;;  %v1841_v22 = vmul.f32 1.442695, %v1721_v40  ;;  %v1586_v6 = vpop.f32.mrf.mxu1 }
 0x27c   : > { %v3197_v25 = vpop.eup %3196  ;;  %v1903_v52 = vadd.f32 1.0, %v3195_v62  ;;  %3222 = vpow2.f32 %v1835_v10  ;;  %2370 = vmatprep.mubr.f32.mxu0 %v2150_v12  ;;  %1659 = vst [vmem:[%s4627_s11 + $0x1d0] sm:$0xff] %v5069_v51  ;;  %v1723_v20 = vmul.f32 %v5069_v51, %v3906_v11  ;;  %v5081_v45 = vadd.f32 %v1586_v6, %v4620_v28 }
 0x27d   : > { %v3199_v15 = vpop.eup %3198  ;;  %3224 = vpow2.f32 %v1837_v63  ;;  %v2088_v53 = vmul.f32 %v3197_v25, %v4926_v13  ;;  %v2151_v57 = vmul.f32 0.90909094, %v2087_v36  ;;  %2371 = vmatmul.mubr.f32.gmra.mxu0 %v2149_v8  ;;  %v1843_v2 = vmul.f32 1.442695, %v1722_v54  ;;  %v1590_v23 = vpop.f32.mrf.mxu1 }
 0x27e   : > { %v3201_v18 = vpop.eup %3200  ;;  %3226 = vrcp.f32 %v1903_v52  ;;  %v1904_v56 = vadd.f32 1.0, %v3199_v15  ;;  %v1845_v16 = vmul.f32 1.442695, %v1723_v20  ;;  %1660 = vst [vmem:[%s4627_s11 + $0x1d8] sm:$0xff] %v5081_v45  ;;  %v1724_v38 = vmul.f32 %v5081_v45, %v3906_v11 }
 0x27f   : > { %v3203_v41 = vpop.eup %3202  ;;  %3228 = vpow2.f32 %v1839_v24  ;;  %v2152_v37 = vmul.f32 0.90909094, %v2088_v53  ;;  %v2089_v13 = vmul.f32 %v3201_v18, %v4934_v3  ;;  %v5089_v10 = vadd.f32 %v1590_v23, %v4616_v29  ;;  %v1592_v39 = vpop.f32.mrf.mxu1 }
 0x280   : > { %v3205_v14 = vpop.eup %3204  ;;  %3230 = vrcp.f32 %v1904_v56  ;;  %v1905_v21 = vadd.f32 1.0, %v3203_v41  ;;  %v1847_v33 = vmul.f32 1.442695, %v1724_v38  ;;  %v5093_v63 = vadd.f32 %v1592_v39, %v4620_v28 }
 0x281   : > { %v3207_v4 = vpop.eup %3206  ;;  %3232 = vpow2.f32 %v1841_v22  ;;  %2375 = vmatprep.mubr.f32.mxu0 %v2152_v37  ;;  %v2090_v35 = vmul.f32 %v3205_v14, %v4938_v19  ;;  %v2153_v3 = vmul.f32 0.90909094, %v2089_v13  ;;  %1661 = vst [vmem:[%s4627_s11 + $0x1e0] sm:$0xff] %v5089_v10  ;;  %v1725_v62 = vmul.f32 %v5089_v10, %v3906_v11  ;;  %v1596_v49 = vpop.f32.mrf.mxu1 }
 0x282   : > { %v3209_v30 = vpop.eup %3208  ;;  %3234 = vrcp.f32 %v1905_v21  ;;  %v1906_v46 = vadd.f32 1.0, %v3207_v4  ;;  %2376 = vmatmul.mubr.f32.gmra.mxu0 %v2151_v57  ;;  %1662 = vst [vmem:[%s4627_s11 + $0x1e8] sm:$0xff] %v5093_v63  ;;  %v1726_v25 = vmul.f32 %v5093_v63, %v3906_v11  ;;  %v5105_v52 = vadd.f32 %v1596_v49, %v4616_v29 }
 0x283   : > { %v3211_v26 = vpop.eup %3210  ;;  %3236 = vpow2.f32 %v1843_v2  ;;  %v2154_v58 = vmul.f32 0.90909094, %v2090_v35  ;;  %v2091_v19 = vmul.f32 %v3209_v30, %v4949_v55  ;;  %v1849_v40 = vmul.f32 1.442695, %v1725_v62  ;;  %v1598_v15 = vpop.f32.mrf.mxu1 }
 0x284   : > { %v3213_v27 = vpop.eup %3212  ;;  %3238 = vrcp.f32 %v1906_v46  ;;  %v1907_v31 = vadd.f32 1.0, %v3211_v26  ;;  %v1851_v18 = vmul.f32 1.442695, %v1726_v25  ;;  %1663 = vst [vmem:[%s4627_s11 + $0x1f0] sm:$0xff] %v5105_v52  ;;  %v1727_v56 = vmul.f32 %v5105_v52, %v3906_v11 }
 0x285   : > { %v3215_v47 = vpop.eup %3214  ;;  %3240 = vpow2.f32 %v1845_v16  ;;  %2380 = vmatprep.mubr.f32.mxu0 %v2154_v58  ;;  %v2092_v12 = vmul.f32 %v3213_v27, %v4956_v48  ;;  %v2155_v55 = vmul.f32 0.90909094, %v2091_v19  ;;  %v5113_v22 = vadd.f32 %v1598_v15, %v4620_v28 }
 0x286   : > { %v3217_v8 = vpop.eup %3216  ;;  %3242 = vrcp.f32 %v1907_v31  ;;  %v1908_v36 = vadd.f32 1.0, %v3215_v47  ;;  %2381 = vmatmul.mubr.f32.gmra.mxu0 %v2153_v3  ;;  %v1853_v6 = vmul.f32 1.442695, %v1727_v56 }
 0x287   : > { %v3219_v24 = vpop.eup %3218  ;;  %3244 = vpow2.f32 %v1847_v33  ;;  %v2156_v44 = vmul.f32 0.90909094, %v2092_v12  ;;  %v2093_v48 = vmul.f32 %v3217_v8, %v4959_v7  ;;  %1664 = vst [vmem:[%s4627_s11 + $0x1f8] sm:$0xff] %v5113_v22  ;;  %v1728_v14 = vmul.f32 %v5113_v22, %v3906_v11  ;;  %s3298_s11 = sshll.u32 %s3413_s29, 4  ;;  %s3299_s11 = int_to_ptr.vmem [resolvable:$false] %s3298_s11 }
 0x288   : > { %v3221_v53 = vpop.eup %3220  ;;  %3246 = vrcp.f32 %v1908_v36  ;;  %v1909_v57 = vadd.f32 1.0, %v3219_v24  ;;  %s3300_s30 = scalar_lea.vmem %s3299_s11, 16384  ;;  %p3301_p0 = scmp.lt.s32.totalorder %s5166_s26, %s3299_s11 }
 0x289   : > { %v3223_v29 = vpop.eup %3222  ;;  %3248 = vpow2.f32 %v1849_v40  ;;  %2385 = vmatprep.mubr.f32.mxu0 %v2156_v44  ;;  %v2094_v41 = vmul.f32 %v3221_v53, %v4970_v59  ;;  %v2157_v28 = vmul.f32 0.90909094, %v2093_v48  ;;  %v1855_v2 = vmul.f32 1.442695, %v1728_v14  ;;  %p3302_p1 = scmp.lt.s32.totalorder %s3300_s30, %s3294_s3 }
 0x28a   : > { %v3225_v54 = vpop.eup %3224  ;;  %3250 = vrcp.f32 %v1909_v57  ;;  %v1910_v7 = vadd.f32 1.0, %v3223_v29  ;;  %2386 = vmatmul.mubr.f32.gmra.mxu0 %v2155_v55 }
 0x28b   : > { %v3227_v37 = vpop.eup %3226  ;;  %v1911_v13 = vadd.f32 1.0, %v3225_v54  ;;  %3252 = vpow2.f32 %v1851_v18  ;;  %v2158_v21 = vmul.f32 0.90909094, %v2094_v41  ;;  %p3303_p2 = por %p3302_p1, %p3301_p0 }
 0x28c   : > { %v3229_v20 = vpop.eup %3228  ;;  %3254 = vrcp.f32 %v1910_v7  ;;  %v2095_v23 = vmul.f32 %v3227_v37, %v4978_v50 }
 0x28d   : > { %v3231_v4 = vpop.eup %3230  ;;  %3256 = vrcp.f32 %v1911_v13  ;;  %v1912_v59 = vadd.f32 1.0, %v3229_v20  ;;  %2390 = vmatprep.mubr.f32.mxu0 %v2158_v21  ;;  %p3304_p3 = pnand %p3303_p2, %p3297_p13 }
 0x28e   : > { %v3233_v35 = vpop.eup %3232  ;;  %3258 = vpow2.f32 %v1853_v6  ;;  %2391 = vmatmul.mubr.f32.gmra.mxu0 %v2157_v28  ;;  %v2096_v3 = vmul.f32 %v3231_v4, %v4982_v43  ;;  %v2159_v39 = vmul.f32 0.90909094, %v2095_v23 }
 0x28f   : > { %v3235_v30 = vpop.eup %3234  ;;  %3260 = vrcp.f32 %v1912_v59  ;;  %v1913_v46 = vadd.f32 1.0, %v3233_v35 }
 0x290   : > { %v3237_v11 = vpop.eup %3236  ;;  %3262 = vpow2.f32 %v1855_v2  ;;  %v2160_v16 = vmul.f32 0.90909094, %v2096_v3  ;;  %v2097_v58 = vmul.f32 %v3235_v30, %v4993_v32 }
 0x291   : > { %v3239_v38 = vpop.eup %3238  ;;  %3264 = vrcp.f32 %v1913_v46  ;;  %v1914_v26 = vadd.f32 1.0, %v3237_v11 }
 0x292   : > { %v3241_v19 = vpop.eup %3240  ;;  %2395 = vmatprep.mubr.f32.mxu0 %v2160_v16  ;;  %v2098_v50 = vmul.f32 %v3239_v38, %v5001_v17  ;;  %v2161_v49 = vmul.f32 0.90909094, %v2097_v58 }
 0x293   : > { %v3243_v27 = vpop.eup %3242  ;;  %3266 = vrcp.f32 %v1914_v26  ;;  %v1915_v31 = vadd.f32 1.0, %v3241_v19  ;;  %2396 = vmatmul.mubr.f32.gmra.mxu0 %v2159_v39 }
 0x294   : > { %v3245_v43 = vpop.eup %3244  ;;  %v2162_v33 = vmul.f32 0.90909094, %v2098_v50  ;;  %v2099_v12 = vmul.f32 %v3243_v27, %v5009_v42 }
 0x295   : > { %v3247_v47 = vpop.eup %3246  ;;  %3268 = vrcp.f32 %v1915_v31  ;;  %v1916_v62 = vadd.f32 1.0, %v3245_v43 }
 0x296   : > { %v3249_v55 = vpop.eup %3248  ;;  %2400 = vmatprep.mubr.f32.mxu0 %v2162_v33  ;;  %v2100_v32 = vmul.f32 %v3247_v47, %v5017_v9  ;;  %v2163_v15 = vmul.f32 0.90909094, %v2099_v12 }
 0x297   : > { %v3251_v8 = vpop.eup %3250  ;;  %3270 = vrcp.f32 %v1916_v62  ;;  %v1917_v36 = vadd.f32 1.0, %v3249_v55  ;;  %2401 = vmatmul.mubr.f32.gmra.mxu0 %v2161_v49 }
 0x298   : > { %v3253_v17 = vpop.eup %3252  ;;  %v2164_v25 = vmul.f32 0.90909094, %v2100_v32  ;;  %v2101_v44 = vmul.f32 %v3251_v8, %v5025_v1 }
 0x299   : > { %v3255_v24 = vpop.eup %3254  ;;  %3272 = vrcp.f32 %v1917_v36  ;;  %v1918_v40 = vadd.f32 1.0, %v3253_v17 }
 0x29a   : > { %v3257_v48 = vpop.eup %3256  ;;  %2405 = vmatprep.mubr.f32.mxu0 %v2164_v25  ;;  %v2102_v42 = vmul.f32 %v3255_v24, %v5033_v61  ;;  %v2165_v29 = vmul.f32 0.90909094, %v2101_v44 }
 0x29b   : > { %v3259_v53 = vpop.eup %3258  ;;  %3274 = vrcp.f32 %v1918_v40  ;;  %2406 = vmatmul.mubr.f32.gmra.mxu0 %v2163_v15  ;;  %v2103_v54 = vmul.f32 %v3257_v48, %v5041_v60 }
 0x29c   : > { %v3261_v9 = vpop.eup %3260  ;;  %v1919_v57 = vadd.f32 1.0, %v3259_v53  ;;  %v2166_v18 = vmul.f32 0.90909094, %v2102_v42 }
 0x29d   : > { %v3263_v56 = vpop.eup %3262  ;;  %v2104_v41 = vmul.f32 %v3261_v9, %v5049_v0  ;;  %v2167_v61 = vmul.f32 0.90909094, %v2103_v54 }
 0x29e   : > { %v3265_v7 = vpop.eup %3264  ;;  %3276 = vrcp.f32 %v1919_v57  ;;  %v1920_v6 = vadd.f32 1.0, %v3263_v56  ;;  %2410 = vmatprep.mubr.f32.mxu0 %v2166_v18 }
 0x29f   : > { %2411 = vmatmul.mubr.f32.gmra.mxu0 %v2165_v29  ;;  %v2168_v1 = vmul.f32 0.90909094, %v2104_v41  ;;  %v2105_v14 = vmul.f32 %v3265_v7, %v5057_v34 }
 0x2a0   : > { %v3267_v37 = vpop.eup %3266  ;;  %3278 = vrcp.f32 %v1920_v6 }
 0x2a1   : > { %2415 = vmatprep.mubr.f32.mxu0 %v2168_v1  ;;  %v2106_v13 = vmul.f32 %v3267_v37, %v5065_v5  ;;  %v2169_v60 = vmul.f32 0.90909094, %v2105_v14 }
 0x2a2   : > { %v3269_v21 = vpop.eup %3268 }
 0x2a3   : > { %2416 = vmatmul.mubr.f32.gmra.mxu0 %v2167_v61  ;;  %v2170_v20 = vmul.f32 0.90909094, %v2106_v13  ;;  %v2107_v4 = vmul.f32 %v3269_v21, %v5069_v51 }
 0x2a4   : > { %v3271_v0 = vpop.eup %3270 }
 0x2a5   : > { %2420 = vmatprep.mubr.f32.mxu0 %v2170_v20  ;;  %v2108_v28 = vmul.f32 %v3271_v0, %v5081_v45  ;;  %v2171_v35 = vmul.f32 0.90909094, %v2107_v4 }
 0x2a6   : > { %v3273_v59 = vpop.eup %3272 }
 0x2a7   : > { %2421 = vmatmul.mubr.f32.gmra.mxu0 %v2169_v60  ;;  %v2172_v2 = vmul.f32 0.90909094, %v2108_v28  ;;  %v2109_v34 = vmul.f32 %v3273_v59, %v5089_v10  ;;  %v5142_v10 = vld [vmem:[%s5334_s7] ss:$0 sm:$0xff] }
 0x2a8   : > { %v3275_v23 = vpop.eup %3274 }
 0x2a9   : > { %2425 = vmatprep.mubr.f32.mxu0 %v2172_v2  ;;  %v2110_v5 = vmul.f32 %v3275_v23, %v5093_v63  ;;  %v2173_v11 = vmul.f32 0.90909094, %v2109_v34 }
 0x2ab   : > { %v3277_v3 = vpop.eup %3276  ;;  %2426 = vmatmul.mubr.f32.gmra.mxu0 %v2171_v35  ;;  %v2174_v30 = vmul.f32 0.90909094, %v2110_v5 }
 0x2ac   : > { %v2111_v45 = vmul.f32 %v3277_v3, %v5105_v52 }
 0x2ad   : > { %v3279_v46 = vpop.eup %3278  ;;  %2430 = vmatprep.mubr.f32.mxu0 %v2174_v30 }
 0x2ae   : > { %v2112_v51 = vmul.f32 %v3279_v46, %v5113_v22  ;;  %v2175_v38 = vmul.f32 0.90909094, %v2111_v45 }
 0x2af   : > { %2431 = vmatmul.mubr.f32.gmra.mxu0 %v2173_v11 }
 0x2b0   : > { %v2176_v16 = vmul.f32 0.90909094, %v2112_v51 }
 0x2b2   : > { %2435 = vmatprep.mubr.f32.mxu0 %v2176_v16 }
 0x2b3   : > { %2436 = vmatmul.mubr.f32.gmra.mxu0 %v2175_v38 }
 0x2da   : > { %v2282_v63 = vpop.f32.mrf.mxu0 }
 0x2db   : > { %v2283_v26 = vadd.f32 %v5142_v10, %v2282_v63 }
 0x2dc   : > { %v2284_v39 = vpop.f32.mrf.mxu0 }
 0x2dd   : > { %2441 = vst [vmem:[%s5145_s13] sm:$0xff] %v2283_v26 }
 0x2de   : > { %v2287_v52 = vpop.f32.mrf.mxu0 }
 0x2df   : > { %v2288_v22 = vadd.f32 %v5142_v10, %v2287_v52 }
 0x2e0   : > { %v2289_v58 = vpop.f32.mrf.mxu0 }
 0x2e1   : > { %2442 = vst [vmem:[%s5145_s13 + $0x8] sm:$0xff] %v2288_v22 }
 0x2e3   : > { %v2292_v19 = vpop.f32.mrf.mxu0 }
 0x2e4   : > { %v2293_v50 = vadd.f32 %v5142_v10, %v2292_v19 }
 0x2e5   : > { %v2294_v27 = vpop.f32.mrf.mxu0 }
 0x2e6   : > { %2443 = vst [vmem:[%s5145_s13 + $0x10] sm:$0xff] %v2293_v50 }
 0x2ed   : > { %v2297_v31 = vpop.f32.mrf.mxu0 }
 0x2ee   : > { %v2298_v43 = vadd.f32 %v5142_v10, %v2297_v31 }
 0x2ef   : > { %v2299_v33 = vpop.f32.mrf.mxu0 }
 0x2f0   : > { %2444 = vst [vmem:[%s5145_s13 + $0x18] sm:$0xff] %v2298_v43 }
 0x2f1   : > { %v2302_v47 = vpop.f32.mrf.mxu0 }
 0x2f2   : > { %v2303_v62 = vadd.f32 %v5142_v10, %v2302_v47 }
 0x2f3   : > { %v2304_v49 = vpop.f32.mrf.mxu0 }
 0x2f4   : > { %2445 = vst [vmem:[%s5145_s13 + $0x20] sm:$0xff] %v2303_v62 }
 0x2f5   : > { %v2307_v12 = vpop.f32.mrf.mxu0 }
 0x2f6   : > { %v2308_v55 = vadd.f32 %v5142_v10, %v2307_v12 }
 0x2f7   : > { %v2309_v32 = vpop.f32.mrf.mxu0 }
 0x2f8   : > { %2446 = vst [vmem:[%s5145_s13 + $0x28] sm:$0xff] %v2308_v55 }
 0x2f9   : > { %3307 = shalt.err (!%p3304_p3)
}
 0x2fa   : > { %s3308_s19 = scalar_lea.hbm %s5162_s22, 8192  ;;  %s3312_s28 = scalar_lea.hbm %s5336_s9, 16384 }
 0x2fb   : > { %p3309_p4 = scmp.ne.s32.totalorder %s5162_s22, %s3308_s19  ;;  %p3313_p9 = scmp.lt.s32.totalorder %s5162_s22, %s5336_s9 }
 0x2fc   : > { %p3314_p10 = scmp.lt.s32.totalorder %s3312_s28, %s3308_s19 }
 0x2fd   : > { %p3310_p7 = pnand %p3309_p4, %p3518_p5 }
 0x2fe   : > { %p3315_p11 = por %p3314_p10, %p3313_p9 }
 0x2ff   : > { %p3311_p8 = pneg %p3310_p7 }
 0x301   : > { %p3316_p12 = pnand %p3315_p11, %p3311_p8 }
 0x303   : > { %3319 = shalt.err (!%p3316_p12)
}
 0x304   : > { %s3414_s3 = smov 256   ;;  %s3415_s11 = smov 16   ;;  %v2312_v8 = vpop.f32.mrf.mxu0 }
 0x305   : > { %2715 = dma.vmem_to_hbm [thread:$0]  (%p3518_p5), %s5166_s26, 8192, %s5162_s22, %s5173_s2, %s3414_s3, %s3414_s3, %s3415_s11   ;;  %v2313_v36 = vadd.f32 %v5142_v10, %v2312_v8 }
 0x306   : > { %s2498_s4 = sshll.u32 %s3913_s27, 4  ;;  %v2314_v17 = vpop.f32.mrf.mxu0  ;;  %s2474_s30 = scalar_lea.sflag [#allocation5], %s3891_s12  ;;  %s5201_s4 = int_to_ptr.vmem [resolvable:$true] %s2498_s4 }
 0x307   : > { %s3320_s19 = scalar_lea.vmem %s5201_s4, 8192  ;;  %s3416_s14 = smov [#allocation4]  }
 0x308   : > { %p3321_p13 = scmp.ne.s32.totalorder %s5201_s4, %s3320_s19  ;;  %s3324_s21 = sshll.u32 %s3416_s14, 4  ;;  %s3325_s21 = int_to_ptr.vmem [resolvable:$false] %s3324_s21 }
 0x309   : > { %s3326_s22 = scalar_lea.vmem %s3325_s21, 16384  ;;  %p3327_p2 = scmp.lt.s32.totalorder %s5201_s4, %s3325_s21 }
 0x30a   : > { %p3322_p0 = pnand %p3321_p13, %p3518_p5  ;;  %p3328_p3 = scmp.lt.s32.totalorder %s3326_s22, %s3320_s19 }
 0x30c   : > { %p3323_p1 = pneg %p3322_p0  ;;  %p3329_p4 = por %p3328_p3, %p3327_p2 }
 0x30e   : > { %p3330_p7 = pnand %p3329_p4, %p3323_p1 }
 0x310   : > { %3333 = shalt.err (!%p3330_p7)
}
 0x311   : > { %s3334_s27 = scalar_lea.hbm %s5171_s1, 8192  ;;  %s3338_s28 = scalar_lea.hbm %s5335_s8, 16384 }
 0x312   : > { %p3335_p8 = scmp.ne.s32.totalorder %s5171_s1, %s3334_s27  ;;  %p3339_p11 = scmp.lt.s32.totalorder %s5171_s1, %s5335_s8 }
 0x313   : > { %p3340_p12 = scmp.lt.s32.totalorder %s3338_s28, %s3334_s27 }
 0x314   : > { %p3336_p9 = pnand %p3335_p8, %p3518_p5 }
 0x315   : > { %p3341_p13 = por %p3340_p12, %p3339_p11 }
 0x316   : > { %p3337_p10 = pneg %p3336_p9 }
 0x318   : > { %p3342_p0 = pnand %p3341_p13, %p3337_p10 }
 0x31a   : > { %3345 = shalt.err (!%p3342_p0)
}
 0x31b   : > { %2714 = dma.vmem_to_hbm [thread:$0]  (%p3518_p5), %s5201_s4, 8192, %s5171_s1, %s2474_s30, %s3414_s3, %s3414_s3, %s3415_s11   ;;  %v2317_v25 = vpop.f32.mrf.mxu0 }
 0x31c   : > { %2447 = vst [vmem:[%s5145_s13 + $0x30] sm:$0xff] %v2313_v36  ;;  %v2318_v24 = vadd.f32 %v5142_v10, %v2317_v25  ;;  %s2681_s1 = sshll.u32 %s3499_s0, 12  ;;  %s2531_s3 = sshll.u32 %s5145_s13, 4  ;;  %s5284_s3 = int_to_ptr.vmem [resolvable:$true] %s2531_s3 }
 0x31d   : > { %v2319_v40 = vpop.f32.mrf.mxu0  ;;  %s5281_s30 = scalar_lea.hbm %s5337_s10, %s2681_s1  ;;  %s3346_s19 = scalar_lea.vmem %s5284_s3, 4096 }
 0x31e   : > { %2448 = vst [vmem:[%s5145_s13 + $0x38] sm:$0xff] %v2318_v24  ;;  %p3347_p1 = scmp.ne.s32.totalorder %s5284_s3, %s3346_s19  ;;  %s3417_s0 = smov [#allocation8]  }
 0x31f   : > { %v2322_v15 = vpop.f32.mrf.mxu0  ;;  %s3350_s21 = sshll.u32 %s3417_s0, 4  ;;  %s3351_s21 = int_to_ptr.vmem [resolvable:$false] %s3350_s21 }
 0x320   : > { %v2323_v44 = vadd.f32 %v5142_v10, %v2322_v15  ;;  %p3348_p2 = pnand %p3347_p1, %p3518_p5  ;;  %s3352_s22 = scalar_lea.vmem %s3351_s21, 8192 }
 0x321   : > { %v2324_v48 = vpop.f32.mrf.mxu0  ;;  %p3353_p4 = scmp.lt.s32.totalorder %s5284_s3, %s3351_s21  ;;  %p3354_p7 = scmp.lt.s32.totalorder %s3352_s22, %s3346_s19 }
 0x322   : > { %2449 = vst [vmem:[%s5145_s13 + $0x40] sm:$0xff] %v2323_v44  ;;  %p3349_p3 = pneg %p3348_p2 }
 0x323   : > { %v2327_v42 = vpop.f32.mrf.mxu0  ;;  %p3355_p8 = por %p3354_p7, %p3353_p4 }
 0x324   : > { %v2328_v53 = vadd.f32 %v5142_v10, %v2327_v42 }
 0x325   : > { %v2329_v9 = vpop.f32.mrf.mxu0  ;;  %p3356_p9 = pnand %p3355_p8, %p3349_p3 }
 0x326   : > { %2450 = vst [vmem:[%s5145_s13 + $0x48] sm:$0xff] %v2328_v53 }
 0x327   : > { %v2332_v57 = vpop.f32.mrf.mxu0 }
 0x328   : > { %v2333_v18 = vadd.f32 %v5142_v10, %v2332_v57 }
 0x329   : > { %v2334_v56 = vpop.f32.mrf.mxu0 }
 0x32a   : > { %2451 = vst [vmem:[%s5145_s13 + $0x50] sm:$0xff] %v2333_v18 }
 0x32b   : > { %v2337_v29 = vpop.f32.mrf.mxu0 }
 0x32c   : > { %v2338_v41 = vadd.f32 %v5142_v10, %v2337_v29 }
 0x32d   : > { %v2339_v54 = vpop.f32.mrf.mxu0 }
 0x32e   : > { %2452 = vst [vmem:[%s5145_s13 + $0x58] sm:$0xff] %v2338_v41 }
 0x32f   : > { %v2342_v7 = vpop.f32.mrf.mxu0 }
 0x330   : > { %v2343_v6 = vadd.f32 %v5142_v10, %v2342_v7 }
 0x331   : > { %v2344_v1 = vpop.f32.mrf.mxu0 }
 0x332   : > { %2453 = vst [vmem:[%s5145_s13 + $0x60] sm:$0xff] %v2343_v6 }
 0x333   : > { %v2347_v37 = vpop.f32.mrf.mxu0 }
 0x334   : > { %v2348_v61 = vadd.f32 %v5142_v10, %v2347_v37 }
 0x335   : > { %v2349_v13 = vpop.f32.mrf.mxu0 }
 0x336   : > { %2454 = vst [vmem:[%s5145_s13 + $0x68] sm:$0xff] %v2348_v61 }
 0x337   : > { %v2352_v14 = vpop.f32.mrf.mxu0 }
 0x338   : > { %v2353_v21 = vadd.f32 %v5142_v10, %v2352_v14 }
 0x339   : > { %v2354_v20 = vpop.f32.mrf.mxu0 }
 0x33a   : > { %2455 = vst [vmem:[%s5145_s13 + $0x70] sm:$0xff] %v2353_v21 }
 0x33b   : > { %v2357_v0 = vpop.f32.mrf.mxu0 }
 0x33c   : > { %v2358_v60 = vadd.f32 %v5142_v10, %v2357_v0 }
 0x33d   : > { %v2359_v28 = vpop.f32.mrf.mxu0 }
 0x33e   : > { %2456 = vst [vmem:[%s5145_s13 + $0x78] sm:$0xff] %v2358_v60 }
 0x33f   : > { %v2362_v4 = vpop.f32.mrf.mxu0 }
 0x340   : > { %v2363_v59 = vadd.f32 %v5142_v10, %v2362_v4 }
 0x341   : > { %v2364_v2 = vpop.f32.mrf.mxu0 }
 0x342   : > { %2457 = vst [vmem:[%s5145_s13 + $0x80] sm:$0xff] %v2363_v59 }
 0x343   : > { %v2367_v23 = vpop.f32.mrf.mxu0 }
 0x344   : > { %v2368_v35 = vadd.f32 %v5142_v10, %v2367_v23 }
 0x345   : > { %v2369_v5 = vpop.f32.mrf.mxu0 }
 0x346   : > { %2458 = vst [vmem:[%s5145_s13 + $0x88] sm:$0xff] %v2368_v35 }
 0x347   : > { %v2372_v34 = vpop.f32.mrf.mxu0 }
 0x348   : > { %v2373_v3 = vadd.f32 %v5142_v10, %v2372_v34 }
 0x349   : > { %v2374_v30 = vpop.f32.mrf.mxu0 }
 0x34a   : > { %2459 = vst [vmem:[%s5145_s13 + $0x90] sm:$0xff] %v2373_v3 }
 0x34b   : > { %v2377_v46 = vpop.f32.mrf.mxu0 }
 0x34c   : > { %v2378_v11 = vadd.f32 %v5142_v10, %v2377_v46 }
 0x34d   : > { %v2379_v45 = vpop.f32.mrf.mxu0 }
 0x34e   : > { %2460 = vst [vmem:[%s5145_s13 + $0x98] sm:$0xff] %v2378_v11 }
 0x34f   : > { %v2382_v51 = vpop.f32.mrf.mxu0 }
 0x350   : > { %v2383_v16 = vadd.f32 %v5142_v10, %v2382_v51 }
 0x351   : > { %v2384_v38 = vpop.f32.mrf.mxu0 }
 0x352   : > { %2461 = vst [vmem:[%s5145_s13 + $0xa0] sm:$0xff] %v2383_v16 }
 0x353   : > { %v2387_v63 = vpop.f32.mrf.mxu0 }
 0x354   : > { %v2388_v26 = vadd.f32 %v5142_v10, %v2387_v63 }
 0x355   : > { %v2389_v39 = vpop.f32.mrf.mxu0 }
 0x356   : > { %2462 = vst [vmem:[%s5145_s13 + $0xa8] sm:$0xff] %v2388_v26 }
 0x357   : > { %v2392_v52 = vpop.f32.mrf.mxu0 }
 0x358   : > { %v2393_v22 = vadd.f32 %v5142_v10, %v2392_v52 }
 0x359   : > { %v2394_v58 = vpop.f32.mrf.mxu0 }
 0x35a   : > { %2463 = vst [vmem:[%s5145_s13 + $0xb0] sm:$0xff] %v2393_v22 }
 0x35b   : > { %v2397_v19 = vpop.f32.mrf.mxu0 }
 0x35c   : > { %v2398_v50 = vadd.f32 %v5142_v10, %v2397_v19 }
 0x35d   : > { %v2399_v27 = vpop.f32.mrf.mxu0 }
 0x35e   : > { %2464 = vst [vmem:[%s5145_s13 + $0xb8] sm:$0xff] %v2398_v50 }
 0x35f   : > { %v2402_v31 = vpop.f32.mrf.mxu0 }
 0x360   : > { %v2403_v43 = vadd.f32 %v5142_v10, %v2402_v31 }
 0x361   : > { %v2404_v33 = vpop.f32.mrf.mxu0 }
 0x362   : > { %2465 = vst [vmem:[%s5145_s13 + $0xc0] sm:$0xff] %v2403_v43 }
 0x363   : > { %v2407_v47 = vpop.f32.mrf.mxu0 }
 0x364   : > { %v2408_v62 = vadd.f32 %v5142_v10, %v2407_v47 }
 0x365   : > { %v2409_v49 = vpop.f32.mrf.mxu0 }
 0x366   : > { %2466 = vst [vmem:[%s5145_s13 + $0xc8] sm:$0xff] %v2408_v62 }
 0x367   : > { %v2412_v12 = vpop.f32.mrf.mxu0 }
 0x368   : > { %v2413_v55 = vadd.f32 %v5142_v10, %v2412_v12 }
 0x369   : > { %v2414_v32 = vpop.f32.mrf.mxu0 }
 0x36a   : > { %2467 = vst [vmem:[%s5145_s13 + $0xd0] sm:$0xff] %v2413_v55 }
 0x36b   : > { %v2417_v8 = vpop.f32.mrf.mxu0 }
 0x36c   : > { %v2418_v36 = vadd.f32 %v5142_v10, %v2417_v8 }
 0x36d   : > { %v2419_v17 = vpop.f32.mrf.mxu0 }
 0x36e   : > { %2468 = vst [vmem:[%s5145_s13 + $0xd8] sm:$0xff] %v2418_v36 }
 0x36f   : > { %v2422_v25 = vpop.f32.mrf.mxu0 }
 0x370   : > { %v2423_v24 = vadd.f32 %v5142_v10, %v2422_v25 }
 0x371   : > { %v2424_v40 = vpop.f32.mrf.mxu0 }
 0x372   : > { %2469 = vst [vmem:[%s5145_s13 + $0xe0] sm:$0xff] %v2423_v24 }
 0x373   : > { %v2427_v15 = vpop.f32.mrf.mxu0 }
 0x374   : > { %v2428_v44 = vadd.f32 %v5142_v10, %v2427_v15 }
 0x375   : > { %v2429_v48 = vpop.f32.mrf.mxu0 }
 0x376   : > { %2470 = vst [vmem:[%s5145_s13 + $0xe8] sm:$0xff] %v2428_v44 }
 0x377   : > { %v2432_v42 = vpop.f32.mrf.mxu0 }
 0x378   : > { %v2433_v53 = vadd.f32 %v5142_v10, %v2432_v42 }
 0x379   : > { %v2434_v9 = vpop.f32.mrf.mxu0 }
 0x37a   : > { %2471 = vst [vmem:[%s5145_s13 + $0xf0] sm:$0xff] %v2433_v53 }
 0x37b   : > { %v2437_v57 = vpop.f32.mrf.mxu0 }
 0x37c   : > { %v2438_v18 = vadd.f32 %v5142_v10, %v2437_v57 }
 0x37d   : > { %v2439_v56 = vpop.f32.mrf.mxu0 }
 0x37e   : > { %2472 = vst [vmem:[%s5145_s13 + $0xf8] sm:$0xff] %v2438_v18 }
 0x37f   : > { %3359 = shalt.err (!%p3356_p9)
}
 0x380   : > { %s3360_s27 = scalar_lea.hbm %s5281_s30, 4096  ;;  %s3364_s26 = scalar_lea.hbm %s5337_s10, 8192 }
 0x381   : > { %p3361_p10 = scmp.ne.s32.totalorder %s5281_s30, %s3360_s27  ;;  %p3365_p13 = scmp.lt.s32.totalorder %s5281_s30, %s5337_s10 }
 0x382   : > { %p3366_p0 = scmp.lt.s32.totalorder %s3364_s26, %s3360_s27 }
 0x383   : > { %p3362_p11 = pnand %p3361_p10, %p3518_p5 }
 0x384   : > { %p3367_p1 = por %p3366_p0, %p3365_p13 }
 0x385   : > { %p3363_p12 = pneg %p3362_p11 }
 0x387   : > { %p3368_p2 = pnand %p3367_p1, %p3363_p12 }
 0x389   : > { %3371 = shalt.err (!%p3368_p2)
}
 0x38a   : > { %s3418_s14 = smov 128   ;;  %s3419_s1 = smov 8  }
 0x38b   : > { %2716 = dma.vmem_to_hbm [thread:$0]  (%p3518_p5), %s5284_s3, 4096, %s5281_s30, %s5173_s2, %s3418_s14, %s3418_s14, %s3419_s1  }
 0x38c PF: > { %p2730_p3 = scmp.ge.s32.totalorder %s3410_s18, 2  ;;  %s2546_s11 = sand.u32 1, %s3398_s15  }
 0x38d   : > { %s2547_s4 = scalar_lea.sflag [#allocation5], %s2546_s11 }
 0x38e   : > { %p2721_p4 = pnand %p2730_p3, %p3522_p6 }
 0x390   : > { %p2722_p7 = pneg %p2721_p4 }
 0x392   : > { %3389 = dma.done.wait (%p2722_p7), %s2547_s4, 8192  }
 0x393   : > { %3391 = vsyncadd (%p2722_p7), %s2547_s4, 4294959104  ;;  %s5374_s19 = sadd.s32 4294967294, %s3410_s18  }
 0x394   : > { %s2555_s0 = sand.u32 1, %s5374_s19  }
 0x395   : > { %s2556_s21 = scalar_lea.sflag [#allocation7], %s2555_s0 }
 0x396   : > { %3393 = dma.done.wait (%p2722_p7), %s2556_s21, 12288  }
 0x397   : > { %3395 = vsyncadd (%p2722_p7), %s2556_s21, 4294955008  ;;  %p25_p5 = scmp.ge.s32.totalorder %s3503_s20, 4   ;;  %s5375_s15 = smov %s3402_s16 }
 0x398   : > { %s5376_s16 = smov %s3406_s17  ;;  %s5377_s17 = smov %s3516_s23 }
 0x399   : > { %s5378_s18 = smov %s3503_s20  ;;  %27 = sbr.rel (!%p25_p5) target bundleno = 11 (0xb), region = 115 }
 0x39e   :  { %2570 = vsyncpa [#allocation5], 1 }
 0x39f   :  { %2572 = vsyncpa [#allocation5 + $0x1], 1 }
 0x3a0   :  { %2573 = vsyncpa [#allocation7], 1 }
 0x3a1   :  { %2575 = vsyncpa [#allocation7 + $0x1], 1 }

</bundles_post_ra>
